<compile_context>
chip_gen: v6e
topology: v6e:2x2x1
jax: 0.10.0
libtpu: 0.0.40
codegen_flags: <defaults>
</compile_context>

<pallas_src>
import math
import random

import jax
import jax.numpy as jnp
from jax.experimental import pallas as pl
from jax.experimental.pallas import tpu as pltpu

LANE = 128        # channel padding target (TPU lane width)
BN_EPS = 1e-5


def _pad_channels(c):
    return ((c + LANE - 1) // LANE) * LANE


# --------------------------------------------------------------------------
# Deterministic random graph (Erdos-Renyi), replacing the networkx-based
# RandomGraph used by the original repo.
# --------------------------------------------------------------------------
class RandomGraph:
    def __init__(self, node_num, p, seed, graph_mode="ER"):
        # TODO(synk): only "ER" graph_mode is implemented (WS/BA omitted).
        self.node_num = node_num
        rng = random.Random(seed)
        self.adj = {i: set() for i in range(node_num)}
        for i in range(node_num):
            for j in range(i + 1, node_num):
                if rng.random() < p:
                    self.adj[i].add(j)
                    self.adj[j].add(i)

    def get_graph_info(self):
        in_edges = {0: []}
        nodes = [0]
        end = []
        for node in range(self.node_num):
            neighbors = sorted(self.adj[node])
            edges, check = [], []
            for nb in neighbors:
                if node > nb:
                    edges.append(nb + 1)
                    check.append(nb)
            if not edges:
                edges.append(0)
            in_edges[node + 1] = edges
            if check == neighbors:
                end.append(node + 1)
            nodes.append(node + 1)
        in_edges[self.node_num + 1] = end
        nodes.append(self.node_num + 1)
        return nodes, in_edges


# --------------------------------------------------------------------------
# Pallas kernels
# --------------------------------------------------------------------------
def _make_node_kernel(D, ss, stride, Ho, Wo, cp_in, cp_out):
    """Fused: aggregate D in-edges + ReLU + depthwise 3x3 + pointwise 1x1
    (MXU) + per-image partial BatchNorm statistics.  One grid step = one
    batch image."""
    s = stride

    def kernel(sw_ref, *refs):
        slab_refs = refs[:D * ss]          # D * s^2 phase slabs, (1,Hs,Ws,Cp)
        wdw_ref = refs[D * ss]             # (9, cp_in) depthwise weights
        wpw_ref = refs[D * ss + 1]         # (cp_in, cp_out) pointwise weights
        y_ref = refs[D * ss + 2]           # (Ho*Wo, cp_out) pre-BN output
        stats_ref = refs[D * ss + 3]       # (1, 8, cp_out) partial stats

        # ---- in-edge aggregation (sigmoid-weighted) + single ReLU ----------
        phases = []
        for ph in range(ss):
            acc = slab_refs[ph][0] * sw_ref[0]
            for d in range(1, D):
                acc = acc + slab_refs[d * ss + ph][0] * sw_ref[d]
            phases.append(jnp.maximum(acc, 0.0))

        # ---- depthwise 3x3 from shifted slices (no im2col, stride via phases)
        dw = None
        for di in range(3):
            for dj in range(3):
                ph = (di % s) * s + (dj % s)
                a, b = di // s, dj // s
                tap = phases[ph][a:a + Ho, b:b + Wo, :]
                w_tap = jnp.reshape(wdw_ref[di * 3 + dj, :], (1, 1, cp_in))
                term = tap * w_tap
                dw = term if dw is None else dw + term

        # ---- pointwise 1x1 conv == lane-dense channel matmul on the MXU ----
        lhs = dw.reshape(Ho * Wo, cp_in).astype(jnp.bfloat16)
        rhs = wpw_ref[...].astype(jnp.bfloat16)
        y = jnp.dot(lhs, rhs, preferred_element_type=jnp.float32)
        y_ref[...] = y

        # ---- per-image partial BN statistics (single pass: sum, sum-of-sq) -
        stats_ref[0, 0:1, :] = jnp.sum(y, axis=0, keepdims=True)
        stats_ref[0, 1:2, :] = jnp.sum(y * y, axis=0, keepdims=True)
        stats_ref[0, 2:, :] = jnp.zeros((6, cp_out), jnp.float32)

    return kernel


def _make_bn_pad_kernel(Ho, Wo, cp_out):
    """Apply BN with full-batch stats and emit the activation with its
    1-pixel zero halo (the next node's conv padding) already in place."""
    def kernel(y_ref, mv_ref, out_ref):
        mean = mv_ref[0:1, :]
        inv = mv_ref[1:2, :]
        z = (y_ref[...] - mean) * inv
        out_ref[...] = jnp.zeros_like(out_ref)                 # zero halo
        out_ref[0, 1:Ho + 1, 1:Wo + 1, :] = z.reshape(Ho, Wo, cp_out)
    return kernel


# --------------------------------------------------------------------------
# pallas_call wrappers
# --------------------------------------------------------------------------
def node_conv(slabs, sw, wdw, wpw, *, stride, Ho, Wo):
    N, Hs, Ws, cp_in = slabs[0].shape
    cp_out = wpw.shape[1]
    ss = stride * stride
    D = len(slabs) // ss
    kernel = _make_node_kernel(D, ss, stride, Ho, Wo, cp_in, cp_out)

    slab_spec = pl.BlockSpec((1, Hs, Ws, cp_in), lambda n: (n, 0, 0, 0))
    in_specs = ([pl.BlockSpec(memory_space=pltpu.MemorySpace.SMEM)]
                + [slab_spec] * (D * ss)
                + [pl.BlockSpec((9, cp_in), lambda n: (0, 0)),
                   pl.BlockSpec((cp_in, cp_out), lambda n: (0, 0))])

    y, stats = pl.pallas_call(
        kernel,
        grid=(N,),
        out_shape=(jax.ShapeDtypeStruct((N * Ho * Wo, cp_out), jnp.float32),
                   jax.ShapeDtypeStruct((N, 8, cp_out), jnp.float32)),
        in_specs=in_specs,
        out_specs=(pl.BlockSpec((Ho * Wo, cp_out), lambda n: (n, 0)),
                   pl.BlockSpec((1, 8, cp_out), lambda n: (n, 0, 0))),
        compiler_params=pltpu.CompilerParams(
            dimension_semantics=("parallel",),
            vmem_limit_bytes=48 * 1024 * 1024,
        ),
    )(sw, *slabs, wdw, wpw)
    return y, stats


def bn_apply_pad(y, stats, *, N, Ho, Wo, cp_out):
    count = float(N * Ho * Wo)
    s1 = jnp.sum(stats[:, 0, :], axis=0)
    s2 = jnp.sum(stats[:, 1, :], axis=0)
    mean = s1 / count
    var = jnp.maximum(s2 / count - mean * mean, 0.0)   # E[y^2] - mean^2, >= 0
    inv = jax.lax.rsqrt(var + BN_EPS)
    mv = jnp.zeros((8, cp_out), jnp.float32).at[0].set(mean).at[1].set(inv)

    kernel = _make_bn_pad_kernel(Ho, Wo, cp_out)
    return pl.pallas_call(
        kernel,
        grid=(N,),
        out_shape=jax.ShapeDtypeStruct((N, Ho + 2, Wo + 2, cp_out),
                                       jnp.float32),
        in_specs=[pl.BlockSpec((Ho * Wo, cp_out), lambda n: (n, 0)),
                  pl.BlockSpec((8, cp_out), lambda n: (0, 0))],
        out_specs=pl.BlockSpec((1, Ho + 2, Wo + 2, cp_out),
                               lambda n: (n, 0, 0, 0)),
        compiler_params=pltpu.CompilerParams(
            dimension_semantics=("parallel",)),
    )(y, mv)


def node_forward(params, padded_inputs, *, stride, Ho, Wo):
    """padded_inputs: list of D arrays (N, Hin+2, Win+2, Cp) that already carry
    their zero halo and zero channel padding."""
    D = len(padded_inputs)
    if params["agg_w"] is not None:
        sw = jax.nn.sigmoid(params["agg_w"]).astype(jnp.float32)
    else:
        sw = jnp.ones((D,), jnp.float32)

    s = stride
    need_h = Ho + 2 // s
    need_w = Wo + 2 // s
    slabs = []
    for act in padded_inputs:
        if s == 1:
            slabs.append(act)                       # already exactly the slab
        else:
            # phase decomposition for strided conv; cheap XLA glue and only
            # ever runs on the tiny raw network input (node 0).
            for pph in range(s):
                for qph in range(s):
                    slabs.append(
                        act[:, pph::s, qph::s, :][:, :need_h, :need_w, :])

    y, stats = node_conv(slabs, sw, params["wdw"], params["wpw"],
                         stride=s, Ho=Ho, Wo=Wo)
    N = padded_inputs[0].shape[0]
    cp_out = params["wpw"].shape[1]
    return bn_apply_pad(y, stats, N=N, Ho=Ho, Wo=Wo, cp_out=cp_out)


# --------------------------------------------------------------------------
# RandWire module (parameters initialized deterministically in-script)
# --------------------------------------------------------------------------
def make_node_params(key, in_degree, cin, cout, cp_in, cp_out):
    k1, k2 = jax.random.split(key)
    # Xavier-uniform-style bounds (SeparableConv2d has no biases).
    b_dw = math.sqrt(6.0 / (9 + 9))
    wdw = jnp.zeros((9, cp_in), jnp.float32)
    wdw = wdw.at[:, :cin].set(
        jax.random.uniform(k1, (9, cin), jnp.float32, -b_dw, b_dw))
    b_pw = math.sqrt(6.0 / (cin + cout))
    wpw = jnp.zeros((cp_in, cp_out), jnp.float32)
    wpw = wpw.at[:cin, :cout].set(
        jax.random.uniform(k2, (cin, cout), jnp.float32, -b_pw, b_pw))
    agg_w = jnp.zeros((in_degree,), jnp.float32) if in_degree > 1 else None
    return {"wdw": wdw, "wpw": wpw, "agg_w": agg_w}


class RandWirePallas:
    def __init__(self, node_num, p, seed, in_channels, out_channels,
                 graph_mode="ER"):
        self.node_num = node_num
        self.in_channels = in_channels
        self.out_channels = out_channels
        graph = RandomGraph(node_num, p, seed, graph_mode=graph_mode)
        self.nodes, self.in_edges = graph.get_graph_info()

        self.cp_in = _pad_channels(in_channels)
        self.cp = _pad_channels(out_channels)

        key = jax.random.PRNGKey(1234)
        keys = jax.random.split(key, len(self.nodes))
        self.params = [make_node_params(keys[0], len(self.in_edges[0]),
                                        in_channels, out_channels,
                                        self.cp_in, self.cp)]
        for node in self.nodes:
            if node > 0:
                self.params.append(
                    make_node_params(keys[node], len(self.in_edges[node]),
                                     out_channels, out_channels,
                                     self.cp, self.cp))

    def __call__(self, x_nchw):
        # NCHW (PyTorch convention) -> NHWC internally
        x = jnp.transpose(x_nchw, (0, 2, 3, 1)).astype(jnp.float32)
        N, H, W, Cin = x.shape
        # raw input: add the conv halo and lane-pad the channels once
        xp = jnp.pad(x, ((0, 0), (1, 1), (1, 1), (0, self.cp_in - Cin)))
        Ho = (H + 2 - 3) // 2 + 1
        Wo = (W + 2 - 3) // 2 + 1
        # TODO(synk): for very large H*W also tile each image over output-row
        #             blocks (halo tiles via index_map) instead of per-image.

        memory = {}
        memory[0] = node_forward(self.params[0], [xp], stride=2, Ho=Ho, Wo=Wo)
        for node in range(1, len(self.nodes) - 1):
            ins = [memory[v] for v in self.in_edges[node]]
            memory[node] = node_forward(self.params[node], ins,
                                        stride=1, Ho=Ho, Wo=Wo)
        out_p = node_forward(self.params[self.node_num + 1],
                             [memory[v]
                              for v in self.in_edges[self.node_num + 1]],
                             stride=1, Ho=Ho, Wo=Wo)

        # drop halo + channel padding, back to NCHW
        out = out_p[:, 1:Ho + 1, 1:Wo + 1, :self.out_channels]
        return jnp.transpose(out, (0, 3, 1, 2))


# --------------------------------------------------------------------------
if __name__ == "__main__":
    node_num = 4
    p = 0.6
    seed = 0
    in_channels = 4
    out_channels = 8

    model = RandWirePallas(node_num, p, seed, in_channels, out_channels,
                           graph_mode="ER")
    forward = jax.jit(model.__call__)

    x = jax.random.normal(jax.random.PRNGKey(0), (2, in_channels, 16, 16),
                          dtype=jnp.float32)

    y = jax.block_until_ready(forward(x))

    assert y.shape == (2, out_channels, 8, 8), y.shape
    assert bool(jnp.all(jnp.isfinite(y)))
    print("KERNEL_OK")
</pallas_src>

<mosaic_0001>
module attributes {stable_mosaic.version = 11 : i64} {
  func.func @kernel(%arg0: i32, %arg1: memref<1xf32, #tpu.memory_space<smem>>, %arg2: memref<1x9x9x128xf32, #tpu.memory_space<vmem>>, %arg3: memref<1x9x9x128xf32, #tpu.memory_space<vmem>>, %arg4: memref<1x9x9x128xf32, #tpu.memory_space<vmem>>, %arg5: memref<1x9x9x128xf32, #tpu.memory_space<vmem>>, %arg6: memref<9x128xf32, #tpu.memory_space<vmem>>, %arg7: memref<128x128xf32, #tpu.memory_space<vmem>>, %arg8: memref<64x128xf32, #tpu.memory_space<vmem>>, %arg9: memref<1x8x128xf32, #tpu.memory_space<vmem>>) attributes {dimension_semantics = [#tpu.dimension_semantics<parallel>], iteration_bounds = array<i64: 2>, scalar_prefetch = 0 : i64, scratch_operands = 0 : i64, tpu.core_type = #tpu.core_type<tc>, window_params = [{transform_indices = @transform_0, window_bounds = array<i64: 1>}, {transform_indices = @transform_1, window_bounds = array<i64: 1, 9, 9, 128>}, {transform_indices = @transform_2, window_bounds = array<i64: 1, 9, 9, 128>}, {transform_indices = @transform_3, window_bounds = array<i64: 1, 9, 9, 128>}, {transform_indices = @transform_4, window_bounds = array<i64: 1, 9, 9, 128>}, {pipeline_mode = #tpu.pipeline_mode<synchronous>, transform_indices = @transform_5, window_bounds = array<i64: 9, 128>}, {pipeline_mode = #tpu.pipeline_mode<synchronous>, transform_indices = @transform_6, window_bounds = array<i64: 128, 128>}, {transform_indices = @transform_7, window_bounds = array<i64: 64, 128>}, {transform_indices = @transform_8, window_bounds = array<i64: 1, 8, 128>}]} {
    %c0 = arith.constant 0 : index
    %c0_0 = arith.constant 0 : index
    %c0_1 = arith.constant 0 : index
    %c0_2 = arith.constant 0 : index
    %0 = vector.load %arg2[%c0, %c0_0, %c0_1, %c0_2] : memref<1x9x9x128xf32, #tpu.memory_space<vmem>>, vector<1x9x9x128xf32>
    %1 = vector.shape_cast %0 : vector<1x9x9x128xf32> to vector<9x9x128xf32>
    %c0_3 = arith.constant 0 : index
    %2 = memref.load %arg1[%c0_3] : memref<1xf32, #tpu.memory_space<smem>>
    %3 = vector.broadcast %2 : f32 to vector<9x9x128xf32>
    %4 = arith.mulf %1, %3 : vector<9x9x128xf32>
    %cst = arith.constant 0.000000e+00 : f32
    %5 = vector.broadcast %cst : f32 to vector<9x9x128xf32>
    %6 = arith.maximumf %4, %5 : vector<9x9x128xf32>
    %c0_4 = arith.constant 0 : index
    %c0_5 = arith.constant 0 : index
    %c0_6 = arith.constant 0 : index
    %c0_7 = arith.constant 0 : index
    %7 = vector.load %arg3[%c0_4, %c0_5, %c0_6, %c0_7] : memref<1x9x9x128xf32, #tpu.memory_space<vmem>>, vector<1x9x9x128xf32>
    %8 = vector.shape_cast %7 : vector<1x9x9x128xf32> to vector<9x9x128xf32>
    %c0_8 = arith.constant 0 : index
    %9 = memref.load %arg1[%c0_8] : memref<1xf32, #tpu.memory_space<smem>>
    %10 = vector.broadcast %9 : f32 to vector<9x9x128xf32>
    %11 = arith.mulf %8, %10 : vector<9x9x128xf32>
    %cst_9 = arith.constant 0.000000e+00 : f32
    %12 = vector.broadcast %cst_9 : f32 to vector<9x9x128xf32>
    %13 = arith.maximumf %11, %12 : vector<9x9x128xf32>
    %c0_10 = arith.constant 0 : index
    %c0_11 = arith.constant 0 : index
    %c0_12 = arith.constant 0 : index
    %c0_13 = arith.constant 0 : index
    %14 = vector.load %arg4[%c0_10, %c0_11, %c0_12, %c0_13] : memref<1x9x9x128xf32, #tpu.memory_space<vmem>>, vector<1x9x9x128xf32>
    %15 = vector.shape_cast %14 : vector<1x9x9x128xf32> to vector<9x9x128xf32>
    %c0_14 = arith.constant 0 : index
    %16 = memref.load %arg1[%c0_14] : memref<1xf32, #tpu.memory_space<smem>>
    %17 = vector.broadcast %16 : f32 to vector<9x9x128xf32>
    %18 = arith.mulf %15, %17 : vector<9x9x128xf32>
    %cst_15 = arith.constant 0.000000e+00 : f32
    %19 = vector.broadcast %cst_15 : f32 to vector<9x9x128xf32>
    %20 = arith.maximumf %18, %19 : vector<9x9x128xf32>
    %c0_16 = arith.constant 0 : index
    %c0_17 = arith.constant 0 : index
    %c0_18 = arith.constant 0 : index
    %c0_19 = arith.constant 0 : index
    %21 = vector.load %arg5[%c0_16, %c0_17, %c0_18, %c0_19] : memref<1x9x9x128xf32, #tpu.memory_space<vmem>>, vector<1x9x9x128xf32>
    %22 = vector.shape_cast %21 : vector<1x9x9x128xf32> to vector<9x9x128xf32>
    %c0_20 = arith.constant 0 : index
    %23 = memref.load %arg1[%c0_20] : memref<1xf32, #tpu.memory_space<smem>>
    %24 = vector.broadcast %23 : f32 to vector<9x9x128xf32>
    %25 = arith.mulf %22, %24 : vector<9x9x128xf32>
    %cst_21 = arith.constant 0.000000e+00 : f32
    %26 = vector.broadcast %cst_21 : f32 to vector<9x9x128xf32>
    %27 = arith.maximumf %25, %26 : vector<9x9x128xf32>
    %28 = vector.extract_strided_slice %6 {offsets = [0, 0, 0], sizes = [8, 8, 128], strides = [1, 1, 1]} : vector<9x9x128xf32> to vector<8x8x128xf32>
    %c0_22 = arith.constant 0 : index
    %c0_23 = arith.constant 0 : index
    %29 = vector.load %arg6[%c0_22, %c0_23] : memref<9x128xf32, #tpu.memory_space<vmem>>, vector<1x128xf32>
    %30 = vector.shape_cast %29 : vector<1x128xf32> to vector<128xf32>
    %31 = vector.shape_cast %30 : vector<128xf32> to vector<1x1x128xf32>
    %32 = vector.broadcast %31 : vector<1x1x128xf32> to vector<8x8x128xf32>
    %33 = arith.mulf %28, %32 : vector<8x8x128xf32>
    %34 = vector.extract_strided_slice %13 {offsets = [0, 0, 0], sizes = [8, 8, 128], strides = [1, 1, 1]} : vector<9x9x128xf32> to vector<8x8x128xf32>
    %c1 = arith.constant 1 : index
    %c0_24 = arith.constant 0 : index
    %35 = vector.load %arg6[%c1, %c0_24] : memref<9x128xf32, #tpu.memory_space<vmem>>, vector<1x128xf32>
    %36 = vector.shape_cast %35 : vector<1x128xf32> to vector<128xf32>
    %37 = vector.shape_cast %36 : vector<128xf32> to vector<1x1x128xf32>
    %38 = vector.broadcast %37 : vector<1x1x128xf32> to vector<8x8x128xf32>
    %39 = arith.mulf %34, %38 : vector<8x8x128xf32>
    %40 = arith.addf %33, %39 : vector<8x8x128xf32>
    %41 = vector.extract_strided_slice %6 {offsets = [0, 1, 0], sizes = [8, 8, 128], strides = [1, 1, 1]} : vector<9x9x128xf32> to vector<8x8x128xf32>
    %c2 = arith.constant 2 : index
    %c0_25 = arith.constant 0 : index
    %42 = vector.load %arg6[%c2, %c0_25] : memref<9x128xf32, #tpu.memory_space<vmem>>, vector<1x128xf32>
    %43 = vector.shape_cast %42 : vector<1x128xf32> to vector<128xf32>
    %44 = vector.shape_cast %43 : vector<128xf32> to vector<1x1x128xf32>
    %45 = vector.broadcast %44 : vector<1x1x128xf32> to vector<8x8x128xf32>
    %46 = arith.mulf %41, %45 : vector<8x8x128xf32>
    %47 = arith.addf %40, %46 : vector<8x8x128xf32>
    %48 = vector.extract_strided_slice %20 {offsets = [0, 0, 0], sizes = [8, 8, 128], strides = [1, 1, 1]} : vector<9x9x128xf32> to vector<8x8x128xf32>
    %c3 = arith.constant 3 : index
    %c0_26 = arith.constant 0 : index
    %49 = vector.load %arg6[%c3, %c0_26] : memref<9x128xf32, #tpu.memory_space<vmem>>, vector<1x128xf32>
    %50 = vector.shape_cast %49 : vector<1x128xf32> to vector<128xf32>
    %51 = vector.shape_cast %50 : vector<128xf32> to vector<1x1x128xf32>
    %52 = vector.broadcast %51 : vector<1x1x128xf32> to vector<8x8x128xf32>
    %53 = arith.mulf %48, %52 : vector<8x8x128xf32>
    %54 = arith.addf %47, %53 : vector<8x8x128xf32>
    %55 = vector.extract_strided_slice %27 {offsets = [0, 0, 0], sizes = [8, 8, 128], strides = [1, 1, 1]} : vector<9x9x128xf32> to vector<8x8x128xf32>
    %c4 = arith.constant 4 : index
    %c0_27 = arith.constant 0 : index
    %56 = vector.load %arg6[%c4, %c0_27] : memref<9x128xf32, #tpu.memory_space<vmem>>, vector<1x128xf32>
    %57 = vector.shape_cast %56 : vector<1x128xf32> to vector<128xf32>
    %58 = vector.shape_cast %57 : vector<128xf32> to vector<1x1x128xf32>
    %59 = vector.broadcast %58 : vector<1x1x128xf32> to vector<8x8x128xf32>
    %60 = arith.mulf %55, %59 : vector<8x8x128xf32>
    %61 = arith.addf %54, %60 : vector<8x8x128xf32>
    %62 = vector.extract_strided_slice %20 {offsets = [0, 1, 0], sizes = [8, 8, 128], strides = [1, 1, 1]} : vector<9x9x128xf32> to vector<8x8x128xf32>
    %c5 = arith.constant 5 : index
    %c0_28 = arith.constant 0 : index
    %63 = vector.load %arg6[%c5, %c0_28] : memref<9x128xf32, #tpu.memory_space<vmem>>, vector<1x128xf32>
    %64 = vector.shape_cast %63 : vector<1x128xf32> to vector<128xf32>
    %65 = vector.shape_cast %64 : vector<128xf32> to vector<1x1x128xf32>
    %66 = vector.broadcast %65 : vector<1x1x128xf32> to vector<8x8x128xf32>
    %67 = arith.mulf %62, %66 : vector<8x8x128xf32>
    %68 = arith.addf %61, %67 : vector<8x8x128xf32>
    %69 = vector.extract_strided_slice %6 {offsets = [1, 0, 0], sizes = [8, 8, 128], strides = [1, 1, 1]} : vector<9x9x128xf32> to vector<8x8x128xf32>
    %c6 = arith.constant 6 : index
    %c0_29 = arith.constant 0 : index
    %70 = vector.load %arg6[%c6, %c0_29] : memref<9x128xf32, #tpu.memory_space<vmem>>, vector<1x128xf32>
    %71 = vector.shape_cast %70 : vector<1x128xf32> to vector<128xf32>
    %72 = vector.shape_cast %71 : vector<128xf32> to vector<1x1x128xf32>
    %73 = vector.broadcast %72 : vector<1x1x128xf32> to vector<8x8x128xf32>
    %74 = arith.mulf %69, %73 : vector<8x8x128xf32>
    %75 = arith.addf %68, %74 : vector<8x8x128xf32>
    %76 = vector.extract_strided_slice %13 {offsets = [1, 0, 0], sizes = [8, 8, 128], strides = [1, 1, 1]} : vector<9x9x128xf32> to vector<8x8x128xf32>
    %c7 = arith.constant 7 : index
    %c0_30 = arith.constant 0 : index
    %77 = vector.load %arg6[%c7, %c0_30] : memref<9x128xf32, #tpu.memory_space<vmem>>, vector<1x128xf32>
    %78 = vector.shape_cast %77 : vector<1x128xf32> to vector<128xf32>
    %79 = vector.shape_cast %78 : vector<128xf32> to vector<1x1x128xf32>
    %80 = vector.broadcast %79 : vector<1x1x128xf32> to vector<8x8x128xf32>
    %81 = arith.mulf %76, %80 : vector<8x8x128xf32>
    %82 = arith.addf %75, %81 : vector<8x8x128xf32>
    %83 = vector.extract_strided_slice %6 {offsets = [1, 1, 0], sizes = [8, 8, 128], strides = [1, 1, 1]} : vector<9x9x128xf32> to vector<8x8x128xf32>
    %c8 = arith.constant 8 : index
    %c0_31 = arith.constant 0 : index
    %84 = vector.load %arg6[%c8, %c0_31] : memref<9x128xf32, #tpu.memory_space<vmem>>, vector<1x128xf32>
    %85 = vector.shape_cast %84 : vector<1x128xf32> to vector<128xf32>
    %86 = vector.shape_cast %85 : vector<128xf32> to vector<1x1x128xf32>
    %87 = vector.broadcast %86 : vector<1x1x128xf32> to vector<8x8x128xf32>
    %88 = arith.mulf %83, %87 : vector<8x8x128xf32>
    %89 = arith.addf %82, %88 : vector<8x8x128xf32>
    %90 = vector.shape_cast %89 : vector<8x8x128xf32> to vector<64x128xf32>
    %91 = arith.truncf %90 : vector<64x128xf32> to vector<64x128xbf16>
    %c0_32 = arith.constant 0 : index
    %c0_33 = arith.constant 0 : index
    %92 = vector.load %arg7[%c0_32, %c0_33] : memref<128x128xf32, #tpu.memory_space<vmem>>, vector<128x128xf32>
    %93 = arith.truncf %92 : vector<128x128xf32> to vector<128x128xbf16>
    %cst_34 = arith.constant dense<0.000000e+00> : vector<64x128xf32>
    %94 = tpu.matmul %91, %93, %cst_34 {dimension_numbers = #tpu.dot_dimension_numbers<[1], [0], [0], [1], [0, 0, 1, 1], [], []>} : vector<64x128xbf16>, vector<128x128xbf16>, vector<64x128xf32> -> vector<64x128xf32>
    %c0_35 = arith.constant 0 : index
    %c0_36 = arith.constant 0 : index
    %95 = vector.load %arg8[%c0_35, %c0_36] : memref<64x128xf32, #tpu.memory_space<vmem>>, vector<64x128xf32>
    tpu.vector_store %arg8[%c0_35, %c0_36], %94 {strides = array<i32>} : memref<64x128xf32, #tpu.memory_space<vmem>>, vector<64x128xf32>,
    %cst_37 = arith.constant dense<0.000000e+00> : vector<128xf32>
    %96 = vector.multi_reduction <add>, %94, %cst_37 [0] : vector<64x128xf32> to vector<128xf32>
    %97 = vector.shape_cast %96 : vector<128xf32> to vector<1x128xf32>
    %c0_38 = arith.constant 0 : index
    %c0_39 = arith.constant 0 : index
    %c0_40 = arith.constant 0 : index
    %98 = vector.load %arg9[%c0_38, %c0_39, %c0_40] : memref<1x8x128xf32, #tpu.memory_space<vmem>>, vector<1x1x128xf32>
    %99 = vector.shape_cast %98 : vector<1x1x128xf32> to vector<1x128xf32>
    %100 = vector.shape_cast %97 : vector<1x128xf32> to vector<1x1x128xf32>
    tpu.vector_store %arg9[%c0_38, %c0_39, %c0_40], %100 {strides = array<i32>} : memref<1x8x128xf32, #tpu.memory_space<vmem>>, vector<1x1x128xf32>,
    %101 = arith.mulf %94, %94 : vector<64x128xf32>
    %cst_41 = arith.constant dense<0.000000e+00> : vector<128xf32>
    %102 = vector.multi_reduction <add>, %101, %cst_41 [0] : vector<64x128xf32> to vector<128xf32>
    %103 = vector.shape_cast %102 : vector<128xf32> to vector<1x128xf32>
    %c0_42 = arith.constant 0 : index
    %c1_43 = arith.constant 1 : index
    %c0_44 = arith.constant 0 : index
    %104 = vector.load %arg9[%c0_42, %c1_43, %c0_44] : memref<1x8x128xf32, #tpu.memory_space<vmem>>, vector<1x1x128xf32>
    %105 = vector.shape_cast %104 : vector<1x1x128xf32> to vector<1x128xf32>
    %106 = vector.shape_cast %103 : vector<1x128xf32> to vector<1x1x128xf32>
    tpu.vector_store %arg9[%c0_42, %c1_43, %c0_44], %106 {strides = array<i32>} : memref<1x8x128xf32, #tpu.memory_space<vmem>>, vector<1x1x128xf32>,
    %cst_45 = arith.constant 0.000000e+00 : f32
    %107 = vector.broadcast %cst_45 : f32 to vector<6x128xf32>
    %c0_46 = arith.constant 0 : index
    %c2_47 = arith.constant 2 : index
    %c0_48 = arith.constant 0 : index
    %108 = vector.load %arg9[%c0_46, %c2_47, %c0_48] : memref<1x8x128xf32, #tpu.memory_space<vmem>>, vector<1x6x128xf32>
    %109 = vector.shape_cast %108 : vector<1x6x128xf32> to vector<6x128xf32>
    %110 = vector.shape_cast %107 : vector<6x128xf32> to vector<1x6x128xf32>
    tpu.vector_store %arg9[%c0_46, %c2_47, %c0_48], %110 {strides = array<i32>} : memref<1x8x128xf32, #tpu.memory_space<vmem>>, vector<1x6x128xf32>,
    return
  }
  func.func @transform_0(%arg0: i32) -> i32 {
    %c0_i32 = arith.constant 0 : i32
    %c0_i32_0 = arith.constant 0 : i32
    return %c0_i32 : i32
  }
  func.func @transform_1(%arg0: i32) -> (i32, i32, i32, i32) {
    %c0_i32 = arith.constant 0 : i32
    %c0_i32_0 = arith.constant 0 : i32
    %c0_i32_1 = arith.constant 0 : i32
    %c0_i32_2 = arith.constant 0 : i32
    return %arg0, %c0_i32, %c0_i32_0, %c0_i32_1 : i32, i32, i32, i32
  }
  func.func @transform_2(%arg0: i32) -> (i32, i32, i32, i32) {
    %c0_i32 = arith.constant 0 : i32
    %c0_i32_0 = arith.constant 0 : i32
    %c0_i32_1 = arith.constant 0 : i32
    %c0_i32_2 = arith.constant 0 : i32
    return %arg0, %c0_i32, %c0_i32_0, %c0_i32_1 : i32, i32, i32, i32
  }
  func.func @transform_3(%arg0: i32) -> (i32, i32, i32, i32) {
    %c0_i32 = arith.constant 0 : i32
    %c0_i32_0 = arith.constant 0 : i32
    %c0_i32_1 = arith.constant 0 : i32
    %c0_i32_2 = arith.constant 0 : i32
    return %arg0, %c0_i32, %c0_i32_0, %c0_i32_1 : i32, i32, i32, i32
  }
  func.func @transform_4(%arg0: i32) -> (i32, i32, i32, i32) {
    %c0_i32 = arith.constant 0 : i32
    %c0_i32_0 = arith.constant 0 : i32
    %c0_i32_1 = arith.constant 0 : i32
    %c0_i32_2 = arith.constant 0 : i32
    return %arg0, %c0_i32, %c0_i32_0, %c0_i32_1 : i32, i32, i32, i32
  }
  func.func @transform_5(%arg0: i32) -> (i32, i32) {
    %c0_i32 = arith.constant 0 : i32
    %c0_i32_0 = arith.constant 0 : i32
    %c0_i32_1 = arith.constant 0 : i32
    return %c0_i32, %c0_i32_0 : i32, i32
  }
  func.func @transform_6(%arg0: i32) -> (i32, i32) {
    %c0_i32 = arith.constant 0 : i32
    %c0_i32_0 = arith.constant 0 : i32
    %c0_i32_1 = arith.constant 0 : i32
    return %c0_i32, %c0_i32_0 : i32, i32
  }
  func.func @transform_7(%arg0: i32) -> (i32, i32) {
    %c0_i32 = arith.constant 0 : i32
    %c0_i32_0 = arith.constant 0 : i32
    return %arg0, %c0_i32 : i32, i32
  }
  func.func @transform_8(%arg0: i32) -> (i32, i32, i32) {
    %c0_i32 = arith.constant 0 : i32
    %c0_i32_0 = arith.constant 0 : i32
    %c0_i32_1 = arith.constant 0 : i32
    return %arg0, %c0_i32, %c0_i32_0 : i32, i32, i32
  }
}

module attributes {stable_mosaic.version = 11 : i64} {
  func.func @kernel(%arg0: i32, %arg1: memref<64x128xf32, #tpu.memory_space<vmem>>, %arg2: memref<8x128xf32, #tpu.memory_space<vmem>>, %arg3: memref<1x10x10x128xf32, #tpu.memory_space<vmem>>) attributes {dimension_semantics = [#tpu.dimension_semantics<parallel>], iteration_bounds = array<i64: 2>, scalar_prefetch = 0 : i64, scratch_operands = 0 : i64, tpu.core_type = #tpu.core_type<tc>, window_params = [{transform_indices = @transform_0, window_bounds = array<i64: 64, 128>}, {pipeline_mode = #tpu.pipeline_mode<synchronous>, transform_indices = @transform_1, window_bounds = array<i64: 8, 128>}, {transform_indices = @transform_2, window_bounds = array<i64: 1, 10, 10, 128>}]} {
    %c0 = arith.constant 0 : index
    %c0_0 = arith.constant 0 : index
    %0 = vector.load %arg2[%c0, %c0_0] : memref<8x128xf32, #tpu.memory_space<vmem>>, vector<1x128xf32>
    %c1 = arith.constant 1 : index
    %c0_1 = arith.constant 0 : index
    %1 = vector.load %arg2[%c1, %c0_1] : memref<8x128xf32, #tpu.memory_space<vmem>>, vector<1x128xf32>
    %c0_2 = arith.constant 0 : index
    %c0_3 = arith.constant 0 : index
    %2 = vector.load %arg1[%c0_2, %c0_3] : memref<64x128xf32, #tpu.memory_space<vmem>>, vector<64x128xf32>
    %3 = vector.broadcast %0 : vector<1x128xf32> to vector<64x128xf32>
    %4 = arith.subf %2, %3 : vector<64x128xf32>
    %5 = vector.broadcast %1 : vector<1x128xf32> to vector<64x128xf32>
    %6 = arith.mulf %4, %5 : vector<64x128xf32>
    %cst = arith.constant 0.000000e+00 : f32
    %7 = vector.broadcast %cst : f32 to vector<1x10x10x128xf32>
    %c0_4 = arith.constant 0 : index
    %c0_5 = arith.constant 0 : index
    %c0_6 = arith.constant 0 : index
    %c0_7 = arith.constant 0 : index
    %8 = vector.load %arg3[%c0_4, %c0_5, %c0_6, %c0_7] : memref<1x10x10x128xf32, #tpu.memory_space<vmem>>, vector<1x10x10x128xf32>
    tpu.vector_store %arg3[%c0_4, %c0_5, %c0_6, %c0_7], %7 {strides = array<i32>} : memref<1x10x10x128xf32, #tpu.memory_space<vmem>>, vector<1x10x10x128xf32>,
    %9 = vector.shape_cast %6 : vector<64x128xf32> to vector<8x8x128xf32>
    %c0_8 = arith.constant 0 : index
    %c1_9 = arith.constant 1 : index
    %c1_10 = arith.constant 1 : index
    %c0_11 = arith.constant 0 : index
    %10 = vector.load %arg3[%c0_8, %c1_9, %c1_10, %c0_11] : memref<1x10x10x128xf32, #tpu.memory_space<vmem>>, vector<1x8x8x128xf32>
    %11 = vector.shape_cast %10 : vector<1x8x8x128xf32> to vector<8x8x128xf32>
    %12 = vector.shape_cast %9 : vector<8x8x128xf32> to vector<1x8x8x128xf32>
    tpu.vector_store %arg3[%c0_8, %c1_9, %c1_10, %c0_11], %12 {strides = array<i32>} : memref<1x10x10x128xf32, #tpu.memory_space<vmem>>, vector<1x8x8x128xf32>,
    return
  }
  func.func @transform_0(%arg0: i32) -> (i32, i32) {
    %c0_i32 = arith.constant 0 : i32
    %c0_i32_0 = arith.constant 0 : i32
    return %arg0, %c0_i32 : i32, i32
  }
  func.func @transform_1(%arg0: i32) -> (i32, i32) {
    %c0_i32 = arith.constant 0 : i32
    %c0_i32_0 = arith.constant 0 : i32
    %c0_i32_1 = arith.constant 0 : i32
    return %c0_i32, %c0_i32_0 : i32, i32
  }
  func.func @transform_2(%arg0: i32) -> (i32, i32, i32, i32) {
    %c0_i32 = arith.constant 0 : i32
    %c0_i32_0 = arith.constant 0 : i32
    %c0_i32_1 = arith.constant 0 : i32
    %c0_i32_2 = arith.constant 0 : i32
    return %arg0, %c0_i32, %c0_i32_0, %c0_i32_1 : i32, i32, i32, i32
  }
}

module attributes {stable_mosaic.version = 11 : i64} {
  func.func @kernel(%arg0: i32, %arg1: memref<1xf32, #tpu.memory_space<smem>>, %arg2: memref<1x10x10x128xf32, #tpu.memory_space<vmem>>, %arg3: memref<9x128xf32, #tpu.memory_space<vmem>>, %arg4: memref<128x128xf32, #tpu.memory_space<vmem>>, %arg5: memref<64x128xf32, #tpu.memory_space<vmem>>, %arg6: memref<1x8x128xf32, #tpu.memory_space<vmem>>) attributes {dimension_semantics = [#tpu.dimension_semantics<parallel>], iteration_bounds = array<i64: 2>, scalar_prefetch = 0 : i64, scratch_operands = 0 : i64, tpu.core_type = #tpu.core_type<tc>, window_params = [{transform_indices = @transform_0, window_bounds = array<i64: 1>}, {transform_indices = @transform_1, window_bounds = array<i64: 1, 10, 10, 128>}, {pipeline_mode = #tpu.pipeline_mode<synchronous>, transform_indices = @transform_2, window_bounds = array<i64: 9, 128>}, {pipeline_mode = #tpu.pipeline_mode<synchronous>, transform_indices = @transform_3, window_bounds = array<i64: 128, 128>}, {transform_indices = @transform_4, window_bounds = array<i64: 64, 128>}, {transform_indices = @transform_5, window_bounds = array<i64: 1, 8, 128>}]} {
    %c0 = arith.constant 0 : index
    %c0_0 = arith.constant 0 : index
    %c0_1 = arith.constant 0 : index
    %c0_2 = arith.constant 0 : index
    %0 = vector.load %arg2[%c0, %c0_0, %c0_1, %c0_2] : memref<1x10x10x128xf32, #tpu.memory_space<vmem>>, vector<1x10x10x128xf32>
    %1 = vector.shape_cast %0 : vector<1x10x10x128xf32> to vector<10x10x128xf32>
    %c0_3 = arith.constant 0 : index
    %2 = memref.load %arg1[%c0_3] : memref<1xf32, #tpu.memory_space<smem>>
    %3 = vector.broadcast %2 : f32 to vector<10x10x128xf32>
    %4 = arith.mulf %1, %3 : vector<10x10x128xf32>
    %cst = arith.constant 0.000000e+00 : f32
    %5 = vector.broadcast %cst : f32 to vector<10x10x128xf32>
    %6 = arith.maximumf %4, %5 : vector<10x10x128xf32>
    %7 = vector.extract_strided_slice %6 {offsets = [0, 0, 0], sizes = [8, 8, 128], strides = [1, 1, 1]} : vector<10x10x128xf32> to vector<8x8x128xf32>
    %c0_4 = arith.constant 0 : index
    %c0_5 = arith.constant 0 : index
    %8 = vector.load %arg3[%c0_4, %c0_5] : memref<9x128xf32, #tpu.memory_space<vmem>>, vector<1x128xf32>
    %9 = vector.shape_cast %8 : vector<1x128xf32> to vector<128xf32>
    %10 = vector.shape_cast %9 : vector<128xf32> to vector<1x1x128xf32>
    %11 = vector.broadcast %10 : vector<1x1x128xf32> to vector<8x8x128xf32>
    %12 = arith.mulf %7, %11 : vector<8x8x128xf32>
    %13 = vector.extract_strided_slice %6 {offsets = [0, 1, 0], sizes = [8, 8, 128], strides = [1, 1, 1]} : vector<10x10x128xf32> to vector<8x8x128xf32>
    %c1 = arith.constant 1 : index
    %c0_6 = arith.constant 0 : index
    %14 = vector.load %arg3[%c1, %c0_6] : memref<9x128xf32, #tpu.memory_space<vmem>>, vector<1x128xf32>
    %15 = vector.shape_cast %14 : vector<1x128xf32> to vector<128xf32>
    %16 = vector.shape_cast %15 : vector<128xf32> to vector<1x1x128xf32>
    %17 = vector.broadcast %16 : vector<1x1x128xf32> to vector<8x8x128xf32>
    %18 = arith.mulf %13, %17 : vector<8x8x128xf32>
    %19 = arith.addf %12, %18 : vector<8x8x128xf32>
    %20 = vector.extract_strided_slice %6 {offsets = [0, 2, 0], sizes = [8, 8, 128], strides = [1, 1, 1]} : vector<10x10x128xf32> to vector<8x8x128xf32>
    %c2 = arith.constant 2 : index
    %c0_7 = arith.constant 0 : index
    %21 = vector.load %arg3[%c2, %c0_7] : memref<9x128xf32, #tpu.memory_space<vmem>>, vector<1x128xf32>
    %22 = vector.shape_cast %21 : vector<1x128xf32> to vector<128xf32>
    %23 = vector.shape_cast %22 : vector<128xf32> to vector<1x1x128xf32>
    %24 = vector.broadcast %23 : vector<1x1x128xf32> to vector<8x8x128xf32>
    %25 = arith.mulf %20, %24 : vector<8x8x128xf32>
    %26 = arith.addf %19, %25 : vector<8x8x128xf32>
    %27 = vector.extract_strided_slice %6 {offsets = [1, 0, 0], sizes = [8, 8, 128], strides = [1, 1, 1]} : vector<10x10x128xf32> to vector<8x8x128xf32>
    %c3 = arith.constant 3 : index
    %c0_8 = arith.constant 0 : index
    %28 = vector.load %arg3[%c3, %c0_8] : memref<9x128xf32, #tpu.memory_space<vmem>>, vector<1x128xf32>
    %29 = vector.shape_cast %28 : vector<1x128xf32> to vector<128xf32>
    %30 = vector.shape_cast %29 : vector<128xf32> to vector<1x1x128xf32>
    %31 = vector.broadcast %30 : vector<1x1x128xf32> to vector<8x8x128xf32>
    %32 = arith.mulf %27, %31 : vector<8x8x128xf32>
    %33 = arith.addf %26, %32 : vector<8x8x128xf32>
    %34 = vector.extract_strided_slice %6 {offsets = [1, 1, 0], sizes = [8, 8, 128], strides = [1, 1, 1]} : vector<10x10x128xf32> to vector<8x8x128xf32>
    %c4 = arith.constant 4 : index
    %c0_9 = arith.constant 0 : index
    %35 = vector.load %arg3[%c4, %c0_9] : memref<9x128xf32, #tpu.memory_space<vmem>>, vector<1x128xf32>
    %36 = vector.shape_cast %35 : vector<1x128xf32> to vector<128xf32>
    %37 = vector.shape_cast %36 : vector<128xf32> to vector<1x1x128xf32>
    %38 = vector.broadcast %37 : vector<1x1x128xf32> to vector<8x8x128xf32>
    %39 = arith.mulf %34, %38 : vector<8x8x128xf32>
    %40 = arith.addf %33, %39 : vector<8x8x128xf32>
    %41 = vector.extract_strided_slice %6 {offsets = [1, 2, 0], sizes = [8, 8, 128], strides = [1, 1, 1]} : vector<10x10x128xf32> to vector<8x8x128xf32>
    %c5 = arith.constant 5 : index
    %c0_10 = arith.constant 0 : index
    %42 = vector.load %arg3[%c5, %c0_10] : memref<9x128xf32, #tpu.memory_space<vmem>>, vector<1x128xf32>
    %43 = vector.shape_cast %42 : vector<1x128xf32> to vector<128xf32>
    %44 = vector.shape_cast %43 : vector<128xf32> to vector<1x1x128xf32>
    %45 = vector.broadcast %44 : vector<1x1x128xf32> to vector<8x8x128xf32>
    %46 = arith.mulf %41, %45 : vector<8x8x128xf32>
    %47 = arith.addf %40, %46 : vector<8x8x128xf32>
    %48 = vector.extract_strided_slice %6 {offsets = [2, 0, 0], sizes = [8, 8, 128], strides = [1, 1, 1]} : vector<10x10x128xf32> to vector<8x8x128xf32>
    %c6 = arith.constant 6 : index
    %c0_11 = arith.constant 0 : index
    %49 = vector.load %arg3[%c6, %c0_11] : memref<9x128xf32, #tpu.memory_space<vmem>>, vector<1x128xf32>
    %50 = vector.shape_cast %49 : vector<1x128xf32> to vector<128xf32>
    %51 = vector.shape_cast %50 : vector<128xf32> to vector<1x1x128xf32>
    %52 = vector.broadcast %51 : vector<1x1x128xf32> to vector<8x8x128xf32>
    %53 = arith.mulf %48, %52 : vector<8x8x128xf32>
    %54 = arith.addf %47, %53 : vector<8x8x128xf32>
    %55 = vector.extract_strided_slice %6 {offsets = [2, 1, 0], sizes = [8, 8, 128], strides = [1, 1, 1]} : vector<10x10x128xf32> to vector<8x8x128xf32>
    %c7 = arith.constant 7 : index
    %c0_12 = arith.constant 0 : index
    %56 = vector.load %arg3[%c7, %c0_12] : memref<9x128xf32, #tpu.memory_space<vmem>>, vector<1x128xf32>
    %57 = vector.shape_cast %56 : vector<1x128xf32> to vector<128xf32>
    %58 = vector.shape_cast %57 : vector<128xf32> to vector<1x1x128xf32>
    %59 = vector.broadcast %58 : vector<1x1x128xf32> to vector<8x8x128xf32>
    %60 = arith.mulf %55, %59 : vector<8x8x128xf32>
    %61 = arith.addf %54, %60 : vector<8x8x128xf32>
    %62 = vector.extract_strided_slice %6 {offsets = [2, 2, 0], sizes = [8, 8, 128], strides = [1, 1, 1]} : vector<10x10x128xf32> to vector<8x8x128xf32>
    %c8 = arith.constant 8 : index
    %c0_13 = arith.constant 0 : index
    %63 = vector.load %arg3[%c8, %c0_13] : memref<9x128xf32, #tpu.memory_space<vmem>>, vector<1x128xf32>
    %64 = vector.shape_cast %63 : vector<1x128xf32> to vector<128xf32>
    %65 = vector.shape_cast %64 : vector<128xf32> to vector<1x1x128xf32>
    %66 = vector.broadcast %65 : vector<1x1x128xf32> to vector<8x8x128xf32>
    %67 = arith.mulf %62, %66 : vector<8x8x128xf32>
    %68 = arith.addf %61, %67 : vector<8x8x128xf32>
    %69 = vector.shape_cast %68 : vector<8x8x128xf32> to vector<64x128xf32>
    %70 = arith.truncf %69 : vector<64x128xf32> to vector<64x128xbf16>
    %c0_14 = arith.constant 0 : index
    %c0_15 = arith.constant 0 : index
    %71 = vector.load %arg4[%c0_14, %c0_15] : memref<128x128xf32, #tpu.memory_space<vmem>>, vector<128x128xf32>
    %72 = arith.truncf %71 : vector<128x128xf32> to vector<128x128xbf16>
    %cst_16 = arith.constant dense<0.000000e+00> : vector<64x128xf32>
    %73 = tpu.matmul %70, %72, %cst_16 {dimension_numbers = #tpu.dot_dimension_numbers<[1], [0], [0], [1], [0, 0, 1, 1], [], []>} : vector<64x128xbf16>, vector<128x128xbf16>, vector<64x128xf32> -> vector<64x128xf32>
    %c0_17 = arith.constant 0 : index
    %c0_18 = arith.constant 0 : index
    %74 = vector.load %arg5[%c0_17, %c0_18] : memref<64x128xf32, #tpu.memory_space<vmem>>, vector<64x128xf32>
    tpu.vector_store %arg5[%c0_17, %c0_18], %73 {strides = array<i32>} : memref<64x128xf32, #tpu.memory_space<vmem>>, vector<64x128xf32>,
    %cst_19 = arith.constant dense<0.000000e+00> : vector<128xf32>
    %75 = vector.multi_reduction <add>, %73, %cst_19 [0] : vector<64x128xf32> to vector<128xf32>
    %76 = vector.shape_cast %75 : vector<128xf32> to vector<1x128xf32>
    %c0_20 = arith.constant 0 : index
    %c0_21 = arith.constant 0 : index
    %c0_22 = arith.constant 0 : index
    %77 = vector.load %arg6[%c0_20, %c0_21, %c0_22] : memref<1x8x128xf32, #tpu.memory_space<vmem>>, vector<1x1x128xf32>
    %78 = vector.shape_cast %77 : vector<1x1x128xf32> to vector<1x128xf32>
    %79 = vector.shape_cast %76 : vector<1x128xf32> to vector<1x1x128xf32>
    tpu.vector_store %arg6[%c0_20, %c0_21, %c0_22], %79 {strides = array<i32>} : memref<1x8x128xf32, #tpu.memory_space<vmem>>, vector<1x1x128xf32>,
    %80 = arith.mulf %73, %73 : vector<64x128xf32>
    %cst_23 = arith.constant dense<0.000000e+00> : vector<128xf32>
    %81 = vector.multi_reduction <add>, %80, %cst_23 [0] : vector<64x128xf32> to vector<128xf32>
    %82 = vector.shape_cast %81 : vector<128xf32> to vector<1x128xf32>
    %c0_24 = arith.constant 0 : index
    %c1_25 = arith.constant 1 : index
    %c0_26 = arith.constant 0 : index
    %83 = vector.load %arg6[%c0_24, %c1_25, %c0_26] : memref<1x8x128xf32, #tpu.memory_space<vmem>>, vector<1x1x128xf32>
    %84 = vector.shape_cast %83 : vector<1x1x128xf32> to vector<1x128xf32>
    %85 = vector.shape_cast %82 : vector<1x128xf32> to vector<1x1x128xf32>
    tpu.vector_store %arg6[%c0_24, %c1_25, %c0_26], %85 {strides = array<i32>} : memref<1x8x128xf32, #tpu.memory_space<vmem>>, vector<1x1x128xf32>,
    %cst_27 = arith.constant 0.000000e+00 : f32
    %86 = vector.broadcast %cst_27 : f32 to vector<6x128xf32>
    %c0_28 = arith.constant 0 : index
    %c2_29 = arith.constant 2 : index
    %c0_30 = arith.constant 0 : index
    %87 = vector.load %arg6[%c0_28, %c2_29, %c0_30] : memref<1x8x128xf32, #tpu.memory_space<vmem>>, vector<1x6x128xf32>
    %88 = vector.shape_cast %87 : vector<1x6x128xf32> to vector<6x128xf32>
    %89 = vector.shape_cast %86 : vector<6x128xf32> to vector<1x6x128xf32>
    tpu.vector_store %arg6[%c0_28, %c2_29, %c0_30], %89 {strides = array<i32>} : memref<1x8x128xf32, #tpu.memory_space<vmem>>, vector<1x6x128xf32>,
    return
  }
  func.func @transform_0(%arg0: i32) -> i32 {
    %c0_i32 = arith.constant 0 : i32
    %c0_i32_0 = arith.constant 0 : i32
    return %c0_i32 : i32
  }
  func.func @transform_1(%arg0: i32) -> (i32, i32, i32, i32) {
    %c0_i32 = arith.constant 0 : i32
    %c0_i32_0 = arith.constant 0 : i32
    %c0_i32_1 = arith.constant 0 : i32
    %c0_i32_2 = arith.constant 0 : i32
    return %arg0, %c0_i32, %c0_i32_0, %c0_i32_1 : i32, i32, i32, i32
  }
  func.func @transform_2(%arg0: i32) -> (i32, i32) {
    %c0_i32 = arith.constant 0 : i32
    %c0_i32_0 = arith.constant 0 : i32
    %c0_i32_1 = arith.constant 0 : i32
    return %c0_i32, %c0_i32_0 : i32, i32
  }
  func.func @transform_3(%arg0: i32) -> (i32, i32) {
    %c0_i32 = arith.constant 0 : i32
    %c0_i32_0 = arith.constant 0 : i32
    %c0_i32_1 = arith.constant 0 : i32
    return %c0_i32, %c0_i32_0 : i32, i32
  }
  func.func @transform_4(%arg0: i32) -> (i32, i32) {
    %c0_i32 = arith.constant 0 : i32
    %c0_i32_0 = arith.constant 0 : i32
    return %arg0, %c0_i32 : i32, i32
  }
  func.func @transform_5(%arg0: i32) -> (i32, i32, i32) {
    %c0_i32 = arith.constant 0 : i32
    %c0_i32_0 = arith.constant 0 : i32
    %c0_i32_1 = arith.constant 0 : i32
    return %arg0, %c0_i32, %c0_i32_0 : i32, i32, i32
  }
}

module attributes {stable_mosaic.version = 11 : i64} {
  func.func @kernel(%arg0: i32, %arg1: memref<3xf32, #tpu.memory_space<smem>>, %arg2: memref<1x10x10x128xf32, #tpu.memory_space<vmem>>, %arg3: memref<1x10x10x128xf32, #tpu.memory_space<vmem>>, %arg4: memref<1x10x10x128xf32, #tpu.memory_space<vmem>>, %arg5: memref<9x128xf32, #tpu.memory_space<vmem>>, %arg6: memref<128x128xf32, #tpu.memory_space<vmem>>, %arg7: memref<64x128xf32, #tpu.memory_space<vmem>>, %arg8: memref<1x8x128xf32, #tpu.memory_space<vmem>>) attributes {dimension_semantics = [#tpu.dimension_semantics<parallel>], iteration_bounds = array<i64: 2>, scalar_prefetch = 0 : i64, scratch_operands = 0 : i64, tpu.core_type = #tpu.core_type<tc>, window_params = [{transform_indices = @transform_0, window_bounds = array<i64: 3>}, {transform_indices = @transform_1, window_bounds = array<i64: 1, 10, 10, 128>}, {transform_indices = @transform_2, window_bounds = array<i64: 1, 10, 10, 128>}, {transform_indices = @transform_3, window_bounds = array<i64: 1, 10, 10, 128>}, {pipeline_mode = #tpu.pipeline_mode<synchronous>, transform_indices = @transform_4, window_bounds = array<i64: 9, 128>}, {pipeline_mode = #tpu.pipeline_mode<synchronous>, transform_indices = @transform_5, window_bounds = array<i64: 128, 128>}, {transform_indices = @transform_6, window_bounds = array<i64: 64, 128>}, {transform_indices = @transform_7, window_bounds = array<i64: 1, 8, 128>}]} {
    %c0 = arith.constant 0 : index
    %c0_0 = arith.constant 0 : index
    %c0_1 = arith.constant 0 : index
    %c0_2 = arith.constant 0 : index
    %0 = vector.load %arg2[%c0, %c0_0, %c0_1, %c0_2] : memref<1x10x10x128xf32, #tpu.memory_space<vmem>>, vector<1x10x10x128xf32>
    %1 = vector.shape_cast %0 : vector<1x10x10x128xf32> to vector<10x10x128xf32>
    %c0_3 = arith.constant 0 : index
    %2 = memref.load %arg1[%c0_3] : memref<3xf32, #tpu.memory_space<smem>>
    %3 = vector.broadcast %2 : f32 to vector<10x10x128xf32>
    %4 = arith.mulf %1, %3 : vector<10x10x128xf32>
    %c0_4 = arith.constant 0 : index
    %c0_5 = arith.constant 0 : index
    %c0_6 = arith.constant 0 : index
    %c0_7 = arith.constant 0 : index
    %5 = vector.load %arg3[%c0_4, %c0_5, %c0_6, %c0_7] : memref<1x10x10x128xf32, #tpu.memory_space<vmem>>, vector<1x10x10x128xf32>
    %6 = vector.shape_cast %5 : vector<1x10x10x128xf32> to vector<10x10x128xf32>
    %c1 = arith.constant 1 : index
    %7 = memref.load %arg1[%c1] : memref<3xf32, #tpu.memory_space<smem>>
    %8 = vector.broadcast %7 : f32 to vector<10x10x128xf32>
    %9 = arith.mulf %6, %8 : vector<10x10x128xf32>
    %10 = arith.addf %4, %9 : vector<10x10x128xf32>
    %c0_8 = arith.constant 0 : index
    %c0_9 = arith.constant 0 : index
    %c0_10 = arith.constant 0 : index
    %c0_11 = arith.constant 0 : index
    %11 = vector.load %arg4[%c0_8, %c0_9, %c0_10, %c0_11] : memref<1x10x10x128xf32, #tpu.memory_space<vmem>>, vector<1x10x10x128xf32>
    %12 = vector.shape_cast %11 : vector<1x10x10x128xf32> to vector<10x10x128xf32>
    %c2 = arith.constant 2 : index
    %13 = memref.load %arg1[%c2] : memref<3xf32, #tpu.memory_space<smem>>
    %14 = vector.broadcast %13 : f32 to vector<10x10x128xf32>
    %15 = arith.mulf %12, %14 : vector<10x10x128xf32>
    %16 = arith.addf %10, %15 : vector<10x10x128xf32>
    %cst = arith.constant 0.000000e+00 : f32
    %17 = vector.broadcast %cst : f32 to vector<10x10x128xf32>
    %18 = arith.maximumf %16, %17 : vector<10x10x128xf32>
    %19 = vector.extract_strided_slice %18 {offsets = [0, 0, 0], sizes = [8, 8, 128], strides = [1, 1, 1]} : vector<10x10x128xf32> to vector<8x8x128xf32>
    %c0_12 = arith.constant 0 : index
    %c0_13 = arith.constant 0 : index
    %20 = vector.load %arg5[%c0_12, %c0_13] : memref<9x128xf32, #tpu.memory_space<vmem>>, vector<1x128xf32>
    %21 = vector.shape_cast %20 : vector<1x128xf32> to vector<128xf32>
    %22 = vector.shape_cast %21 : vector<128xf32> to vector<1x1x128xf32>
    %23 = vector.broadcast %22 : vector<1x1x128xf32> to vector<8x8x128xf32>
    %24 = arith.mulf %19, %23 : vector<8x8x128xf32>
    %25 = vector.extract_strided_slice %18 {offsets = [0, 1, 0], sizes = [8, 8, 128], strides = [1, 1, 1]} : vector<10x10x128xf32> to vector<8x8x128xf32>
    %c1_14 = arith.constant 1 : index
    %c0_15 = arith.constant 0 : index
    %26 = vector.load %arg5[%c1_14, %c0_15] : memref<9x128xf32, #tpu.memory_space<vmem>>, vector<1x128xf32>
    %27 = vector.shape_cast %26 : vector<1x128xf32> to vector<128xf32>
    %28 = vector.shape_cast %27 : vector<128xf32> to vector<1x1x128xf32>
    %29 = vector.broadcast %28 : vector<1x1x128xf32> to vector<8x8x128xf32>
    %30 = arith.mulf %25, %29 : vector<8x8x128xf32>
    %31 = arith.addf %24, %30 : vector<8x8x128xf32>
    %32 = vector.extract_strided_slice %18 {offsets = [0, 2, 0], sizes = [8, 8, 128], strides = [1, 1, 1]} : vector<10x10x128xf32> to vector<8x8x128xf32>
    %c2_16 = arith.constant 2 : index
    %c0_17 = arith.constant 0 : index
    %33 = vector.load %arg5[%c2_16, %c0_17] : memref<9x128xf32, #tpu.memory_space<vmem>>, vector<1x128xf32>
    %34 = vector.shape_cast %33 : vector<1x128xf32> to vector<128xf32>
    %35 = vector.shape_cast %34 : vector<128xf32> to vector<1x1x128xf32>
    %36 = vector.broadcast %35 : vector<1x1x128xf32> to vector<8x8x128xf32>
    %37 = arith.mulf %32, %36 : vector<8x8x128xf32>
    %38 = arith.addf %31, %37 : vector<8x8x128xf32>
    %39 = vector.extract_strided_slice %18 {offsets = [1, 0, 0], sizes = [8, 8, 128], strides = [1, 1, 1]} : vector<10x10x128xf32> to vector<8x8x128xf32>
    %c3 = arith.constant 3 : index
    %c0_18 = arith.constant 0 : index
    %40 = vector.load %arg5[%c3, %c0_18] : memref<9x128xf32, #tpu.memory_space<vmem>>, vector<1x128xf32>
    %41 = vector.shape_cast %40 : vector<1x128xf32> to vector<128xf32>
    %42 = vector.shape_cast %41 : vector<128xf32> to vector<1x1x128xf32>
    %43 = vector.broadcast %42 : vector<1x1x128xf32> to vector<8x8x128xf32>
    %44 = arith.mulf %39, %43 : vector<8x8x128xf32>
    %45 = arith.addf %38, %44 : vector<8x8x128xf32>
    %46 = vector.extract_strided_slice %18 {offsets = [1, 1, 0], sizes = [8, 8, 128], strides = [1, 1, 1]} : vector<10x10x128xf32> to vector<8x8x128xf32>
    %c4 = arith.constant 4 : index
    %c0_19 = arith.constant 0 : index
    %47 = vector.load %arg5[%c4, %c0_19] : memref<9x128xf32, #tpu.memory_space<vmem>>, vector<1x128xf32>
    %48 = vector.shape_cast %47 : vector<1x128xf32> to vector<128xf32>
    %49 = vector.shape_cast %48 : vector<128xf32> to vector<1x1x128xf32>
    %50 = vector.broadcast %49 : vector<1x1x128xf32> to vector<8x8x128xf32>
    %51 = arith.mulf %46, %50 : vector<8x8x128xf32>
    %52 = arith.addf %45, %51 : vector<8x8x128xf32>
    %53 = vector.extract_strided_slice %18 {offsets = [1, 2, 0], sizes = [8, 8, 128], strides = [1, 1, 1]} : vector<10x10x128xf32> to vector<8x8x128xf32>
    %c5 = arith.constant 5 : index
    %c0_20 = arith.constant 0 : index
    %54 = vector.load %arg5[%c5, %c0_20] : memref<9x128xf32, #tpu.memory_space<vmem>>, vector<1x128xf32>
    %55 = vector.shape_cast %54 : vector<1x128xf32> to vector<128xf32>
    %56 = vector.shape_cast %55 : vector<128xf32> to vector<1x1x128xf32>
    %57 = vector.broadcast %56 : vector<1x1x128xf32> to vector<8x8x128xf32>
    %58 = arith.mulf %53, %57 : vector<8x8x128xf32>
    %59 = arith.addf %52, %58 : vector<8x8x128xf32>
    %60 = vector.extract_strided_slice %18 {offsets = [2, 0, 0], sizes = [8, 8, 128], strides = [1, 1, 1]} : vector<10x10x128xf32> to vector<8x8x128xf32>
    %c6 = arith.constant 6 : index
    %c0_21 = arith.constant 0 : index
    %61 = vector.load %arg5[%c6, %c0_21] : memref<9x128xf32, #tpu.memory_space<vmem>>, vector<1x128xf32>
    %62 = vector.shape_cast %61 : vector<1x128xf32> to vector<128xf32>
    %63 = vector.shape_cast %62 : vector<128xf32> to vector<1x1x128xf32>
    %64 = vector.broadcast %63 : vector<1x1x128xf32> to vector<8x8x128xf32>
    %65 = arith.mulf %60, %64 : vector<8x8x128xf32>
    %66 = arith.addf %59, %65 : vector<8x8x128xf32>
    %67 = vector.extract_strided_slice %18 {offsets = [2, 1, 0], sizes = [8, 8, 128], strides = [1, 1, 1]} : vector<10x10x128xf32> to vector<8x8x128xf32>
    %c7 = arith.constant 7 : index
    %c0_22 = arith.constant 0 : index
    %68 = vector.load %arg5[%c7, %c0_22] : memref<9x128xf32, #tpu.memory_space<vmem>>, vector<1x128xf32>
    %69 = vector.shape_cast %68 : vector<1x128xf32> to vector<128xf32>
    %70 = vector.shape_cast %69 : vector<128xf32> to vector<1x1x128xf32>
    %71 = vector.broadcast %70 : vector<1x1x128xf32> to vector<8x8x128xf32>
    %72 = arith.mulf %67, %71 : vector<8x8x128xf32>
    %73 = arith.addf %66, %72 : vector<8x8x128xf32>
    %74 = vector.extract_strided_slice %18 {offsets = [2, 2, 0], sizes = [8, 8, 128], strides = [1, 1, 1]} : vector<10x10x128xf32> to vector<8x8x128xf32>
    %c8 = arith.constant 8 : index
    %c0_23 = arith.constant 0 : index
    %75 = vector.load %arg5[%c8, %c0_23] : memref<9x128xf32, #tpu.memory_space<vmem>>, vector<1x128xf32>
    %76 = vector.shape_cast %75 : vector<1x128xf32> to vector<128xf32>
    %77 = vector.shape_cast %76 : vector<128xf32> to vector<1x1x128xf32>
    %78 = vector.broadcast %77 : vector<1x1x128xf32> to vector<8x8x128xf32>
    %79 = arith.mulf %74, %78 : vector<8x8x128xf32>
    %80 = arith.addf %73, %79 : vector<8x8x128xf32>
    %81 = vector.shape_cast %80 : vector<8x8x128xf32> to vector<64x128xf32>
    %82 = arith.truncf %81 : vector<64x128xf32> to vector<64x128xbf16>
    %c0_24 = arith.constant 0 : index
    %c0_25 = arith.constant 0 : index
    %83 = vector.load %arg6[%c0_24, %c0_25] : memref<128x128xf32, #tpu.memory_space<vmem>>, vector<128x128xf32>
    %84 = arith.truncf %83 : vector<128x128xf32> to vector<128x128xbf16>
    %cst_26 = arith.constant dense<0.000000e+00> : vector<64x128xf32>
    %85 = tpu.matmul %82, %84, %cst_26 {dimension_numbers = #tpu.dot_dimension_numbers<[1], [0], [0], [1], [0, 0, 1, 1], [], []>} : vector<64x128xbf16>, vector<128x128xbf16>, vector<64x128xf32> -> vector<64x128xf32>
    %c0_27 = arith.constant 0 : index
    %c0_28 = arith.constant 0 : index
    %86 = vector.load %arg7[%c0_27, %c0_28] : memref<64x128xf32, #tpu.memory_space<vmem>>, vector<64x128xf32>
    tpu.vector_store %arg7[%c0_27, %c0_28], %85 {strides = array<i32>} : memref<64x128xf32, #tpu.memory_space<vmem>>, vector<64x128xf32>,
    %cst_29 = arith.constant dense<0.000000e+00> : vector<128xf32>
    %87 = vector.multi_reduction <add>, %85, %cst_29 [0] : vector<64x128xf32> to vector<128xf32>
    %88 = vector.shape_cast %87 : vector<128xf32> to vector<1x128xf32>
    %c0_30 = arith.constant 0 : index
    %c0_31 = arith.constant 0 : index
    %c0_32 = arith.constant 0 : index
    %89 = vector.load %arg8[%c0_30, %c0_31, %c0_32] : memref<1x8x128xf32, #tpu.memory_space<vmem>>, vector<1x1x128xf32>
    %90 = vector.shape_cast %89 : vector<1x1x128xf32> to vector<1x128xf32>
    %91 = vector.shape_cast %88 : vector<1x128xf32> to vector<1x1x128xf32>
    tpu.vector_store %arg8[%c0_30, %c0_31, %c0_32], %91 {strides = array<i32>} : memref<1x8x128xf32, #tpu.memory_space<vmem>>, vector<1x1x128xf32>,
    %92 = arith.mulf %85, %85 : vector<64x128xf32>
    %cst_33 = arith.constant dense<0.000000e+00> : vector<128xf32>
    %93 = vector.multi_reduction <add>, %92, %cst_33 [0] : vector<64x128xf32> to vector<128xf32>
    %94 = vector.shape_cast %93 : vector<128xf32> to vector<1x128xf32>
    %c0_34 = arith.constant 0 : index
    %c1_35 = arith.constant 1 : index
    %c0_36 = arith.constant 0 : index
    %95 = vector.load %arg8[%c0_34, %c1_35, %c0_36] : memref<1x8x128xf32, #tpu.memory_space<vmem>>, vector<1x1x128xf32>
    %96 = vector.shape_cast %95 : vector<1x1x128xf32> to vector<1x128xf32>
    %97 = vector.shape_cast %94 : vector<1x128xf32> to vector<1x1x128xf32>
    tpu.vector_store %arg8[%c0_34, %c1_35, %c0_36], %97 {strides = array<i32>} : memref<1x8x128xf32, #tpu.memory_space<vmem>>, vector<1x1x128xf32>,
    %cst_37 = arith.constant 0.000000e+00 : f32
    %98 = vector.broadcast %cst_37 : f32 to vector<6x128xf32>
    %c0_38 = arith.constant 0 : index
    %c2_39 = arith.constant 2 : index
    %c0_40 = arith.constant 0 : index
    %99 = vector.load %arg8[%c0_38, %c2_39, %c0_40] : memref<1x8x128xf32, #tpu.memory_space<vmem>>, vector<1x6x128xf32>
    %100 = vector.shape_cast %99 : vector<1x6x128xf32> to vector<6x128xf32>
    %101 = vector.shape_cast %98 : vector<6x128xf32> to vector<1x6x128xf32>
    tpu.vector_store %arg8[%c0_38, %c2_39, %c0_40], %101 {strides = array<i32>} : memref<1x8x128xf32, #tpu.memory_space<vmem>>, vector<1x6x128xf32>,
    return
  }
  func.func @transform_0(%arg0: i32) -> i32 {
    %c0_i32 = arith.constant 0 : i32
    %c0_i32_0 = arith.constant 0 : i32
    return %c0_i32 : i32
  }
  func.func @transform_1(%arg0: i32) -> (i32, i32, i32, i32) {
    %c0_i32 = arith.constant 0 : i32
    %c0_i32_0 = arith.constant 0 : i32
    %c0_i32_1 = arith.constant 0 : i32
    %c0_i32_2 = arith.constant 0 : i32
    return %arg0, %c0_i32, %c0_i32_0, %c0_i32_1 : i32, i32, i32, i32
  }
  func.func @transform_2(%arg0: i32) -> (i32, i32, i32, i32) {
    %c0_i32 = arith.constant 0 : i32
    %c0_i32_0 = arith.constant 0 : i32
    %c0_i32_1 = arith.constant 0 : i32
    %c0_i32_2 = arith.constant 0 : i32
    return %arg0, %c0_i32, %c0_i32_0, %c0_i32_1 : i32, i32, i32, i32
  }
  func.func @transform_3(%arg0: i32) -> (i32, i32, i32, i32) {
    %c0_i32 = arith.constant 0 : i32
    %c0_i32_0 = arith.constant 0 : i32
    %c0_i32_1 = arith.constant 0 : i32
    %c0_i32_2 = arith.constant 0 : i32
    return %arg0, %c0_i32, %c0_i32_0, %c0_i32_1 : i32, i32, i32, i32
  }
  func.func @transform_4(%arg0: i32) -> (i32, i32) {
    %c0_i32 = arith.constant 0 : i32
    %c0_i32_0 = arith.constant 0 : i32
    %c0_i32_1 = arith.constant 0 : i32
    return %c0_i32, %c0_i32_0 : i32, i32
  }
  func.func @transform_5(%arg0: i32) -> (i32, i32) {
    %c0_i32 = arith.constant 0 : i32
    %c0_i32_0 = arith.constant 0 : i32
    %c0_i32_1 = arith.constant 0 : i32
    return %c0_i32, %c0_i32_0 : i32, i32
  }
  func.func @transform_6(%arg0: i32) -> (i32, i32) {
    %c0_i32 = arith.constant 0 : i32
    %c0_i32_0 = arith.constant 0 : i32
    return %arg0, %c0_i32 : i32, i32
  }
  func.func @transform_7(%arg0: i32) -> (i32, i32, i32) {
    %c0_i32 = arith.constant 0 : i32
    %c0_i32_0 = arith.constant 0 : i32
    %c0_i32_1 = arith.constant 0 : i32
    return %arg0, %c0_i32, %c0_i32_0 : i32, i32, i32
  }
}

</mosaic_0001>

<bundles_post_ra>
// kernel: a_call__.13
= control target key start
LH: loop header
LB: loop body
LE: loop exit
PB: predicated region body
PF: predicated region fallthrough
CT: control target
= control target key end

     0   :  { %s318_s9 = smov 0   ;;  %s381_s0 = inlined_call_operand.vmem [shape: f32[128,128], index: 0, kind: input, shape index: {}]   ;;  %s382_s1 = inlined_call_operand.vmem [shape: f32[8,128], index: 1, kind: input, shape index: {}]   ;;  %s383_s2 = inlined_call_operand.vmem [shape: f32[2,10,10,128], index: 2, kind: output, shape index: {}]  }
   0x1 LB: > { %s264_s10 = sadd.s32 4294967295, %s300_s9   ;;  %p268_p0 = scmp.ge.s32.totalorder %s300_s9, 1  ;;  %s300_s9 = sphi %s318_s9, %s12_s9  }
   0x2   : > { %p113_p1 = scmp.lt.s32.totalorder %s300_s9, 3 }
   0x4   : > { %p114_p2 = pnand %p268_p0, %p113_p1 }
   0x5   : > { %p141_p3 = scmp.lt.s32.totalorder (!%p114_p2), %s264_s10, 1  ;;  %s269_s11 = sshll.u32 (!%p114_p2), %s264_s10, 3 }
   0x6   : > { %117 = sbr.rel (%p114_p2) target bundleno = 29 (0x1d), region = 28  ;;  %p136_p4 = scmp.lt.s32.totalorder (!%p114_p2), %s269_s11, 15 }
   0xb   : > { %s385_s10 = smov (!%p141_p3, %s264_s10), 1  ;;  %s387_s11 = smov (!%p136_p4, %s269_s11), 15  ;;  %v272_v0 = vld [vmem:[%s382_s1] ss:$0 sm:$0xff]  ;;  %v273_v1 = vld [vmem:[%s382_s1 + $0x1] ss:$0 sm:$0xff] }
   0xc   : > { %s284_s12 = smul.u32 160, %s385_s10  ;;  %s270_s13 = sshll.u32 %s387_s11, 3  ;;  %v302_v2 = vmov 0.0  }
   0xd   : > { %s337_s21 = scalar_lea.vmem %s381_s0, %s270_s13 }
   0xe   : > { %s332_s18 = scalar_lea.vmem %s383_s2, %s284_s12  ;;  %v148_v3 = vld [vmem:[%s337_s21] sm:$0xff]  ;;  %v149_v4 = vld [vmem:[%s337_s21 + $0x8] sm:$0xff]  ;;  %v150_v5 = vld [vmem:[%s337_s21 + $0x10] sm:$0xff] }
   0xf   : > { %182 = vst [vmem:[%s332_s18 + $0x10] sm:$0xff] %v302_v2  ;;  %180 = vst [vmem:[%s332_s18] sm:$0xff] %v302_v2  ;;  %v160_v6 = vsub.f32 %v148_v3, %v272_v0  ;;  %v161_v7 = vsub.f32 %v149_v4, %v272_v0  ;;  %v162_v8 = vsub.f32 %v150_v5, %v272_v0  ;;  %v151_v9 = vld [vmem:[%s337_s21 + $0x18] sm:$0xff]  ;;  %v152_v10 = vld [vmem:[%s337_s21 + $0x20] sm:$0xff] }
  0x10   : > { %181 = vst [vmem:[%s332_s18 + $0x8] sm:$0x3] %v302_v2  ;;  %183 = vst [vmem:[%s332_s18 + $0x18] sm:$0x3] %v302_v2  ;;  %v153_v11 = vld [vmem:[%s337_s21 + $0x28] sm:$0xff]  ;;  %v163_v12 = vsub.f32 %v151_v9, %v272_v0  ;;  %v164_v13 = vsub.f32 %v152_v10, %v272_v0  ;;  %v154_v15 = vld [vmem:[%s337_s21 + $0x30] sm:$0xff] }
  0x11   : > { %184 = vst [vmem:[%s332_s18 + $0x20] sm:$0xff] %v302_v2  ;;  %185 = vst [vmem:[%s332_s18 + $0x28] sm:$0x3] %v302_v2  ;;  %v165_v14 = vsub.f32 %v153_v11, %v272_v0  ;;  %v155_v16 = vld [vmem:[%s337_s21 + $0x38] sm:$0xff]  ;;  %v172_v17 = vmul.f32 %v273_v1, %v160_v6  ;;  %v173_v18 = vmul.f32 %v273_v1, %v161_v7 }
  0x12   : > { %186 = vst [vmem:[%s332_s18 + $0x30] sm:$0xff] %v302_v2  ;;  %187 = vst [vmem:[%s332_s18 + $0x38] sm:$0x3] %v302_v2  ;;  %v174_v19 = vmul.f32 %v273_v1, %v162_v8  ;;  %v166_v20 = vsub.f32 %v154_v15, %v272_v0  ;;  %v175_v21 = vmul.f32 %v273_v1, %v163_v12 }
  0x13   : > { %188 = vst [vmem:[%s332_s18 + $0x40] sm:$0xff] %v302_v2  ;;  %189 = vst [vmem:[%s332_s18 + $0x48] sm:$0x3] %v302_v2  ;;  %v176_v22 = vmul.f32 %v273_v1, %v164_v13  ;;  %v177_v23 = vmul.f32 %v273_v1, %v165_v14  ;;  %v167_v24 = vsub.f32 %v155_v16, %v272_v0 }
  0x14   : > { %190 = vst [vmem:[%s332_s18 + $0x50] sm:$0xff] %v302_v2  ;;  %191 = vst [vmem:[%s332_s18 + $0x58] sm:$0x3] %v302_v2  ;;  %v178_v25 = vmul.f32 %v273_v1, %v166_v20 }
  0x15   : > { %192 = vst [vmem:[%s332_s18 + $0x60] sm:$0xff] %v302_v2  ;;  %193 = vst [vmem:[%s332_s18 + $0x68] sm:$0x3] %v302_v2  ;;  %v179_v26 = vmul.f32 %v273_v1, %v167_v24 }
  0x16   : > { %194 = vst [vmem:[%s332_s18 + $0x70] sm:$0xff] %v302_v2  ;;  %195 = vst [vmem:[%s332_s18 + $0x78] sm:$0x3] %v302_v2 }
  0x17   : > { %196 = vst [vmem:[%s332_s18 + $0x80] sm:$0xff] %v302_v2  ;;  %197 = vst [vmem:[%s332_s18 + $0x88] sm:$0x3] %v302_v2 }
  0x18   : > { %198 = vst [vmem:[%s332_s18 + $0x90] sm:$0xff] %v302_v2  ;;  %199 = vst [vmem:[%s332_s18 + $0x98] sm:$0x3] %v302_v2 }
  0x19   : > { %274 = vst [vmem:[%s332_s18 + $0x11] sm:$0xff] %v172_v17  ;;  %275 = vst [vmem:[%s332_s18 + $0x21] sm:$0xff] %v173_v18 }
  0x1a   : > { %276 = vst [vmem:[%s332_s18 + $0x31] sm:$0xff] %v174_v19  ;;  %277 = vst [vmem:[%s332_s18 + $0x41] sm:$0xff] %v175_v21 }
  0x1b   : > { %278 = vst [vmem:[%s332_s18 + $0x51] sm:$0xff] %v176_v22  ;;  %279 = vst [vmem:[%s332_s18 + $0x61] sm:$0xff] %v177_v23 }
  0x1c   : > { %280 = vst [vmem:[%s332_s18 + $0x71] sm:$0xff] %v178_v25  ;;  %281 = vst [vmem:[%s332_s18 + $0x81] sm:$0xff] %v179_v26 }
  0x1d PF: > { %s12_s9 = sadd.s32 1, %s300_s9  }
  0x1e   : > { %p9_p5 = scmp.ge.s32.totalorder %s12_s9, 4  }
  0x20   :  { %11 = sbr.rel (!%p9_p5) target bundleno = 1 (0x1), region = 59 }

// kernel: a_call__.12
= control target key start
LH: loop header
LB: loop body
LE: loop exit
PB: predicated region body
PF: predicated region fallthrough
CT: control target
= control target key end

     0   :  { %s1288_s29 = smov 0   ;;  %s1794_s0 = inlined_call_operand.<no memory space> [shape: f32[1], index: 0, kind: input, shape index: {}]   ;;  %s1795_s1 = inlined_call_operand.vmem [shape: f32[2,9,9,128], index: 1, kind: input, shape index: {}]   ;;  %s1796_s2 = inlined_call_operand.vmem [shape: f32[2,9,9,128], index: 2, kind: input, shape index: {}]   ;;  %s1797_s3 = inlined_call_operand.vmem [shape: f32[2,9,9,128], index: 3, kind: input, shape index: {}]   ;;  %s1798_s4 = inlined_call_operand.vmem [shape: f32[2,9,9,128], index: 4, kind: input, shape index: {}]   ;;  %s1799_s5 = inlined_call_operand.vmem [shape: f32[9,128], index: 5, kind: input, shape index: {}]   ;;  %s1800_s6 = inlined_call_operand.vmem [shape: f32[128,128], index: 6, kind: input, shape index: {}]   ;;  %s1801_s7 = inlined_call_operand.vmem [shape: f32[128,128], index: 7, kind: output, shape index: {0}]   ;;  %s1802_s8 = inlined_call_operand.vmem [shape: f32[2,8,128], index: 8, kind: output, shape index: {1}]  }
   0x1   :  { %14 = sst [smem:[#allocation2]] %s1794_s0 }
   0x2 LB: > { %s1294_s30 = sadd.s32 4294967295, %s1237_s29   ;;  %p1150_p0 = scmp.ge.s32.totalorder %s1237_s29, 1  ;;  %s1237_s29 = sphi %s1288_s29, %s20_s29  }
   0x3   : > { %p296_p1 = scmp.lt.s32.totalorder %s1237_s29, 3 }
   0x5   : > { %p297_p2 = pnand %p1150_p0, %p296_p1 }
   0x6   : > { %p349_p3 = scmp.lt.s32.totalorder (!%p297_p2), %s1294_s30, 1  ;;  %s398_s14 = sld [smem:[#allocation2]] (!%p297_p2) }
   0x7   : > { %300 = sbr.rel (%p297_p2) target bundleno = 332 (0x14c), region = 48  ;;  %s1155_s17 = sshll.u32 (!%p297_p2), %s1294_s30, 3 }
   0x8   : > { %p370_p4 = scmp.lt.s32.totalorder (!%p297_p2), %s1155_s17, 15 }
   0xc   : > { %v903_v0 = vld [vmem:[%s1800_s6 + $0x70] sm:$0xff]  ;;  %v904_v1 = vld [vmem:[%s1800_s6 + $0x78] sm:$0xff]  ;;  %v901_v2 = vld [vmem:[%s1800_s6 + $0x60] sm:$0xff]  ;;  %s1318_s21 = scalar_select %p349_p3, %s1294_s30, 1  ;;  %v1365_v19 = vstv %s398_s14  ;;  %vm606_vm0 = vcmask 1046528  }
   0xd   : > { %v912_v3 = vpack.c.bf16 %v904_v1, %v903_v0  ;;  %v902_v4 = vld [vmem:[%s1800_s6 + $0x68] sm:$0xff]  ;;  %v899_v6 = vld [vmem:[%s1800_s6 + $0x50] sm:$0xff]  ;;  %v900_v7 = vld [vmem:[%s1800_s6 + $0x58] sm:$0xff]  ;;  %s1804_s17 = smov (!%p370_p4, %s1155_s17), 15 }
   0xe   : > { %v911_v5 = vpack.c.bf16 %v902_v4, %v901_v2  ;;  %v897_v8 = vld [vmem:[%s1800_s6 + $0x40] sm:$0xff]  ;;  %v898_v9 = vld [vmem:[%s1800_s6 + $0x48] sm:$0xff]  ;;  %v895_v10 = vld [vmem:[%s1800_s6 + $0x30] sm:$0xff]  ;;  %s1339_s13 = smul.u32 144, %s1318_s21  ;;  %v910_v14 = vpack.c.bf16 %v900_v7, %v899_v6  ;;  %s1156_s18 = sshll.u32 %s1804_s17, 3 }
   0xf   : > { %1181 = vmatprep.subr.bf16.mxu0 %v912_v3  ;;  %1205 = vmatprep.subr.bf16.mxu1 %v912_v3  ;;  %v896_v11 = vld [vmem:[%s1800_s6 + $0x38] sm:$0xff]  ;;  %v893_v12 = vld [vmem:[%s1800_s6 + $0x20] sm:$0xff]  ;;  %v894_v13 = vld [vmem:[%s1800_s6 + $0x28] sm:$0xff]  ;;  %v909_v20 = vpack.c.bf16 %v898_v9, %v897_v8  ;;  %s373_s22 = scalar_lea.vmem %s1801_s7, %s1156_s18 }
  0x10   : > { %1182 = vmatpush3.bf16.msra.mxu0 %v912_v3  ;;  %1213 = vmatpush3.bf16.msra.mxu1 %v912_v3  ;;  %v891_v15 = vld [vmem:[%s1800_s6 + $0x10] sm:$0xff]  ;;  %v892_v16 = vld [vmem:[%s1800_s6 + $0x18] sm:$0xff]  ;;  %v889_v17 = vld [vmem:[%s1800_s6] sm:$0xff]  ;;  %s1357_s26 = scalar_lea.vmem %s1795_s1, %s1339_s13  ;;  %s1363_s9 = scalar_lea.vmem %s1796_s2, %s1339_s13  ;;  %v1367_v21 = vpack.c.bf16 %v896_v11, %v895_v10  ;;  %v1369_v22 = vpack.c.bf16 %v894_v13, %v893_v12 }
  0x11   : > { %1183 = vmatprep.subr.bf16.mxu0 %v911_v5  ;;  %1206 = vmatprep.subr.bf16.mxu1 %v911_v5  ;;  %v890_v18 = vld [vmem:[%s1800_s6 + $0x8] sm:$0xff]  ;;  %s1375_s11 = scalar_lea.vmem %s1797_s3, %s1339_s13  ;;  %v380_v23 = vld [vmem:[%s1357_s26] sm:$0xff]  ;;  %v382_v25 = vld [vmem:[%s1357_s26 + $0x10] sm:$0xff]  ;;  %v1388_v32 = vpack.c.bf16 %v892_v16, %v891_v15  ;;  %s1396_s15 = scalar_lea.vmem %s1798_s4, %s1339_s13 }
  0x12   : > { %v381_v24 = vld [vmem:[%s1357_s26 + $0x8] sm:$0x1]  ;;  %v383_v26 = vld [vmem:[%s1357_s26 + $0x18] sm:$0x1]  ;;  %v384_v27 = vld [vmem:[%s1357_s26 + $0x20] sm:$0xff]  ;;  %v400_v29 = vmul.f32 %v1365_v19, %v380_v23  ;;  %v402_v31 = vmul.f32 %v1365_v19, %v382_v25  ;;  %v1390_v33 = vpack.c.bf16 %v890_v18, %v889_v17 }
  0x13   : > { %v385_v28 = vld [vmem:[%s1357_s26 + $0x28] sm:$0x1]  ;;  %v1385_v30 = vmul.f32 %v1365_v19, %v381_v24  ;;  %v404_v34 = vmul.f32 %v1365_v19, %v384_v27  ;;  %v436_v35 = vld [vmem:[%s1363_s9] sm:$0xff]  ;;  %v437_v36 = vld [vmem:[%s1363_s9 + $0x10] sm:$0xff]  ;;  %v1403_v38 = vmul.f32 %v1365_v19, %v383_v26 }
  0x14   : > { %1184 = vmatpush3.bf16.msra.mxu0 %v911_v5  ;;  %1214 = vmatpush3.bf16.msra.mxu1 %v911_v5  ;;  %v438_v37 = vld [vmem:[%s1363_s9 + $0x20] sm:$0xff]  ;;  %v1406_v39 = vmul.f32 %v1365_v19, %v385_v28  ;;  %v418_v40 = vmax.f32 %v400_v29, 0.0  ;;  %v445_v41 = vmul.f32 %v436_v35, %v1365_v19  ;;  %v464_v43 = vld [vmem:[%s1375_s11 + $0x8] sm:$0x1]  ;;  %v1412_v45 = vmax.f32 %v402_v31, 0.0  ;;  %v465_v48 = vld [vmem:[%s1375_s11 + $0x10] sm:$0xff] }
  0x15   : > { %1185 = vmatprep.subr.bf16.mxu0 %v910_v14  ;;  %1207 = vmatprep.subr.bf16.mxu1 %v910_v14  ;;  %v463_v42 = vld [vmem:[%s1375_s11] sm:$0xff]  ;;  %v419_v44 = vmax.f32 %v1385_v30, 0.0  ;;  %v1414_v46 = vmax.f32 %v404_v34, 0.0  ;;  %v1417_v47 = vmul.f32 %v437_v36, %v1365_v19  ;;  %v466_v49 = vld [vmem:[%s1375_s11 + $0x18] sm:$0x1]  ;;  %v1422_v50 = vmul.f32 %v438_v37, %v1365_v19  ;;  %v512_v55 = vld [vmem:[%s1396_s15 + $0x10] sm:$0xff] }
  0x16   : > { %v454_v51 = vmax.f32 %v445_v41, 0.0  ;;  %v1425_v52 = vmul.f32 %v463_v42, %v1365_v19  ;;  %v1428_v53 = vmul.f32 %v464_v43, %v1365_v19  ;;  %v511_v54 = vld [vmem:[%s1396_s15] sm:$0xff]  ;;  %v481_v58 = vmul.f32 %v465_v48, %v1365_v19 }
  0x17   : > { %v1435_v56 = vld [vmem:[%s1799_s5] ss:$0 sm:$0xff]  ;;  %v455_v57 = vmax.f32 %v1417_v47, 0.0  ;;  %v1440_v59 = vmul.f32 %v466_v49, %v1365_v19  ;;  %v519_v60 = vmul.f32 %v511_v54, %v1365_v19  ;;  %v1446_v61 = vld [vmem:[%s1799_s5 + $0x1] ss:$0 sm:$0xff]  ;;  %v421_v62 = vmax.f32 %v1403_v38, 0.0 }
  0x18   : > { %1186 = vmatpush3.bf16.msra.mxu0 %v910_v14  ;;  %1215 = vmatpush3.bf16.msra.mxu1 %v910_v14  ;;  %v423_v63 = vmax.f32 %v1406_v39, 0.0  ;;  %v456_v0 = vmax.f32 %v1422_v50, 0.0  ;;  %v520_v1 = vmul.f32 %v512_v55, %v1365_v19  ;;  %v1455_v2 = vld [vmem:[%s1799_s5 + $0x2] ss:$0 sm:$0xff]  ;;  %v495_v3 = vmax.f32 %v1425_v52, 0.0 }
  0x19   : > { %1187 = vmatprep.subr.bf16.mxu0 %v909_v20  ;;  %1208 = vmatprep.subr.bf16.mxu1 %v909_v20  ;;  %v496_v4 = vmax.f32 %v1428_v53, 0.0  ;;  %v497_v5 = vmax.f32 %v481_v58, 0.0  ;;  %v540_v6 = vmul.f32 %v1435_v56, %v418_v40  ;;  %v498_v7 = vmax.f32 %v1440_v59, 0.0  ;;  %v1494_v27 = vld [vmem:[%s1799_s5 + $0x4] ss:$0 sm:$0xff] }
  0x1a   : > { %v527_v8 = vmax.f32 %v519_v60, 0.0  ;;  %v541_v9 = vmul.f32 %v1435_v56, %v1412_v45  ;;  %v553_v10 = vmul.f32 %v1446_v61, %v454_v51  ;;  %v528_v11 = vmax.f32 %v520_v1, 0.0  ;;  %v1501_v34 = vld [vmem:[%s1799_s5 + $0x5] ss:$0 sm:$0xff]  ;;  %v1515_v52 = vld [vmem:[%s1799_s5 + $0x6] ss:$0 sm:$0xff] }
  0x1b   : > { %v542_v12 = vmul.f32 %v1435_v56, %v1414_v46  ;;  %v554_v13 = vmul.f32 %v1446_v61, %v455_v57  ;;  %v574_v14 = vmul.f32 %v1455_v2, %v418_v40  ;;  %v555_v15 = vmul.f32 %v1446_v61, %v456_v0  ;;  %v1525_v58 = vld [vmem:[%s1799_s5 + $0x7] ss:$0 sm:$0xff] }
  0x1c   : > { %1188 = vmatpush3.bf16.msra.mxu0 %v909_v20  ;;  %1216 = vmatpush3.bf16.msra.mxu1 %v909_v20  ;;  %v575_v16 = vmul.f32 %v1455_v2, %v419_v44  ;;  %v576_v17 = vmul.f32 %v1455_v2, %v1412_v45  ;;  %v577_v18 = vmul.f32 %v1455_v2, %v421_v62  ;;  %v1484_v20 = vld [vmem:[%s1799_s5 + $0x3] ss:$0 sm:$0xff] }
  0x1d   : > { %1189 = vmatprep.subr.bf16.mxu0 %v1367_v21  ;;  %1209 = vmatprep.subr.bf16.mxu1 %v1367_v21  ;;  %v561_v23 = vadd.f32 %v553_v10, %v540_v6  ;;  %v562_v24 = vadd.f32 %v554_v13, %v541_v9  ;;  %v578_v25 = vmul.f32 %v1455_v2, %v1414_v46  ;;  %v607_v28 = vrot.slane %v574_v14, 1 }
  0x1e   : > { %v579_v26 = vmul.f32 %v1455_v2, %v423_v63  ;;  %v608_v29 = vrot.slane %v575_v16, 1  ;;  %v610_v30 = vrot.slane %v576_v17, 1  ;;  %v611_v31 = vrot.slane %v577_v18, 1  ;;  %v387_v16 = vld [vmem:[%s1357_s26 + $0x38] sm:$0x1]  ;;  %v388_v18 = vld [vmem:[%s1357_s26 + $0x40] sm:$0xff] }
  0x1f   : > { %v613_v35 = vrot.slane %v578_v25, 1  ;;  %v652_v37 = vmul.f32 %v1484_v20, %v495_v3  ;;  %v653_v40 = vmul.f32 %v1484_v20, %v497_v5  ;;  %v673_v43 = vmul.f32 %v1494_v27, %v527_v8 }
  0x20   : > { %1190 = vmatpush3.bf16.msra.mxu0 %v1367_v21  ;;  %1217 = vmatpush3.bf16.msra.mxu1 %v1367_v21  ;;  %v614_v36 = vrot.slane %v579_v26, 1  ;;  %v563_v21 = vadd.f32 %v555_v15, %v542_v12  ;;  %v609_v41 = vsel %vm606_vm0, %v607_v28, %v608_v29  ;;  %v612_v42 = vsel %vm606_vm0, %v610_v30, %v611_v31  ;;  %v386_v15 = vld [vmem:[%s1357_s26 + $0x30] sm:$0xff]  ;;  %v440_v29 = vld [vmem:[%s1363_s9 + $0x40] sm:$0xff] }
  0x21   : > { %1191 = vmatprep.subr.bf16.mxu0 %v1369_v22  ;;  %1210 = vmatprep.subr.bf16.mxu1 %v1369_v22  ;;  %v639_v44 = vadd.f32 %v609_v41, %v561_v23  ;;  %v640_v48 = vadd.f32 %v612_v42, %v562_v24  ;;  %v674_v49 = vmul.f32 %v1494_v27, %v528_v11  ;;  %v389_v23 = vld [vmem:[%s1357_s26 + $0x48] sm:$0x1]  ;;  %v439_v28 = vld [vmem:[%s1363_s9 + $0x30] sm:$0xff] }
  0x22   : > { %v694_v51 = vmul.f32 %v1501_v34, %v495_v3  ;;  %v615_v53 = vsel %vm606_vm0, %v613_v35, %v614_v36  ;;  %v695_v54 = vmul.f32 %v1501_v34, %v496_v4  ;;  %v696_v55 = vmul.f32 %v1501_v34, %v497_v5  ;;  %v1533_v3 = vld [vmem:[%s1799_s5 + $0x8] ss:$0 sm:$0xff] }
  0x23   : > { %v660_v59 = vadd.f32 %v652_v37, %v639_v44  ;;  %v661_v60 = vadd.f32 %v653_v40, %v640_v48  ;;  %v697_v1 = vmul.f32 %v1501_v34, %v498_v7  ;;  %v771_v6 = vmul.f32 %v1515_v52, %v1412_v45  ;;  %v467_v37 = vld [vmem:[%s1375_s11 + $0x20] sm:$0xff]  ;;  %v468_v40 = vld [vmem:[%s1375_s11 + $0x28] sm:$0x1]  ;;  %v470_v44 = vld [vmem:[%s1375_s11 + $0x38] sm:$0x1] }
  0x24   : > { %1192 = vmatpush3.bf16.msra.mxu0 %v1369_v22  ;;  %1218 = vmatpush3.bf16.msra.mxu1 %v1369_v22  ;;  %v726_v22 = vrot.slane %v694_v51, 1  ;;  %v727_v4 = vrot.slane %v695_v54, 1  ;;  %v729_v5 = vrot.slane %v696_v55, 1  ;;  %v772_v8 = vmul.f32 %v1515_v52, %v1414_v46  ;;  %v513_v48 = vld [vmem:[%s1396_s15 + $0x20] sm:$0xff] }
  0x25   : > { %1193 = vmatprep.subr.bf16.mxu0 %v1388_v32  ;;  %1211 = vmatprep.subr.bf16.mxu1 %v1388_v32  ;;  %v681_v9 = vadd.f32 %v673_v43, %v660_v59  ;;  %v682_v10 = vadd.f32 %v674_v49, %v661_v60  ;;  %v730_v11 = vrot.slane %v697_v1, 1  ;;  %v792_v7 = vmul.f32 %v1525_v58, %v455_v57 }
  0x26   : > { %v728_v12 = vsel %vm606_vm0, %v726_v22, %v727_v4  ;;  %v793_v13 = vmul.f32 %v1525_v58, %v456_v0  ;;  %v813_v14 = vmul.f32 %v1533_v3, %v1412_v45  ;;  %v815_v50 = vmul.f32 %v1533_v3, %v1414_v46  ;;  %v514_v22 = vld [vmem:[%s1396_s15 + $0x30] sm:$0xff] }
  0x27   : > { %v731_v47 = vsel %vm606_vm0, %v729_v5, %v730_v11  ;;  %v758_v57 = vadd.f32 %v728_v12, %v681_v9  ;;  %v816_v45 = vmul.f32 %v1533_v3, %v423_v63  ;;  %v406_v38 = vmul.f32 %v1365_v19, %v386_v15 }
  0x28   : > { %1194 = vmatpush3.bf16.msra.mxu0 %v1388_v32  ;;  %1219 = vmatpush3.bf16.msra.mxu1 %v1388_v32  ;;  %v814_v32 = vmul.f32 %v1533_v3, %v421_v62  ;;  %v759_v17 = vadd.f32 %v731_v47, %v682_v10  ;;  %v845_v0 = vrot.slane %v813_v14, 1  ;;  %v1567_v62 = vmul.f32 %v1365_v19, %v387_v16 }
  0x29   : > { %1195 = vmatprep.subr.bf16.mxu0 %v1390_v33  ;;  %1212 = vmatprep.subr.bf16.mxu1 %v1390_v33  ;;  %v779_v24 = vadd.f32 %v771_v6, %v758_v57  ;;  %v641_v39 = vadd.f32 %v615_v53, %v563_v21  ;;  %v848_v63 = vrot.slane %v815_v50, 1  ;;  %v849_v26 = vrot.slane %v816_v45, 1 }
  0x2a   : > { %v846_v25 = vrot.slane %v814_v32, 1  ;;  %v780_v46 = vadd.f32 %v772_v8, %v759_v17  ;;  %v408_v35 = vmul.f32 %v1365_v19, %v388_v18  ;;  %v1576_v36 = vmul.f32 %v1365_v19, %v389_v23 }
  0x2b   : > { %v800_v30 = vadd.f32 %v792_v7, %v779_v24  ;;  %v850_v41 = vsel %vm606_vm0, %v848_v63, %v849_v26  ;;  %v424_v42 = vmax.f32 %v406_v38, 0.0  ;;  %v425_v43 = vmax.f32 %v1567_v62, 0.0 }
  0x2c   : > { %1196 = vmatpush3.bf16.msra.mxu0 %v1390_v33  ;;  %1220 = vmatpush3.bf16.msra.mxu1 %v1390_v33  ;;  %v847_v31 = vsel %vm606_vm0, %v845_v0, %v846_v25  ;;  %v469_v33 = vld [vmem:[%s1375_s11 + $0x30] sm:$0xff]  ;;  %v801_v21 = vadd.f32 %v793_v13, %v780_v46  ;;  %v427_v51 = vmax.f32 %v1576_v36, 0.0  ;;  %v448_v53 = vmul.f32 %v439_v28, %v1365_v19 }
  0x2d   : > { %v877_v49 = vadd.f32 %v847_v31, %v800_v30  ;;  %v449_v54 = vmul.f32 %v440_v29, %v1365_v19  ;;  %v483_v59 = vmul.f32 %v467_v37, %v1365_v19  ;;  %v484_v60 = vmul.f32 %v468_v40, %v1365_v19 }
  0x2e   : > { %v878_v55 = vadd.f32 %v850_v41, %v801_v21  ;;  %v485_v1 = vmul.f32 %v469_v33, %v1365_v19  ;;  %v457_v4 = vmax.f32 %v448_v53, 0.0  ;;  %v486_v6 = vmul.f32 %v470_v44, %v1365_v19  ;;  %v390_v53 = vld [vmem:[%s1357_s26 + $0x50] sm:$0xff] }
  0x2f   : > { %v458_v5 = vmax.f32 %v449_v54, 0.0  ;;  %v521_v8 = vmul.f32 %v513_v48, %v1365_v19  ;;  %v1594_v10 = vmax.f32 %v408_v35, 0.0  ;;  %v499_v11 = vmax.f32 %v483_v59, 0.0  ;;  %v391_v54 = vld [vmem:[%s1357_s26 + $0x58] sm:$0x1] }
  0x30   : > { %v885_v9 = vpack.c.bf16 %v878_v55, %v877_v49  ;;  %v500_v7 = vmax.f32 %v484_v60, 0.0  ;;  %v501_v12 = vmax.f32 %v485_v1, 0.0  ;;  %v522_v13 = vmul.f32 %v514_v22, %v1365_v19  ;;  %v392_v22 = vld [vmem:[%s1357_s26 + $0x60] sm:$0xff] }
  0x31   : > { %v529_v14 = vmax.f32 %v521_v8, 0.0  ;;  %v543_v15 = vmul.f32 %v1435_v56, %v424_v42  ;;  %v502_v16 = vmax.f32 %v486_v6, 0.0  ;;  %v556_v47 = vmul.f32 %v1446_v61, %v457_v4  ;;  %v393_v8 = vld [vmem:[%s1357_s26 + $0x68] sm:$0x1] }
  0x32   : > { %1197 = vmatprep.mubr.bf16.mxu0 %v885_v9  ;;  %v580_v57 = vmul.f32 %v1455_v2, %v424_v42  ;;  %v581_v32 = vmul.f32 %v1455_v2, %v425_v43  ;;  %v530_v17 = vmax.f32 %v522_v13, 0.0  ;;  %v1602_v50 = vmul.f32 %v1446_v61, %v458_v5 }
  0x33   : > { %v1605_v45 = vmul.f32 %v1455_v2, %v427_v51  ;;  %v654_v0 = vmul.f32 %v1484_v20, %v499_v11  ;;  %v564_v18 = vadd.f32 %v556_v47, %v543_v15  ;;  %v675_v25 = vmul.f32 %v1494_v27, %v529_v14  ;;  %v442_v47 = vld [vmem:[%s1363_s9 + $0x60] sm:$0xff] }
  0x34   : > { %v616_v23 = vrot.slane %v580_v57, 1  ;;  %v617_v24 = vrot.slane %v581_v32, 1  ;;  %v655_v38 = vmul.f32 %v1484_v20, %v501_v12  ;;  %v676_v46 = vmul.f32 %v1494_v27, %v530_v17 }
  0x35   : > { %v662_v62 = vadd.f32 %v654_v0, %v641_v39  ;;  %v698_v63 = vmul.f32 %v1501_v34, %v499_v11  ;;  %v699_v28 = vmul.f32 %v1501_v34, %v500_v7  ;;  %v700_v29 = vmul.f32 %v1501_v34, %v501_v12 }
  0x36   : > { %v618_v26 = vsel %vm606_vm0, %v616_v23, %v617_v24  ;;  %v701_v30 = vmul.f32 %v1501_v34, %v502_v16  ;;  %v773_v39 = vmul.f32 %v1515_v52, %v424_v42  ;;  %v774_v21 = vmul.f32 %v1515_v52, %v1594_v10  ;;  %v441_v16 = vld [vmem:[%s1363_s9 + $0x50] sm:$0xff] }
  0x37   : > { %v642_v31 = vadd.f32 %v618_v26, %v564_v18  ;;  %v683_v35 = vadd.f32 %v675_v25, %v662_v62  ;;  %v732_v36 = vrot.slane %v698_v63, 1  ;;  %v733_v37 = vrot.slane %v699_v28, 1  ;;  %v472_v18 = vld [vmem:[%s1375_s11 + $0x48] sm:$0x1]  ;;  %v473_v23 = vld [vmem:[%s1375_s11 + $0x50] sm:$0xff] }
  0x38   : > { %v735_v40 = vrot.slane %v700_v29, 1  ;;  %v736_v33 = vrot.slane %v701_v30, 1  ;;  %v794_v44 = vmul.f32 %v1525_v58, %v457_v4  ;;  %v795_v48 = vmul.f32 %v1525_v58, %v458_v5  ;;  %v515_v29 = vld [vmem:[%s1396_s15 + $0x40] sm:$0xff] }
  0x39   : > { %v663_v41 = vadd.f32 %v655_v38, %v642_v31  ;;  %v817_v49 = vmul.f32 %v1533_v3, %v424_v42  ;;  %v734_v55 = vsel %vm606_vm0, %v732_v36, %v733_v37  ;;  %v818_v60 = vmul.f32 %v1533_v3, %v425_v43 }
  0x3a   : > { %v737_v59 = vsel %vm606_vm0, %v735_v40, %v736_v33  ;;  %v819_v1 = vmul.f32 %v1533_v3, %v1594_v10  ;;  %v760_v6 = vadd.f32 %v734_v55, %v683_v35  ;;  %v820_v5 = vmul.f32 %v1533_v3, %v427_v51  ;;  %v471_v51 = vld [vmem:[%s1375_s11 + $0x40] sm:$0xff] }
  0x3b   : > { %v684_v4 = vadd.f32 %v676_v46, %v663_v41  ;;  %v851_v42 = vrot.slane %v817_v49, 1  ;;  %v852_v9 = vrot.slane %v818_v60, 1  ;;  %v410_v7 = vmul.f32 %v1365_v19, %v390_v53  ;;  %v474_v46 = vld [vmem:[%s1375_s11 + $0x58] sm:$0x1] }
  0x3c   : > { %v854_v11 = vrot.slane %v819_v1, 1  ;;  %v1634_v43 = vmul.f32 %v1365_v19, %v391_v54  ;;  %v781_v13 = vadd.f32 %v773_v39, %v760_v6  ;;  %v855_v14 = vrot.slane %v820_v5, 1  ;;  %v516_v39 = vld [vmem:[%s1396_s15 + $0x50] sm:$0xff] }
  0x3d   : > { %v761_v12 = vadd.f32 %v737_v59, %v684_v4  ;;  %v412_v15 = vmul.f32 %v1365_v19, %v392_v22  ;;  %v620_v57 = vrot.slane %v1605_v45, 1  ;;  %v853_v32 = vsel %vm606_vm0, %v851_v42, %v852_v9 }
  0x3e   : > { %v1643_v17 = vmul.f32 %v1365_v19, %v393_v8  ;;  %v1645_v0 = vmax.f32 %v410_v7, 0.0  ;;  %v802_v25 = vadd.f32 %v794_v44, %v781_v13  ;;  %v856_v38 = vsel %vm606_vm0, %v854_v11, %v855_v14 }
  0x3f   : > { %v782_v24 = vadd.f32 %v774_v21, %v761_v12  ;;  %v429_v62 = vmax.f32 %v1634_v43, 0.0  ;;  %v1652_v63 = vmax.f32 %v412_v15, 0.0  ;;  %v1655_v45 = vmul.f32 %v441_v16, %v1365_v19 }
  0x40   : > { %v1658_v26 = vmul.f32 %v442_v47, %v1365_v19  ;;  %v487_v28 = vmul.f32 %v471_v51, %v1365_v19  ;;  %v879_v31 = vadd.f32 %v853_v32, %v802_v25  ;;  %v488_v35 = vmul.f32 %v472_v18, %v1365_v19 }
  0x41   : > { %v803_v30 = vadd.f32 %v795_v48, %v782_v24  ;;  %v489_v36 = vmul.f32 %v473_v23, %v1365_v19  ;;  %v431_v37 = vmax.f32 %v1643_v17, 0.0  ;;  %v459_v40 = vmax.f32 %v1655_v45, 0.0  ;;  %v443_v17 = vld [vmem:[%s1363_s9 + $0x70] sm:$0xff] }
  0x42   : > { %v460_v33 = vmax.f32 %v1658_v26, 0.0  ;;  %v490_v21 = vmul.f32 %v474_v46, %v1365_v19  ;;  %v503_v44 = vmax.f32 %v487_v28, 0.0  ;;  %v504_v49 = vmax.f32 %v488_v35, 0.0 }
  0x43   : > { %v880_v41 = vadd.f32 %v856_v38, %v803_v30  ;;  %v523_v53 = vmul.f32 %v515_v29, %v1365_v19  ;;  %v505_v48 = vmax.f32 %v489_v36, 0.0  ;;  %v524_v54 = vmul.f32 %v516_v39, %v1365_v19 }
  0x44   : > { %v544_v55 = vmul.f32 %v1435_v56, %v1594_v10  ;;  %v545_v59 = vmul.f32 %v1435_v56, %v1645_v0  ;;  %v506_v1 = vmax.f32 %v490_v21, 0.0  ;;  %v546_v22 = vmul.f32 %v1435_v56, %v1652_v63 }
  0x45   : > { %v886_v60 = vpack.c.bf16 %v880_v41, %v879_v31  ;;  %v558_v4 = vmul.f32 %v1446_v61, %v459_v40  ;;  %v531_v6 = vmax.f32 %v523_v53, 0.0  ;;  %v532_v5 = vmax.f32 %v524_v54, 0.0 }
  0x46   : > { %v559_v42 = vmul.f32 %v1446_v61, %v460_v33  ;;  %v582_v8 = vmul.f32 %v1455_v2, %v1594_v10  ;;  %v565_v9 = vadd.f32 %v1602_v50, %v544_v55  ;;  %v584_v11 = vmul.f32 %v1455_v2, %v1645_v0  ;;  %v394_v55 = vld [vmem:[%s1357_s26 + $0x70] sm:$0xff] }
  0x47   : > { %1198 = vmatmul.mubr.bf16.vlgmr.msra.gmra.mxu0 %v886_v60  ;;  %v585_v7 = vmul.f32 %v1455_v2, %v429_v62  ;;  %v586_v12 = vmul.f32 %v1455_v2, %v1652_v63  ;;  %v566_v13 = vadd.f32 %v558_v4, %v545_v59  ;;  %v587_v15 = vmul.f32 %v1455_v2, %v431_v37  ;;  %v395_v59 = vld [vmem:[%s1357_s26 + $0x78] sm:$0x1] }
  0x48   : > { %v567_v14 = vadd.f32 %v559_v42, %v546_v22  ;;  %v619_v10 = vrot.slane %v582_v8, 1  ;;  %v622_v16 = vrot.slane %v584_v11, 1  ;;  %v656_v51 = vmul.f32 %v1484_v20, %v503_v44 }
  0x49   : > { %v623_v47 = vrot.slane %v585_v7, 1  ;;  %v625_v50 = vrot.slane %v586_v12, 1  ;;  %v626_v18 = vrot.slane %v587_v15, 1  ;;  %v657_v23 = vmul.f32 %v1484_v20, %v505_v48 }
  0x4a   : > { %v621_v32 = vsel %vm606_vm0, %v619_v10, %v620_v57  ;;  %v677_v24 = vmul.f32 %v1494_v27, %v531_v6  ;;  %v702_v46 = vmul.f32 %v1501_v34, %v503_v44  ;;  %v703_v45 = vmul.f32 %v1501_v34, %v504_v49  ;;  %v476_v10 = vld [vmem:[%s1375_s11 + $0x68] sm:$0x1] }
  0x4b   : > { %v624_v25 = vsel %vm606_vm0, %v622_v16, %v623_v47  ;;  %v643_v38 = vadd.f32 %v621_v32, %v565_v9  ;;  %v678_v28 = vmul.f32 %v1494_v27, %v532_v5  ;;  %v704_v29 = vmul.f32 %v1501_v34, %v505_v48  ;;  %v396_v9 = vld [vmem:[%s1357_s26 + $0x80] sm:$0xff]  ;;  %v477_v32 = vld [vmem:[%s1375_s11 + $0x70] sm:$0xff] }
  0x4c   : > { %v644_v26 = vadd.f32 %v624_v25, %v566_v13  ;;  %v705_v57 = vmul.f32 %v1501_v34, %v506_v1  ;;  %v627_v30 = vsel %vm606_vm0, %v625_v50, %v626_v18  ;;  %v738_v35 = vrot.slane %v702_v46, 1  ;;  %v478_v18 = vld [vmem:[%s1375_s11 + $0x78] sm:$0x1] }
  0x4d   : > { %v664_v31 = vadd.f32 %v656_v51, %v643_v38  ;;  %v739_v36 = vrot.slane %v703_v45, 1  ;;  %v741_v21 = vrot.slane %v704_v29, 1  ;;  %v775_v44 = vmul.f32 %v1515_v52, %v1645_v0  ;;  %v517_v38 = vld [vmem:[%s1396_s15 + $0x60] sm:$0xff]  ;;  %v518_v29 = vld [vmem:[%s1396_s15 + $0x70] sm:$0xff] }
  0x4e   : > { %v665_v39 = vadd.f32 %v657_v23, %v644_v26  ;;  %v742_v41 = vrot.slane %v705_v57, 1  ;;  %v776_v48 = vmul.f32 %v1515_v52, %v1652_v63  ;;  %v796_v54 = vmul.f32 %v1525_v58, %v459_v40 }
  0x4f   : > { %v685_v49 = vadd.f32 %v677_v24, %v664_v31  ;;  %v740_v53 = vsel %vm606_vm0, %v738_v35, %v739_v36  ;;  %v797_v22 = vmul.f32 %v1525_v58, %v460_v33  ;;  %v821_v4 = vmul.f32 %v1533_v3, %v1645_v0 }
  0x50   : > { %v686_v60 = vadd.f32 %v678_v28, %v665_v39  ;;  %v743_v1 = vsel %vm606_vm0, %v741_v21, %v742_v41  ;;  %v822_v5 = vmul.f32 %v1533_v3, %v429_v62  ;;  %v823_v40 = vmul.f32 %v1533_v3, %v1652_v63  ;;  %v397_v63 = vld [vmem:[%s1357_s26 + $0x88] sm:$0x1]  ;;  %s1157_s26 = sshll.u32 %s1318_s21, 3 }
  0x51   : > { %v762_v6 = vadd.f32 %v740_v53, %v685_v49  ;;  %v824_v42 = vmul.f32 %v1533_v3, %v431_v37  ;;  %v857_v33 = vrot.slane %v821_v4, 1  ;;  %v414_v11 = vmul.f32 %v1365_v19, %v394_v55  ;;  %v475_v37 = vld [vmem:[%s1375_s11 + $0x60] sm:$0xff]  ;;  %s1782_s15 = scalar_lea.vmem %s1802_s8, %s1157_s26 }
  0x52   : > { %v763_v8 = vadd.f32 %v743_v1, %v686_v60  ;;  %v1726_v0 = vmul.f32 %v1365_v19, %v395_v59  ;;  %v858_v62 = vrot.slane %v822_v5, 1  ;;  %v860_v7 = vrot.slane %v823_v40, 1 }
  0x53   : > { %v783_v43 = vadd.f32 %v775_v44, %v762_v6  ;;  %v861_v12 = vrot.slane %v824_v42, 1  ;;  %v645_v13 = vadd.f32 %v627_v30, %v567_v14  ;;  %v1735_v51 = vmul.f32 %v1365_v19, %v396_v9 }
  0x54   : > { %v784_v15 = vadd.f32 %v776_v48, %v763_v8  ;;  %v859_v47 = vsel %vm606_vm0, %v857_v33, %v858_v62  ;;  %v417_v24 = vmul.f32 %v1365_v19, %v397_v63  ;;  %v432_v25 = vmax.f32 %v414_v11, 0.0 }
  0x55   : > { %v804_v16 = vadd.f32 %v796_v54, %v783_v43  ;;  %v862_v50 = vsel %vm606_vm0, %v860_v7, %v861_v12  ;;  %v452_v14 = vmul.f32 %v443_v17, %v1365_v19  ;;  %v433_v45 = vmax.f32 %v1726_v0, 0.0  ;;  %v444_v54 = vld [vmem:[%s1363_s9 + $0x80] sm:$0xff] }
  0x56   : > { %v805_v23 = vadd.f32 %v797_v22, %v784_v15  ;;  %v491_v26 = vmul.f32 %v475_v37, %v1365_v19  ;;  %v492_v28 = vmul.f32 %v476_v10, %v1365_v19  ;;  %v493_v31 = vmul.f32 %v477_v32, %v1365_v19 }
  0x57   : > { %v881_v46 = vadd.f32 %v859_v47, %v804_v16  ;;  %v461_v30 = vmax.f32 %v452_v14, 0.0  ;;  %v494_v35 = vmul.f32 %v478_v18, %v1365_v19  ;;  %v434_v36 = vmax.f32 %v1735_v51, 0.0 }
  0x58   : > { %v882_v57 = vadd.f32 %v862_v50, %v805_v23  ;;  %v507_v39 = vmax.f32 %v491_v26, 0.0  ;;  %v508_v21 = vmax.f32 %v492_v28, 0.0  ;;  %v525_v41 = vmul.f32 %v517_v38, %v1365_v19 }
  0x59   : > { %v509_v49 = vmax.f32 %v493_v31, 0.0  ;;  %v510_v53 = vmax.f32 %v494_v35, 0.0  ;;  %v526_v48 = vmul.f32 %v518_v29, %v1365_v19  ;;  %v547_v59 = vmul.f32 %v1435_v56, %v432_v25 }
  0x5a   : > { %v887_v44 = vpack.c.bf16 %v882_v57, %v881_v46  ;;  %v533_v55 = vmax.f32 %v525_v41, 0.0  ;;  %v560_v60 = vmul.f32 %v1446_v61, %v461_v30  ;;  %v588_v1 = vmul.f32 %v1455_v2, %v432_v25 }
  0x5b   : > { %v435_v22 = vmax.f32 %v417_v24, 0.0  ;;  %v534_v4 = vmax.f32 %v526_v48, 0.0  ;;  %v589_v6 = vmul.f32 %v1455_v2, %v433_v45  ;;  %v658_v5 = vmul.f32 %v1484_v20, %v507_v39 }
  0x5c   : > { %1201 = vmatprep.mubr.bf16.mxu1 %v887_v44  ;;  %v568_v40 = vadd.f32 %v560_v60, %v547_v59  ;;  %v628_v42 = vrot.slane %v588_v1, 1  ;;  %v679_v8 = vmul.f32 %v1494_v27, %v533_v55  ;;  %v706_v33 = vmul.f32 %v1501_v34, %v507_v39 }
  0x5d   : > { %v453_v9 = vmul.f32 %v444_v54, %v1365_v19  ;;  %v629_v56 = vrot.slane %v589_v6, 1  ;;  %v666_v11 = vadd.f32 %v658_v5, %v645_v13  ;;  %v707_v61 = vmul.f32 %v1501_v34, %v508_v21 }
  0x5e   : > { %v659_v0 = vmul.f32 %v1484_v20, %v509_v49  ;;  %v708_v43 = vmul.f32 %v1501_v34, %v509_v49  ;;  %v709_v2 = vmul.f32 %v1501_v34, %v510_v53  ;;  %v744_v62 = vrot.slane %v706_v33, 1 }
  0x5f   : > { %v630_v7 = vsel %vm606_vm0, %v628_v42, %v629_v56  ;;  %v680_v12 = vmul.f32 %v1494_v27, %v534_v4  ;;  %v687_v63 = vadd.f32 %v679_v8, %v666_v11  ;;  %v745_v17 = vrot.slane %v707_v61, 1 }
  0x60   : > { %v646_v15 = vadd.f32 %v630_v7, %v568_v40  ;;  %v747_v37 = vrot.slane %v708_v43, 1  ;;  %v748_v19 = vrot.slane %v709_v2, 1  ;;  %v777_v13 = vmul.f32 %v1515_v52, %v432_v25 }
  0x61   : > { %v462_v10 = vmax.f32 %v453_v9, 0.0  ;;  %v746_v16 = vsel %vm606_vm0, %v744_v62, %v745_v17  ;;  %v825_v20 = vmul.f32 %v1533_v3, %v432_v25  ;;  %v826_v47 = vmul.f32 %v1533_v3, %v433_v45 }
  0x62   : > { %v667_v34 = vadd.f32 %v659_v0, %v646_v15  ;;  %v764_v50 = vadd.f32 %v746_v16, %v687_v63  ;;  %v798_v51 = vmul.f32 %v1525_v58, %v461_v30  ;;  %v827_v27 = vmul.f32 %v1533_v3, %v434_v36 }
  0x63   : > { %v749_v32 = vsel %vm606_vm0, %v747_v37, %v748_v19  ;;  %v828_v18 = vmul.f32 %v1533_v3, %v435_v22  ;;  %v863_v23 = vrot.slane %v825_v20, 1  ;;  %v864_v24 = vrot.slane %v826_v47, 1 }
  0x64   : > { %v688_v14 = vadd.f32 %v680_v12, %v667_v34  ;;  %v778_v38 = vmul.f32 %v1515_v52, %v434_v36  ;;  %v785_v46 = vadd.f32 %v777_v13, %v764_v50  ;;  %v866_v25 = vrot.slane %v827_v27, 1 }
  0x65   : > { %v867_v26 = vrot.slane %v828_v18, 1  ;;  %v799_v28 = vmul.f32 %v1525_v58, %v462_v10  ;;  %v865_v57 = vsel %vm606_vm0, %v863_v23, %v864_v24  ;;  %v1239_v52 = vmov 0.0  }
  0x66   : > { %v765_v45 = vadd.f32 %v749_v32, %v688_v14  ;;  %v806_v29 = vadd.f32 %v798_v51, %v785_v46  ;;  %1022 = vst [vmem:[%s1782_s15 + $0x2] sm:$0x3f] %v1239_v52 }
  0x67   : > { %v868_v31 = vsel %vm606_vm0, %v866_v25, %v867_v26 }
  0x68   : > { %v786_v30 = vadd.f32 %v778_v38, %v765_v45  ;;  %v883_v35 = vadd.f32 %v865_v57, %v806_v29 }
  0x6a   : > { %v807_v3 = vadd.f32 %v799_v28, %v786_v30 }
  0x6c   : > { %v884_v39 = vadd.f32 %v868_v31, %v807_v3 }
  0x6e   : > { %v888_v21 = vpack.c.bf16 %v884_v39, %v883_v35 }
  0x70   : > { %1202 = vmatmul.mubr.bf16.vlgmr.msra.gmra.mxu1 %v888_v21 }
 0x107   : > { %v1199_v58 = vpop.f32.mrf.mxu0 }
 0x108   : > { %980 = vst [vmem:[%s373_s22 + $0x10] sm:$0xff] %v1199_v58  ;;  %v1002_v55 = vmul.f32 %v1199_v58, %v1199_v58 }
 0x109   : > { %v947_v36 = vpop.f32.mrf.mxu0 }
 0x10a   : > { %978 = vst [vmem:[%s373_s22] sm:$0xff] %v947_v36  ;;  %v1000_v53 = vmul.f32 %v947_v36, %v947_v36 }
 0x10b   : > { %v1200_v41 = vpop.f32.mrf.mxu0 }
 0x10c   : > { %981 = vst [vmem:[%s373_s22 + $0x18] sm:$0xff] %v1200_v41  ;;  %v1003_v1 = vmul.f32 %v1200_v41, %v1200_v41 }
 0x10d   : > { %v950_v44 = vpop.f32.mrf.mxu0 }
 0x10e   : > { %979 = vst [vmem:[%s373_s22 + $0x8] sm:$0xff] %v950_v44  ;;  %v1001_v49 = vmul.f32 %v950_v44, %v950_v44  ;;  %v986_v48 = vadd.f32 %v950_v44, %v947_v36 }
 0x110   : > { %v1008_v54 = vadd.f32 %v1001_v49, %v1000_v53  ;;  %v987_v59 = vadd.f32 %v1199_v58, %v986_v48 }
 0x112   : > { %v1009_v60 = vadd.f32 %v1008_v54, %v1002_v55  ;;  %v988_v22 = vadd.f32 %v1200_v41, %v987_v59 }
 0x114   : > { %v1010_v6 = vadd.f32 %v1009_v60, %v1003_v1 }
 0x130   : > { %v1203_v4 = vpop.f32.mrf.mxu1 }
 0x131   : > { %984 = vst [vmem:[%s373_s22 + $0x30] sm:$0xff] %v1203_v4  ;;  %v1006_v61 = vmul.f32 %v1203_v4, %v1203_v4 }
 0x132   : > { %v963_v5 = vpop.f32.mrf.mxu1 }
 0x133   : > { %982 = vst [vmem:[%s373_s22 + $0x20] sm:$0xff] %v963_v5  ;;  %v1004_v40 = vmul.f32 %v963_v5, %v963_v5  ;;  %v989_v42 = vadd.f32 %v988_v22, %v963_v5 }
 0x134   : > { %v1204_v8 = vpop.f32.mrf.mxu1 }
 0x135   : > { %985 = vst [vmem:[%s373_s22 + $0x38] sm:$0xff] %v1204_v8  ;;  %v1011_v33 = vadd.f32 %v1010_v6, %v1004_v40  ;;  %v1007_v2 = vmul.f32 %v1204_v8, %v1204_v8 }
 0x136   : > { %v966_v9 = vpop.f32.mrf.mxu1 }
 0x137   : > { %983 = vst [vmem:[%s373_s22 + $0x28] sm:$0xff] %v966_v9  ;;  %v990_v56 = vadd.f32 %v989_v42, %v966_v9  ;;  %v1005_v11 = vmul.f32 %v966_v9, %v966_v9 }
 0x139   : > { %v991_v0 = vadd.f32 %v1203_v4, %v990_v56  ;;  %v1012_v43 = vadd.f32 %v1011_v33, %v1005_v11 }
 0x13b   : > { %v992_v62 = vadd.f32 %v1204_v8, %v991_v0  ;;  %v1013_v7 = vadd.f32 %v1012_v43, %v1006_v61 }
 0x13d   : > { %v993_v12 = vrot.slane %v992_v62, 4  ;;  %v1014_v63 = vadd.f32 %v1013_v7, %v1007_v2 }
 0x13f   : > { %v994_v17 = vadd.f32 %v993_v12, %v992_v62  ;;  %v1015_v15 = vrot.slane %v1014_v63, 4 }
 0x141   : > { %v995_v37 = vrot.slane %v994_v17, 2  ;;  %v1016_v19 = vadd.f32 %v1015_v15, %v1014_v63 }
 0x143   : > { %v996_v13 = vadd.f32 %v995_v37, %v994_v17  ;;  %v1017_v10 = vrot.slane %v1016_v19, 2 }
 0x145   : > { %v997_v16 = vrot.slane %v996_v13, 1  ;;  %v1018_v20 = vadd.f32 %v1017_v10, %v1016_v19 }
 0x147   : > { %v998_v47 = vadd.f32 %v997_v16, %v996_v13  ;;  %v1019_v34 = vrot.slane %v1018_v20, 1 }
 0x149   : > { %999 = vst [vmem:[%s1782_s15] sm:$0x1] %v998_v47  ;;  %v1020_v50 = vadd.f32 %v1019_v34, %v1018_v20 }
 0x14b   : > { %1021 = vst [vmem:[%s1782_s15 + $0x1] sm:$0x1] %v1020_v50 }
 0x14c PF: > { %s20_s29 = sadd.s32 1, %s1237_s29  }
 0x14d   : > { %p17_p5 = scmp.ge.s32.totalorder %s20_s29, 4  }
 0x14f   :  { %19 = sbr.rel (!%p17_p5) target bundleno = 2 (0x2), region = 99 }

// kernel: a_call__.16
= control target key start
LH: loop header
LB: loop body
LE: loop exit
PB: predicated region body
PF: predicated region fallthrough
CT: control target
= control target key end

     0   :  { %s1169_s20 = smov 0   ;;  %s1675_s0 = inlined_call_operand.<no memory space> [shape: f32[1], index: 0, kind: input, shape index: {}]   ;;  %s1676_s1 = inlined_call_operand.vmem [shape: f32[2,10,10,128], index: 1, kind: input, shape index: {}]   ;;  %s1677_s2 = inlined_call_operand.vmem [shape: f32[9,128], index: 2, kind: input, shape index: {}]   ;;  %s1678_s3 = inlined_call_operand.vmem [shape: f32[128,128], index: 3, kind: input, shape index: {}]   ;;  %s1679_s4 = inlined_call_operand.vmem [shape: f32[128,128], index: 4, kind: output, shape index: {0}]   ;;  %s1680_s5 = inlined_call_operand.vmem [shape: f32[2,8,128], index: 5, kind: output, shape index: {1}]  }
   0x1   :  { %11 = sst [smem:[#allocation2]] %s1675_s0 }
   0x2 LB: > { %s1175_s21 = sadd.s32 4294967295, %s1133_s20   ;;  %p1049_p0 = scmp.ge.s32.totalorder %s1133_s20, 1  ;;  %s1133_s20 = sphi %s1169_s20, %s17_s20  }
   0x3   : > { %p191_p1 = scmp.lt.s32.totalorder %s1133_s20, 3 }
   0x5   : > { %p192_p2 = pnand %p1049_p0, %p191_p1 }
   0x6   : > { %p223_p3 = scmp.lt.s32.totalorder (!%p192_p2), %s1175_s21, 1  ;;  %s259_s27 = sld [smem:[#allocation2]] (!%p192_p2) }
   0x7   : > { %195 = sbr.rel (%p192_p2) target bundleno = 338 (0x152), region = 36 }
   0xc   : > { %v838_v0 = vld [vmem:[%s1678_s3 + $0x70] sm:$0xff]  ;;  %v839_v1 = vld [vmem:[%s1678_s3 + $0x78] sm:$0xff]  ;;  %v836_v2 = vld [vmem:[%s1678_s3 + $0x60] sm:$0xff]  ;;  %s1199_s9 = scalar_select %p223_p3, %s1175_s21, 1  ;;  %v1237_v19 = vstv %s259_s27  ;;  %vm351_vm0 = vcmask 1046528   ;;  %vm429_vm1 = vcmask 1045504  }
   0xd   : > { %v847_v3 = vpack.c.bf16 %v839_v1, %v838_v0  ;;  %v837_v4 = vld [vmem:[%s1678_s3 + $0x68] sm:$0xff]  ;;  %v834_v6 = vld [vmem:[%s1678_s3 + $0x50] sm:$0xff]  ;;  %v835_v7 = vld [vmem:[%s1678_s3 + $0x58] sm:$0xff] }
   0xe   : > { %v846_v5 = vpack.c.bf16 %v837_v4, %v836_v2  ;;  %v832_v8 = vld [vmem:[%s1678_s3 + $0x40] sm:$0xff]  ;;  %v833_v9 = vld [vmem:[%s1678_s3 + $0x48] sm:$0xff]  ;;  %v830_v10 = vld [vmem:[%s1678_s3 + $0x30] sm:$0xff]  ;;  %s1117_s0 = smul.u32 160, %s1199_s9  ;;  %v845_v14 = vpack.c.bf16 %v835_v7, %v834_v6  ;;  %s1053_s6 = sshll.u32 %s1199_s9, 3 }
   0xf   : > { %1077 = vmatprep.subr.bf16.mxu0 %v847_v3  ;;  %1101 = vmatprep.subr.bf16.mxu1 %v847_v3  ;;  %v831_v11 = vld [vmem:[%s1678_s3 + $0x38] sm:$0xff]  ;;  %v828_v12 = vld [vmem:[%s1678_s3 + $0x20] sm:$0xff]  ;;  %v829_v13 = vld [vmem:[%s1678_s3 + $0x28] sm:$0xff]  ;;  %v844_v20 = vpack.c.bf16 %v833_v9, %v832_v8  ;;  %s1663_s10 = scalar_lea.vmem %s1680_s5, %s1053_s6 }
  0x10   : > { %1078 = vmatpush3.bf16.msra.mxu0 %v847_v3  ;;  %1109 = vmatpush3.bf16.msra.mxu1 %v847_v3  ;;  %v826_v15 = vld [vmem:[%s1678_s3 + $0x10] sm:$0xff]  ;;  %v827_v16 = vld [vmem:[%s1678_s3 + $0x18] sm:$0xff]  ;;  %v824_v17 = vld [vmem:[%s1678_s3] sm:$0xff]  ;;  %s1235_s11 = scalar_lea.vmem %s1676_s1, %s1117_s0  ;;  %v1239_v21 = vpack.c.bf16 %v831_v11, %v830_v10  ;;  %v1241_v22 = vpack.c.bf16 %v829_v13, %v828_v12 }
  0x11   : > { %1079 = vmatprep.subr.bf16.mxu0 %v846_v5  ;;  %1102 = vmatprep.subr.bf16.mxu1 %v846_v5  ;;  %v825_v18 = vld [vmem:[%s1678_s3 + $0x8] sm:$0xff]  ;;  %v239_v23 = vld [vmem:[%s1235_s11] sm:$0xff]  ;;  %v241_v25 = vld [vmem:[%s1235_s11 + $0x10] sm:$0xff]  ;;  %v1267_v39 = vpack.c.bf16 %v827_v16, %v826_v15 }
  0x12   : > { %v240_v24 = vld [vmem:[%s1235_s11 + $0x8] sm:$0x3]  ;;  %v1249_v26 = vld [vmem:[%s1677_s2] ss:$0 sm:$0xff]  ;;  %v242_v27 = vld [vmem:[%s1235_s11 + $0x18] sm:$0x3]  ;;  %v261_v30 = vmul.f32 %v1237_v19, %v239_v23  ;;  %v263_v32 = vmul.f32 %v1237_v19, %v241_v25  ;;  %v1270_v43 = vpack.c.bf16 %v825_v18, %v824_v17 }
  0x13   : > { %v243_v28 = vld [vmem:[%s1235_s11 + $0x20] sm:$0xff]  ;;  %v244_v29 = vld [vmem:[%s1235_s11 + $0x28] sm:$0x3]  ;;  %v262_v31 = vmul.f32 %v1237_v19, %v240_v24  ;;  %v245_v33 = vld [vmem:[%s1235_s11 + $0x30] sm:$0xff]  ;;  %v264_v35 = vmul.f32 %v1237_v19, %v242_v27 }
  0x14   : > { %1080 = vmatpush3.bf16.msra.mxu0 %v846_v5  ;;  %1110 = vmatpush3.bf16.msra.mxu1 %v846_v5  ;;  %v246_v34 = vld [vmem:[%s1235_s11 + $0x38] sm:$0x3]  ;;  %v265_v36 = vmul.f32 %v1237_v19, %v243_v28  ;;  %v266_v37 = vmul.f32 %v1237_v19, %v244_v29  ;;  %v1265_v38 = vld [vmem:[%s1677_s2 + $0x1] ss:$0 sm:$0xff]  ;;  %v267_v40 = vmul.f32 %v1237_v19, %v245_v33  ;;  %v281_v41 = vmax.f32 %v261_v30, 0.0 }
  0x15   : > { %1081 = vmatprep.subr.bf16.mxu0 %v845_v14  ;;  %1103 = vmatprep.subr.bf16.mxu1 %v845_v14  ;;  %v282_v42 = vmax.f32 %v262_v31, 0.0  ;;  %v1273_v44 = vmul.f32 %v1237_v19, %v246_v34  ;;  %v283_v45 = vmax.f32 %v263_v32, 0.0  ;;  %v284_v46 = vmax.f32 %v264_v35, 0.0  ;;  %v1278_v47 = vld [vmem:[%s1677_s2 + $0x2] ss:$0 sm:$0xff] }
  0x16   : > { %v1280_v48 = vmax.f32 %v265_v36, 0.0  ;;  %v1282_v49 = vmax.f32 %v266_v37, 0.0  ;;  %v306_v50 = vmul.f32 %v1249_v26, %v281_v41  ;;  %v319_v51 = vmul.f32 %v1265_v38, %v281_v41  ;;  %v1294_v56 = vld [vmem:[%s1677_s2 + $0x3] ss:$0 sm:$0xff]  ;;  %v1304_v1 = vld [vmem:[%s1677_s2 + $0x4] ss:$0 sm:$0xff] }
  0x17   : > { %v1286_v52 = vmax.f32 %v267_v40, 0.0  ;;  %v307_v53 = vmul.f32 %v1249_v26, %v283_v45  ;;  %v320_v54 = vmul.f32 %v1265_v38, %v282_v42  ;;  %v321_v55 = vmul.f32 %v1265_v38, %v283_v45  ;;  %v1315_v10 = vld [vmem:[%s1677_s2 + $0x5] ss:$0 sm:$0xff]  ;;  %v1339_v34 = vld [vmem:[%s1677_s2 + $0x6] ss:$0 sm:$0xff] }
  0x18   : > { %1082 = vmatpush3.bf16.msra.mxu0 %v845_v14  ;;  %1111 = vmatpush3.bf16.msra.mxu1 %v845_v14  ;;  %v322_v57 = vmul.f32 %v1265_v38, %v284_v46  ;;  %v352_v58 = vrot.slane %v319_v51, 1  ;;  %v397_v59 = vmul.f32 %v1278_v47, %v281_v41  ;;  %v398_v60 = vmul.f32 %v1278_v47, %v282_v42  ;;  %v1345_v41 = vld [vmem:[%s1677_s2 + $0x7] ss:$0 sm:$0xff] }
  0x19   : > { %1083 = vmatprep.subr.bf16.mxu0 %v844_v20  ;;  %1104 = vmatprep.subr.bf16.mxu1 %v844_v20  ;;  %v353_v61 = vrot.slane %v320_v54, 1  ;;  %v355_v62 = vrot.slane %v321_v55, 1  ;;  %v399_v63 = vmul.f32 %v1278_v47, %v283_v45  ;;  %v400_v0 = vmul.f32 %v1278_v47, %v284_v46 }
  0x1a   : > { %v356_v2 = vrot.slane %v322_v57, 1  ;;  %v430_v3 = vrot.slane %v397_v59, 2  ;;  %v431_v4 = vrot.slane %v398_v60, 2  ;;  %v475_v5 = vmul.f32 %v1294_v56, %v283_v45 }
  0x1b   : > { %v354_v6 = vsel %vm351_vm0, %v352_v58, %v353_v61  ;;  %v433_v7 = vrot.slane %v399_v63, 2  ;;  %v434_v8 = vrot.slane %v400_v0, 2  ;;  %v476_v9 = vmul.f32 %v1294_v56, %v1280_v48 }
  0x1c   : > { %1084 = vmatpush3.bf16.msra.mxu0 %v844_v20  ;;  %1112 = vmatpush3.bf16.msra.mxu1 %v844_v20  ;;  %v357_v11 = vsel %vm351_vm0, %v355_v62, %v356_v2  ;;  %v384_v12 = vadd.f32 %v354_v6, %v306_v50  ;;  %v432_v13 = vsel %vm429_vm1, %v430_v3, %v431_v4  ;;  %v1353_v51 = vmax.f32 %v1273_v44, 0.0  ;;  %v248_v6 = vld [vmem:[%s1235_s11 + $0x48] sm:$0x3] }
  0x1d   : > { %1085 = vmatprep.subr.bf16.mxu0 %v1239_v21  ;;  %1105 = vmatprep.subr.bf16.mxu1 %v1239_v21  ;;  %v496_v14 = vmul.f32 %v1304_v1, %v283_v45  ;;  %v385_v15 = vadd.f32 %v357_v11, %v307_v53  ;;  %v435_v16 = vsel %vm429_vm1, %v433_v7, %v434_v8 }
  0x1e   : > { %v497_v17 = vmul.f32 %v1304_v1, %v284_v46  ;;  %v498_v18 = vmul.f32 %v1304_v1, %v1280_v48  ;;  %v462_v20 = vadd.f32 %v432_v13, %v384_v12  ;;  %v499_v23 = vmul.f32 %v1304_v1, %v1282_v49 }
  0x1f   : > { %v528_v24 = vrot.slane %v496_v14, 1  ;;  %v573_v25 = vmul.f32 %v1315_v10, %v283_v45  ;;  %v463_v27 = vadd.f32 %v435_v16, %v385_v15  ;;  %v574_v30 = vmul.f32 %v1315_v10, %v284_v46  ;;  %v249_v15 = vld [vmem:[%s1235_s11 + $0x50] sm:$0xff]  ;;  %v250_v16 = vld [vmem:[%s1235_s11 + $0x58] sm:$0x3] }
  0x20   : > { %1086 = vmatpush3.bf16.msra.mxu0 %v1239_v21  ;;  %1113 = vmatpush3.bf16.msra.mxu1 %v1239_v21  ;;  %v529_v28 = vrot.slane %v497_v17, 1  ;;  %v531_v29 = vrot.slane %v498_v18, 1  ;;  %v483_v31 = vadd.f32 %v475_v5, %v462_v20  ;;  %v532_v32 = vrot.slane %v499_v23, 1  ;;  %v247_v5 = vld [vmem:[%s1235_s11 + $0x40] sm:$0xff] }
  0x21   : > { %1087 = vmatprep.subr.bf16.mxu0 %v1241_v22  ;;  %1106 = vmatprep.subr.bf16.mxu1 %v1241_v22  ;;  %v575_v21 = vmul.f32 %v1315_v10, %v1280_v48  ;;  %v576_v33 = vmul.f32 %v1315_v10, %v1282_v49  ;;  %v484_v35 = vadd.f32 %v476_v9, %v463_v27  ;;  %v605_v37 = vrot.slane %v573_v25, 2 }
  0x22   : > { %v530_v36 = vsel %vm351_vm0, %v528_v24, %v529_v28  ;;  %v606_v40 = vrot.slane %v574_v30, 2  ;;  %v533_v42 = vsel %vm351_vm0, %v531_v29, %v532_v32  ;;  %v650_v55 = vmul.f32 %v1339_v34, %v1280_v48 }
  0x23   : > { %v560_v45 = vadd.f32 %v530_v36, %v483_v31  ;;  %v608_v46 = vrot.slane %v575_v21, 2  ;;  %v609_v50 = vrot.slane %v576_v33, 2  ;;  %v561_v53 = vadd.f32 %v533_v42, %v484_v35 }
  0x24   : > { %1088 = vmatpush3.bf16.msra.mxu0 %v1241_v22  ;;  %1114 = vmatpush3.bf16.msra.mxu1 %v1241_v22  ;;  %v607_v54 = vsel %vm429_vm1, %v605_v37, %v606_v40  ;;  %v1361_v22 = vld [vmem:[%s1677_s2 + $0x8] ss:$0 sm:$0xff]  ;;  %v651_v44 = vmul.f32 %v1339_v34, %v1286_v52  ;;  %v671_v59 = vmul.f32 %v1345_v41, %v1280_v48 }
  0x25   : > { %1089 = vmatprep.subr.bf16.mxu0 %v1267_v39  ;;  %1107 = vmatprep.subr.bf16.mxu1 %v1267_v39  ;;  %v610_v57 = vsel %vm429_vm1, %v608_v46, %v609_v50  ;;  %v637_v58 = vadd.f32 %v607_v54, %v560_v45  ;;  %v672_v61 = vmul.f32 %v1345_v41, %v1282_v49 }
  0x26   : > { %v638_v60 = vadd.f32 %v610_v57, %v561_v53  ;;  %v673_v62 = vmul.f32 %v1345_v41, %v1286_v52  ;;  %v674_v63 = vmul.f32 %v1345_v41, %v1353_v51  ;;  %v703_v2 = vrot.slane %v671_v59, 1 }
  0x27   : > { %v658_v0 = vadd.f32 %v650_v55, %v637_v58  ;;  %v748_v3 = vmul.f32 %v1361_v22, %v1280_v48  ;;  %v749_v4 = vmul.f32 %v1361_v22, %v1282_v49  ;;  %v704_v8 = vrot.slane %v672_v61, 1 }
  0x28   : > { %1090 = vmatpush3.bf16.msra.mxu0 %v1267_v39  ;;  %1115 = vmatpush3.bf16.msra.mxu1 %v1267_v39  ;;  %v659_v7 = vadd.f32 %v651_v44, %v638_v60  ;;  %v706_v9 = vrot.slane %v673_v62, 1  ;;  %v707_v39 = vrot.slane %v674_v63, 1  ;;  %v750_v11 = vmul.f32 %v1361_v22, %v1286_v52 }
  0x29   : > { %1091 = vmatprep.subr.bf16.mxu0 %v1270_v43  ;;  %1108 = vmatprep.subr.bf16.mxu1 %v1270_v43  ;;  %v751_v12 = vmul.f32 %v1361_v22, %v1353_v51  ;;  %v780_v13 = vrot.slane %v748_v3, 2  ;;  %v781_v14 = vrot.slane %v749_v4, 2  ;;  %v705_v17 = vsel %vm351_vm0, %v703_v2, %v704_v8 }
  0x2a   : > { %v708_v18 = vsel %vm351_vm0, %v706_v9, %v707_v39  ;;  %v269_v20 = vmul.f32 %v1237_v19, %v247_v5  ;;  %v270_v23 = vmul.f32 %v1237_v19, %v248_v6  ;;  %v735_v24 = vadd.f32 %v705_v17, %v658_v0 }
  0x2b   : > { %v736_v25 = vadd.f32 %v708_v18, %v659_v7  ;;  %v782_v27 = vsel %vm429_vm1, %v780_v13, %v781_v14  ;;  %v783_v28 = vrot.slane %v750_v11, 2  ;;  %v784_v29 = vrot.slane %v751_v12, 2 }
  0x2c   : > { %1092 = vmatpush3.bf16.msra.mxu0 %v1270_v43  ;;  %1116 = vmatpush3.bf16.msra.mxu1 %v1270_v43  ;;  %v271_v30 = vmul.f32 %v1237_v19, %v249_v15  ;;  %v272_v31 = vmul.f32 %v1237_v19, %v250_v16  ;;  %v1399_v32 = vmax.f32 %v269_v20, 0.0  ;;  %v812_v21 = vadd.f32 %v782_v27, %v735_v24 }
  0x2d   : > { %v1401_v33 = vmax.f32 %v270_v23, 0.0  ;;  %v308_v35 = vmul.f32 %v1249_v26, %v1280_v48  ;;  %v309_v43 = vmul.f32 %v1249_v26, %v1286_v52  ;;  %v785_v36 = vsel %vm429_vm1, %v783_v28, %v784_v29 }
  0x2e   : > { %v1408_v37 = vmax.f32 %v271_v30, 0.0  ;;  %v1410_v40 = vmax.f32 %v272_v31, 0.0  ;;  %v323_v42 = vmul.f32 %v1265_v38, %v1280_v48  ;;  %v813_v45 = vadd.f32 %v785_v36, %v736_v25 }
  0x2f   : > { %v324_v46 = vmul.f32 %v1265_v38, %v1282_v49  ;;  %v325_v50 = vmul.f32 %v1265_v38, %v1286_v52  ;;  %v326_v53 = vmul.f32 %v1265_v38, %v1353_v51  ;;  %v401_v55 = vmul.f32 %v1278_v47, %v1280_v48 }
  0x30   : > { %v358_v54 = vrot.slane %v323_v42, 1  ;;  %v402_v57 = vmul.f32 %v1278_v47, %v1282_v49  ;;  %v403_v58 = vmul.f32 %v1278_v47, %v1286_v52  ;;  %v820_v44 = vpack.c.bf16 %v813_v45, %v812_v21 }
  0x31   : > { %v359_v59 = vrot.slane %v324_v46, 1  ;;  %v361_v60 = vrot.slane %v325_v50, 1  ;;  %v362_v61 = vrot.slane %v326_v53, 1  ;;  %v404_v62 = vmul.f32 %v1278_v47, %v1353_v51 }
  0x32   : > { %v436_v63 = vrot.slane %v401_v55, 2  ;;  %v437_v0 = vrot.slane %v402_v57, 2  ;;  %v439_v2 = vrot.slane %v403_v58, 2  ;;  %1093 = vmatprep.mubr.bf16.mxu0 %v820_v44  ;;  %v477_v49 = vmul.f32 %v1294_v56, %v1286_v52 }
  0x33   : > { %v360_v3 = vsel %vm351_vm0, %v358_v54, %v359_v59  ;;  %v363_v48 = vsel %vm351_vm0, %v361_v60, %v362_v61  ;;  %v478_v4 = vmul.f32 %v1294_v56, %v1399_v32  ;;  %v440_v8 = vrot.slane %v404_v62, 2 }
  0x34   : > { %v386_v5 = vadd.f32 %v360_v3, %v308_v35  ;;  %v387_v6 = vadd.f32 %v363_v48, %v309_v43  ;;  %v438_v7 = vsel %vm429_vm1, %v436_v63, %v437_v0  ;;  %v500_v9 = vmul.f32 %v1304_v1, %v1286_v52  ;;  %v251_v0 = vld [vmem:[%s1235_s11 + $0x60] sm:$0xff] }
  0x35   : > { %v501_v39 = vmul.f32 %v1304_v1, %v1353_v51  ;;  %v502_v11 = vmul.f32 %v1304_v1, %v1399_v32  ;;  %v503_v12 = vmul.f32 %v1304_v1, %v1401_v33  ;;  %v441_v13 = vsel %vm429_vm1, %v439_v2, %v440_v8 }
  0x36   : > { %v464_v14 = vadd.f32 %v438_v7, %v386_v5  ;;  %v577_v15 = vmul.f32 %v1315_v10, %v1286_v52  ;;  %v578_v16 = vmul.f32 %v1315_v10, %v1353_v51  ;;  %v465_v17 = vadd.f32 %v441_v13, %v387_v6 }
  0x37   : > { %v534_v18 = vrot.slane %v500_v9, 1  ;;  %v535_v20 = vrot.slane %v501_v39, 1  ;;  %v537_v23 = vrot.slane %v502_v11, 1  ;;  %v538_v25 = vrot.slane %v503_v12, 1  ;;  %v253_v9 = vld [vmem:[%s1235_s11 + $0x70] sm:$0xff] }
  0x38   : > { %v485_v24 = vadd.f32 %v477_v49, %v464_v14  ;;  %v579_v27 = vmul.f32 %v1315_v10, %v1399_v32  ;;  %v580_v28 = vmul.f32 %v1315_v10, %v1401_v33  ;;  %v486_v29 = vadd.f32 %v478_v4, %v465_v17  ;;  %v252_v4 = vld [vmem:[%s1235_s11 + $0x68] sm:$0x3]  ;;  %v254_v39 = vld [vmem:[%s1235_s11 + $0x78] sm:$0x3] }
  0x39   : > { %v536_v30 = vsel %vm351_vm0, %v534_v18, %v535_v20  ;;  %v611_v31 = vrot.slane %v577_v15, 2  ;;  %v612_v52 = vrot.slane %v578_v16, 2  ;;  %v539_v21 = vsel %vm351_vm0, %v537_v23, %v538_v25 }
  0x3a   : > { %v562_v51 = vadd.f32 %v536_v30, %v485_v24  ;;  %v614_v35 = vrot.slane %v579_v27, 2  ;;  %v615_v43 = vrot.slane %v580_v28, 2  ;;  %v563_v36 = vadd.f32 %v539_v21, %v486_v29 }
  0x3b   : > { %v613_v42 = vsel %vm429_vm1, %v611_v31, %v612_v52  ;;  %v652_v45 = vmul.f32 %v1339_v34, %v1399_v32  ;;  %v653_v46 = vmul.f32 %v1339_v34, %v1408_v37  ;;  %v675_v54 = vmul.f32 %v1345_v41, %v1399_v32 }
  0x3c   : > { %v616_v50 = vsel %vm429_vm1, %v614_v35, %v615_v43  ;;  %v639_v53 = vadd.f32 %v613_v42, %v562_v51  ;;  %v676_v55 = vmul.f32 %v1345_v41, %v1401_v33  ;;  %v677_v58 = vmul.f32 %v1345_v41, %v1408_v37 }
  0x3d   : > { %v640_v57 = vadd.f32 %v616_v50, %v563_v36  ;;  %v678_v44 = vmul.f32 %v1345_v41, %v1410_v40  ;;  %v752_v59 = vmul.f32 %v1361_v22, %v1399_v32  ;;  %v709_v61 = vrot.slane %v675_v54, 1 }
  0x3e   : > { %v660_v60 = vadd.f32 %v652_v45, %v639_v53  ;;  %v710_v62 = vrot.slane %v676_v55, 1  ;;  %v753_v63 = vmul.f32 %v1361_v22, %v1401_v33  ;;  %v712_v3 = vrot.slane %v677_v58, 1 }
  0x3f   : > { %v661_v2 = vadd.f32 %v653_v46, %v640_v57  ;;  %v713_v48 = vrot.slane %v678_v44, 1  ;;  %v754_v49 = vmul.f32 %v1361_v22, %v1408_v37  ;;  %v755_v6 = vmul.f32 %v1361_v22, %v1410_v40 }
  0x40   : > { %v711_v5 = vsel %vm351_vm0, %v709_v61, %v710_v62  ;;  %v786_v7 = vrot.slane %v752_v59, 2  ;;  %v787_v8 = vrot.slane %v753_v63, 2  ;;  %v273_v14 = vmul.f32 %v1237_v19, %v251_v0 }
  0x41   : > { %v714_v11 = vsel %vm351_vm0, %v712_v3, %v713_v48  ;;  %v737_v12 = vadd.f32 %v711_v5, %v660_v60  ;;  %v789_v13 = vrot.slane %v754_v49, 2  ;;  %v790_v17 = vrot.slane %v755_v6, 2 }
  0x42   : > { %v738_v15 = vadd.f32 %v714_v11, %v661_v2  ;;  %v788_v16 = vsel %vm429_vm1, %v786_v7, %v787_v8  ;;  %v274_v18 = vmul.f32 %v1237_v19, %v252_v4  ;;  %v275_v23 = vmul.f32 %v1237_v19, %v253_v9 }
  0x43   : > { %v814_v20 = vadd.f32 %v788_v16, %v737_v12  ;;  %v276_v24 = vmul.f32 %v1237_v19, %v254_v39  ;;  %v1487_v25 = vmax.f32 %v273_v14, 0.0  ;;  %v791_v27 = vsel %vm429_vm1, %v789_v13, %v790_v17 }
  0x44   : > { %v1490_v28 = vmax.f32 %v274_v18, 0.0  ;;  %v310_v29 = vmul.f32 %v1249_v26, %v1399_v32  ;;  %v311_v30 = vmul.f32 %v1249_v26, %v1408_v37  ;;  %v815_v31 = vadd.f32 %v791_v27, %v738_v15 }
  0x45   : > { %v1496_v52 = vmax.f32 %v275_v23, 0.0  ;;  %v1498_v21 = vmax.f32 %v276_v24, 0.0  ;;  %v327_v51 = vmul.f32 %v1265_v38, %v1399_v32  ;;  %v328_v35 = vmul.f32 %v1265_v38, %v1401_v33 }
  0x46   : > { %v329_v43 = vmul.f32 %v1265_v38, %v1408_v37  ;;  %v330_v36 = vmul.f32 %v1265_v38, %v1410_v40  ;;  %v405_v42 = vmul.f32 %v1278_v47, %v1399_v32  ;;  %v821_v45 = vpack.c.bf16 %v815_v31, %v814_v20 }
  0x47   : > { %v364_v46 = vrot.slane %v327_v51, 1  ;;  %v406_v50 = vmul.f32 %v1278_v47, %v1401_v33  ;;  %v407_v53 = vmul.f32 %v1278_v47, %v1408_v37  ;;  %v365_v54 = vrot.slane %v328_v35, 1 }
  0x48   : > { %v367_v55 = vrot.slane %v329_v43, 1  ;;  %v368_v57 = vrot.slane %v330_v36, 1  ;;  %v408_v58 = vmul.f32 %v1278_v47, %v1410_v40  ;;  %1094 = vmatmul.mubr.bf16.vlgmr.msra.gmra.mxu0 %v821_v45  ;;  %v442_v44 = vrot.slane %v405_v42, 2 }
  0x49   : > { %v443_v59 = vrot.slane %v406_v50, 2  ;;  %v445_v60 = vrot.slane %v407_v53, 2  ;;  %v479_v32 = vmul.f32 %v1294_v56, %v1408_v37  ;;  %v366_v61 = vsel %vm351_vm0, %v364_v46, %v365_v54 }
  0x4a   : > { %v369_v33 = vsel %vm351_vm0, %v367_v55, %v368_v57  ;;  %v446_v62 = vrot.slane %v408_v58, 2  ;;  %v480_v63 = vmul.f32 %v1294_v56, %v1487_v25  ;;  %v388_v0 = vadd.f32 %v366_v61, %v310_v29  ;;  %v255_v57 = vld [vmem:[%s1235_s11 + $0x80] sm:$0xff] }
  0x4b   : > { %v389_v2 = vadd.f32 %v369_v33, %v311_v30  ;;  %v444_v3 = vsel %vm429_vm1, %v442_v44, %v443_v59  ;;  %v504_v48 = vmul.f32 %v1304_v1, %v1408_v37  ;;  %v505_v4 = vmul.f32 %v1304_v1, %v1410_v40 }
  0x4c   : > { %v447_v49 = vsel %vm429_vm1, %v445_v60, %v446_v62  ;;  %v506_v5 = vmul.f32 %v1304_v1, %v1487_v25  ;;  %v507_v6 = vmul.f32 %v1304_v1, %v1490_v28  ;;  %v466_v7 = vadd.f32 %v444_v3, %v388_v0  ;;  %v257_v0 = vld [vmem:[%s1235_s11 + $0x90] sm:$0xff] }
  0x4d   : > { %v467_v8 = vadd.f32 %v447_v49, %v389_v2  ;;  %v540_v9 = vrot.slane %v504_v48, 1  ;;  %v581_v39 = vmul.f32 %v1315_v10, %v1408_v37  ;;  %v541_v11 = vrot.slane %v505_v4, 1  ;;  %v258_v49 = vld [vmem:[%s1235_s11 + $0x98] sm:$0x3] }
  0x4e   : > { %v543_v12 = vrot.slane %v506_v5, 1  ;;  %v544_v13 = vrot.slane %v507_v6, 1  ;;  %v582_v14 = vmul.f32 %v1315_v10, %v1410_v40  ;;  %v487_v15 = vadd.f32 %v479_v32, %v466_v7 }
  0x4f   : > { %v488_v16 = vadd.f32 %v480_v63, %v467_v8  ;;  %v583_v17 = vmul.f32 %v1315_v10, %v1487_v25  ;;  %v584_v18 = vmul.f32 %v1315_v10, %v1490_v28  ;;  %v542_v20 = vsel %vm351_vm0, %v540_v9, %v541_v11  ;;  %v256_v63 = vld [vmem:[%s1235_s11 + $0x88] sm:$0x3]  ;;  %s1051_s11 = sshll.u32 %s1175_s21, 3 }
  0x50   : > { %v545_v23 = vsel %vm351_vm0, %v543_v12, %v544_v13  ;;  %v617_v24 = vrot.slane %v581_v39, 2  ;;  %v618_v37 = vrot.slane %v582_v14, 2  ;;  %v564_v27 = vadd.f32 %v542_v20, %v487_v15  ;;  %p229_p4 = scmp.lt.s32.totalorder %s1051_s11, 15 }
  0x51   : > { %v565_v29 = vadd.f32 %v545_v23, %v488_v16  ;;  %v620_v30 = vrot.slane %v583_v17, 2  ;;  %v621_v31 = vrot.slane %v584_v18, 2  ;;  %v654_v51 = vmul.f32 %v1339_v34, %v1487_v25 }
  0x52   : > { %v619_v40 = vsel %vm429_vm1, %v617_v24, %v618_v37  ;;  %v655_v35 = vmul.f32 %v1339_v34, %v1496_v52  ;;  %v679_v43 = vmul.f32 %v1345_v41, %v1487_v25  ;;  %v680_v45 = vmul.f32 %v1345_v41, %v1490_v28  ;;  %s1682_s11 = smov (!%p229_p4, %s1051_s11), 15 }
  0x53   : > { %v622_v36 = vsel %vm429_vm1, %v620_v30, %v621_v31  ;;  %v641_v42 = vadd.f32 %v619_v40, %v564_v27  ;;  %v681_v46 = vmul.f32 %v1345_v41, %v1496_v52  ;;  %v682_v53 = vmul.f32 %v1345_v41, %v1498_v21  ;;  %s1052_s12 = sshll.u32 %s1682_s11, 3 }
  0x54   : > { %v642_v50 = vadd.f32 %v622_v36, %v565_v29  ;;  %v715_v54 = vrot.slane %v679_v43, 1  ;;  %v756_v55 = vmul.f32 %v1361_v22, %v1487_v25  ;;  %v716_v44 = vrot.slane %v680_v45, 1  ;;  %s232_s14 = scalar_lea.vmem %s1679_s4, %s1052_s12 }
  0x55   : > { %v662_v58 = vadd.f32 %v654_v51, %v641_v42  ;;  %v718_v59 = vrot.slane %v681_v46, 1  ;;  %v757_v60 = vmul.f32 %v1361_v22, %v1490_v28  ;;  %v719_v61 = vrot.slane %v682_v53, 1 }
  0x56   : > { %v663_v32 = vadd.f32 %v655_v35, %v642_v50  ;;  %v758_v33 = vmul.f32 %v1361_v22, %v1496_v52  ;;  %v759_v62 = vmul.f32 %v1361_v22, %v1498_v21  ;;  %v717_v2 = vsel %vm351_vm0, %v715_v54, %v716_v44 }
  0x57   : > { %v792_v3 = vrot.slane %v756_v55, 2  ;;  %v793_v48 = vrot.slane %v757_v60, 2  ;;  %v277_v4 = vmul.f32 %v1237_v19, %v255_v57  ;;  %v720_v5 = vsel %vm351_vm0, %v718_v59, %v719_v61 }
  0x58   : > { %v739_v6 = vadd.f32 %v717_v2, %v662_v58  ;;  %v795_v7 = vrot.slane %v758_v33, 2  ;;  %v796_v8 = vrot.slane %v759_v62, 2  ;;  %v740_v9 = vadd.f32 %v720_v5, %v663_v32 }
  0x59   : > { %v794_v39 = vsel %vm429_vm1, %v792_v3, %v793_v48  ;;  %v278_v11 = vmul.f32 %v1237_v19, %v256_v63  ;;  %v279_v12 = vmul.f32 %v1237_v19, %v257_v0  ;;  %v1576_v15 = vmul.f32 %v1237_v19, %v258_v49 }
  0x5a   : > { %v797_v13 = vsel %vm429_vm1, %v795_v7, %v796_v8  ;;  %v816_v14 = vadd.f32 %v794_v39, %v739_v6  ;;  %v1578_v16 = vmax.f32 %v277_v4, 0.0  ;;  %v312_v23 = vmul.f32 %v1249_v26, %v1487_v25 }
  0x5b   : > { %v817_v17 = vadd.f32 %v797_v13, %v740_v9  ;;  %v1580_v18 = vmax.f32 %v278_v11, 0.0  ;;  %v1582_v20 = vmax.f32 %v279_v12, 0.0  ;;  %v300_v24 = vmax.f32 %v1576_v15, 0.0 }
  0x5c   : > { %v313_v37 = vmul.f32 %v1249_v26, %v1496_v52  ;;  %v331_v27 = vmul.f32 %v1265_v38, %v1487_v25  ;;  %v332_v19 = vmul.f32 %v1265_v38, %v1490_v28  ;;  %v333_v30 = vmul.f32 %v1265_v38, %v1496_v52 }
  0x5d   : > { %v822_v29 = vpack.c.bf16 %v817_v17, %v816_v14  ;;  %v334_v31 = vmul.f32 %v1265_v38, %v1498_v21  ;;  %v409_v40 = vmul.f32 %v1278_v47, %v1487_v25  ;;  %v410_v26 = vmul.f32 %v1278_v47, %v1490_v28 }
  0x5e   : > { %v370_v51 = vrot.slane %v331_v27, 1  ;;  %v371_v35 = vrot.slane %v332_v19, 1  ;;  %v411_v43 = vmul.f32 %v1278_v47, %v1496_v52  ;;  %v373_v36 = vrot.slane %v333_v30, 1 }
  0x5f   : > { %1097 = vmatprep.mubr.bf16.mxu1 %v822_v29  ;;  %v374_v42 = vrot.slane %v334_v31, 1  ;;  %v412_v45 = vmul.f32 %v1278_v47, %v1498_v21  ;;  %v448_v46 = vrot.slane %v409_v40, 2  ;;  %v449_v50 = vrot.slane %v410_v26, 2 }
  0x60   : > { %v372_v38 = vsel %vm351_vm0, %v370_v51, %v371_v35  ;;  %v451_v53 = vrot.slane %v411_v43, 2  ;;  %v481_v25 = vmul.f32 %v1294_v56, %v1496_v52  ;;  %v482_v57 = vmul.f32 %v1294_v56, %v1578_v16 }
  0x61   : > { %v375_v54 = vsel %vm351_vm0, %v373_v36, %v374_v42  ;;  %v390_v28 = vadd.f32 %v372_v38, %v312_v23  ;;  %v452_v55 = vrot.slane %v412_v45, 2  ;;  %v450_v44 = vsel %vm429_vm1, %v448_v46, %v449_v50 }
  0x62   : > { %v391_v58 = vadd.f32 %v375_v54, %v313_v37  ;;  %v508_v47 = vmul.f32 %v1304_v1, %v1496_v52  ;;  %v509_v59 = vmul.f32 %v1304_v1, %v1498_v21  ;;  %v510_v61 = vmul.f32 %v1304_v1, %v1578_v16 }
  0x63   : > { %v453_v60 = vsel %vm429_vm1, %v451_v53, %v452_v55  ;;  %v468_v32 = vadd.f32 %v450_v44, %v390_v28  ;;  %v511_v33 = vmul.f32 %v1304_v1, %v1580_v18  ;;  %v585_v0 = vmul.f32 %v1315_v10, %v1496_v52 }
  0x64   : > { %v469_v62 = vadd.f32 %v453_v60, %v391_v58  ;;  %v546_v56 = vrot.slane %v508_v47, 1  ;;  %v547_v63 = vrot.slane %v509_v59, 1  ;;  %v549_v3 = vrot.slane %v510_v61, 1 }
  0x65   : > { %v489_v2 = vadd.f32 %v481_v25, %v468_v32  ;;  %v550_v48 = vrot.slane %v511_v33, 1  ;;  %v586_v49 = vmul.f32 %v1315_v10, %v1498_v21  ;;  %v587_v6 = vmul.f32 %v1315_v10, %v1578_v16 }
  0x66   : > { %v490_v4 = vadd.f32 %v482_v57, %v469_v62  ;;  %v548_v5 = vsel %vm351_vm0, %v546_v56, %v547_v63  ;;  %v588_v1 = vmul.f32 %v1315_v10, %v1580_v18  ;;  %v623_v9 = vrot.slane %v585_v0, 2 }
  0x67   : > { %v551_v7 = vsel %vm351_vm0, %v549_v3, %v550_v48  ;;  %v566_v8 = vadd.f32 %v548_v5, %v489_v2  ;;  %v624_v52 = vrot.slane %v586_v49, 2  ;;  %v626_v11 = vrot.slane %v587_v6, 2 }
  0x68   : > { %v567_v39 = vadd.f32 %v551_v7, %v490_v4  ;;  %v627_v12 = vrot.slane %v588_v1, 2  ;;  %v656_v21 = vmul.f32 %v1339_v34, %v1578_v16  ;;  %v657_v14 = vmul.f32 %v1339_v34, %v1582_v20 }
  0x69   : > { %v625_v13 = vsel %vm429_vm1, %v623_v9, %v624_v52  ;;  %v683_v17 = vmul.f32 %v1345_v41, %v1578_v16  ;;  %v684_v10 = vmul.f32 %v1345_v41, %v1580_v18  ;;  %v685_v27 = vmul.f32 %v1345_v41, %v1582_v20 }
  0x6a   : > { %v628_v23 = vsel %vm429_vm1, %v626_v11, %v627_v12  ;;  %v643_v37 = vadd.f32 %v625_v13, %v566_v8  ;;  %v686_v19 = vmul.f32 %v1345_v41, %v300_v24  ;;  %v760_v34 = vmul.f32 %v1361_v22, %v1578_v16 }
  0x6b   : > { %v644_v29 = vadd.f32 %v628_v23, %v567_v39  ;;  %v721_v30 = vrot.slane %v683_v17, 1  ;;  %v722_v31 = vrot.slane %v684_v10, 1  ;;  %v724_v51 = vrot.slane %v685_v27, 1 }
  0x6c   : > { %v664_v40 = vadd.f32 %v656_v21, %v643_v37  ;;  %v725_v35 = vrot.slane %v686_v19, 1  ;;  %v761_v26 = vmul.f32 %v1361_v22, %v1580_v18  ;;  %v762_v42 = vmul.f32 %v1361_v22, %v1582_v20 }
  0x6d   : > { %v665_v43 = vadd.f32 %v657_v14, %v644_v29  ;;  %v723_v36 = vsel %vm351_vm0, %v721_v30, %v722_v31  ;;  %v763_v41 = vmul.f32 %v1361_v22, %v300_v24  ;;  %v798_v46 = vrot.slane %v760_v34, 2 }
  0x6e   : > { %v726_v45 = vsel %vm351_vm0, %v724_v51, %v725_v35  ;;  %v741_v16 = vadd.f32 %v723_v36, %v664_v40  ;;  %v799_v38 = vrot.slane %v761_v26, 2  ;;  %v801_v53 = vrot.slane %v762_v42, 2 }
  0x6f   : > { %v742_v50 = vadd.f32 %v726_v45, %v665_v43  ;;  %v802_v18 = vrot.slane %v763_v41, 2  ;;  %v1135_v22 = vmov 0.0  }
  0x70   : > { %v800_v25 = vsel %vm429_vm1, %v798_v46, %v799_v38  ;;  %957 = vst [vmem:[%s1663_s10 + $0x2] sm:$0x3f] %v1135_v22 }
  0x71   : > { %v803_v54 = vsel %vm429_vm1, %v801_v53, %v802_v18  ;;  %v818_v28 = vadd.f32 %v800_v25, %v741_v16 }
  0x72   : > { %v819_v55 = vadd.f32 %v803_v54, %v742_v50 }
  0x74   : > { %v823_v20 = vpack.c.bf16 %v819_v55, %v818_v28 }
  0x76   : > { %1098 = vmatmul.mubr.bf16.vlgmr.msra.gmra.mxu1 %v823_v20 }
 0x108   : > { %v1095_v15 = vpop.f32.mrf.mxu0 }
 0x109   : > { %915 = vst [vmem:[%s232_s14 + $0x10] sm:$0xff] %v1095_v15  ;;  %v937_v32 = vmul.f32 %v1095_v15, %v1095_v15 }
 0x10a   : > { %v882_v24 = vpop.f32.mrf.mxu0 }
 0x10b   : > { %913 = vst [vmem:[%s232_s14] sm:$0xff] %v882_v24  ;;  %v935_v47 = vmul.f32 %v882_v24, %v882_v24 }
 0x10c   : > { %v1096_v57 = vpop.f32.mrf.mxu0 }
 0x10d   : > { %916 = vst [vmem:[%s232_s14 + $0x18] sm:$0xff] %v1096_v57  ;;  %v938_v62 = vmul.f32 %v1096_v57, %v1096_v57 }
 0x10e   : > { %v885_v58 = vpop.f32.mrf.mxu0 }
 0x10f   : > { %914 = vst [vmem:[%s232_s14 + $0x8] sm:$0xff] %v885_v58  ;;  %v936_v44 = vmul.f32 %v885_v58, %v885_v58  ;;  %v921_v59 = vadd.f32 %v885_v58, %v882_v24 }
 0x111   : > { %v943_v60 = vadd.f32 %v936_v44, %v935_v47  ;;  %v922_v61 = vadd.f32 %v1095_v15, %v921_v59 }
 0x113   : > { %v944_v33 = vadd.f32 %v943_v60, %v937_v32  ;;  %v923_v56 = vadd.f32 %v1096_v57, %v922_v61 }
 0x115   : > { %v945_v0 = vadd.f32 %v944_v33, %v938_v62 }
 0x136   : > { %v1099_v63 = vpop.f32.mrf.mxu1 }
 0x137   : > { %919 = vst [vmem:[%s232_s14 + $0x30] sm:$0xff] %v1099_v63  ;;  %v941_v7 = vmul.f32 %v1099_v63, %v1099_v63 }
 0x138   : > { %v898_v2 = vpop.f32.mrf.mxu1 }
 0x139   : > { %917 = vst [vmem:[%s232_s14 + $0x20] sm:$0xff] %v898_v2  ;;  %v939_v3 = vmul.f32 %v898_v2, %v898_v2  ;;  %v924_v48 = vadd.f32 %v923_v56, %v898_v2 }
 0x13a   : > { %v1100_v49 = vpop.f32.mrf.mxu1 }
 0x13b   : > { %920 = vst [vmem:[%s232_s14 + $0x38] sm:$0xff] %v1100_v49  ;;  %v946_v4 = vadd.f32 %v945_v0, %v939_v3  ;;  %v942_v52 = vmul.f32 %v1100_v49, %v1100_v49 }
 0x13c   : > { %v901_v5 = vpop.f32.mrf.mxu1 }
 0x13d   : > { %918 = vst [vmem:[%s232_s14 + $0x28] sm:$0xff] %v901_v5  ;;  %v925_v6 = vadd.f32 %v924_v48, %v901_v5  ;;  %v940_v1 = vmul.f32 %v901_v5, %v901_v5 }
 0x13f   : > { %v926_v8 = vadd.f32 %v1099_v63, %v925_v6  ;;  %v947_v9 = vadd.f32 %v946_v4, %v940_v1 }
 0x141   : > { %v927_v39 = vadd.f32 %v1100_v49, %v926_v8  ;;  %v948_v11 = vadd.f32 %v947_v9, %v941_v7 }
 0x143   : > { %v928_v12 = vrot.slane %v927_v39, 4  ;;  %v949_v21 = vadd.f32 %v948_v11, %v942_v52 }
 0x145   : > { %v929_v13 = vadd.f32 %v928_v12, %v927_v39  ;;  %v950_v14 = vrot.slane %v949_v21, 4 }
 0x147   : > { %v930_v17 = vrot.slane %v929_v13, 2  ;;  %v951_v10 = vadd.f32 %v950_v14, %v949_v21 }
 0x149   : > { %v931_v23 = vadd.f32 %v930_v17, %v929_v13  ;;  %v952_v37 = vrot.slane %v951_v10, 2 }
 0x14b   : > { %v932_v27 = vrot.slane %v931_v23, 1  ;;  %v953_v19 = vadd.f32 %v952_v37, %v951_v10 }
 0x14d   : > { %v933_v29 = vadd.f32 %v932_v27, %v931_v23  ;;  %v954_v30 = vrot.slane %v953_v19, 1 }
 0x14f   : > { %934 = vst [vmem:[%s1663_s10] sm:$0x1] %v933_v29  ;;  %v955_v31 = vadd.f32 %v954_v30, %v953_v19 }
 0x151   : > { %956 = vst [vmem:[%s1663_s10 + $0x1] sm:$0x1] %v955_v31 }
 0x152 PF: > { %s17_s20 = sadd.s32 1, %s1133_s20  }
 0x153   : > { %p14_p5 = scmp.ge.s32.totalorder %s17_s20, 4  }
 0x155   :  { %16 = sbr.rel (!%p14_p5) target bundleno = 2 (0x2), region = 78 }

// kernel: a_call__.20
= control target key start
LH: loop header
LB: loop body
LE: loop exit
PB: predicated region body
PF: predicated region fallthrough
CT: control target
= control target key end

     0   :  { %13 = vsyncpa [#allocation3], 0  ;;  %s1480_s24 = smov 0   ;;  %s2098_s0 = inlined_call_operand.vmem [shape: f32[3], index: 0, kind: input, shape index: {}]   ;;  %s2099_s1 = inlined_call_operand.vmem [shape: f32[2,10,10,128], index: 1, kind: input, shape index: {}]   ;;  %s2100_s2 = inlined_call_operand.vmem [shape: f32[2,10,10,128], index: 2, kind: input, shape index: {}]   ;;  %s2101_s3 = inlined_call_operand.vmem [shape: f32[2,10,10,128], index: 3, kind: input, shape index: {}]   ;;  %s2102_s4 = inlined_call_operand.vmem [shape: f32[9,128], index: 4, kind: input, shape index: {}]   ;;  %s2103_s5 = inlined_call_operand.vmem [shape: f32[128,128], index: 5, kind: input, shape index: {}]   ;;  %s2104_s6 = inlined_call_operand.vmem [shape: f32[128,128], index: 6, kind: output, shape index: {0}]   ;;  %s2105_s7 = inlined_call_operand.vmem [shape: f32[2,8,128], index: 7, kind: output, shape index: {1}]  }
   0x1 LB: > { %s1486_s25 = sadd.s32 4294967295, %s1436_s24   ;;  %p1314_p0 = scmp.ge.s32.totalorder %s1436_s24, 1  ;;  %s1436_s24 = sphi %s1480_s24, %s19_s24  }
   0x2   : > { %p217_p1 = scmp.lt.s32.totalorder %s1436_s24, 3  ;;  %s230_s28 = sshll.u32 %s2098_s0, 4  ;;  %s231_s28 = int_to_ptr.vmem [resolvable:$true] %s230_s28 }
   0x3   : > { %p1399_p3 = scmp.eq.s32.totalorder %s1486_s25, 0  ;;  %s1411_s30 = scalar_lea.vmem %s231_s28, 16 }
   0x4   : > { %p1493_p2 = pnand %p1314_p0, %p217_p1  ;;  %p1412_p6 = scmp.ne.s32.totalorder %s231_s28, %s1411_s30 }
   0x5   : > { %p1419_p10 = scmp.lt.s32.totalorder %s231_s28, %s231_s28  ;;  %p1420_p11 = scmp.lt.s32.totalorder %s1411_s30, %s1411_s30 }
   0x6   : > { %p1395_p4 = pneg %p1493_p2 }
   0x7   : > { %p1421_p12 = por %p1420_p11, %p1419_p10 }
   0x8   : > { %p1396_p5 = pnand %p1399_p3, %p1395_p4 }
   0xa   : > { %p1413_p7 = pneg %p1396_p5 }
   0xc   : > { %p1414_p8 = pnand %p1413_p7, %p1412_p6 }
   0xe   : > { %p1415_p9 = pneg %p1414_p8 }
  0x10   : > { %p1422_p13 = pnand %p1421_p12, %p1415_p9 }
  0x12   : > { %1425 = shalt.err (!%p1422_p13)
}
  0x13   : > { %s1438_s8 = smov [#allocation2]   ;;  %273 = sbr.rel (%p1493_p2) target bundleno = 376 (0x178), region = 44 }
  0x14   : > { %1398 = dma.vmem_to_smem (!%p1396_p5), %s231_s28, 16, %s1438_s8, [#allocation3]  }
  0x18   : > { %1431 = dma.done.wait (%p1399_p3), [#allocation3], 16  }
  0x19   : > { %1433 = vsyncadd (%p1399_p3), [#allocation3], 4294967280 }
  0x1a   : > { %279 = sfence }
  0x1b   : > { %v1069_v0 = vld [vmem:[%s2103_s5 + $0x70] sm:$0xff]  ;;  %v1070_v1 = vld [vmem:[%s2103_s5 + $0x78] sm:$0xff]  ;;  %v1067_v2 = vld [vmem:[%s2103_s5 + $0x60] sm:$0xff]  ;;  %p320_p0 = scmp.lt.s32.totalorder %s1486_s25, 1  ;;  %s366_s15 = sld [smem:[#allocation2]]  ;;  %vm582_vm0 = vcmask 1046528  }
  0x1c   : > { %v1078_v3 = vpack.c.bf16 %v1070_v1, %v1069_v0  ;;  %v1068_v4 = vld [vmem:[%s2103_s5 + $0x68] sm:$0xff]  ;;  %s1325_s18 = sld [smem:[#allocation2 + $0x1]]  ;;  %v1065_v6 = vld [vmem:[%s2103_s5 + $0x50] sm:$0xff]  ;;  %v1066_v7 = vld [vmem:[%s2103_s5 + $0x58] sm:$0xff]  ;;  %vm660_vm1 = vcmask 1045504   ;;  %s1322_s17 = sshll.u32 %s1486_s25, 3 }
  0x1d   : > { %v1077_v5 = vpack.c.bf16 %v1068_v4, %v1067_v2  ;;  %s1528_s23 = scalar_select %p320_p0, %s1486_s25, 1  ;;  %v1063_v8 = vld [vmem:[%s2103_s5 + $0x40] sm:$0xff]  ;;  %v1064_v9 = vld [vmem:[%s2103_s5 + $0x48] sm:$0xff]  ;;  %v1061_v10 = vld [vmem:[%s2103_s5 + $0x30] sm:$0xff]  ;;  %v1076_v11 = vpack.c.bf16 %v1066_v7, %v1065_v6 }
  0x1e   : > { %1350 = vmatprep.subr.bf16.mxu0 %v1078_v3  ;;  %1374 = vmatprep.subr.bf16.mxu1 %v1078_v3  ;;  %s1540_s10 = sld [smem:[#allocation2 + $0x2]]  ;;  %v1062_v12 = vld [vmem:[%s2103_s5 + $0x38] sm:$0xff]  ;;  %v1059_v13 = vld [vmem:[%s2103_s5 + $0x20] sm:$0xff]  ;;  %v1060_v14 = vld [vmem:[%s2103_s5 + $0x28] sm:$0xff]  ;;  %v1563_v16 = vpack.c.bf16 %v1064_v9, %v1063_v8  ;;  %p336_p1 = scmp.lt.s32.totalorder %s1322_s17, 15 }
  0x1f   : > { %1351 = vmatpush3.bf16.msra.mxu0 %v1078_v3  ;;  %1382 = vmatpush3.bf16.msra.mxu1 %v1078_v3  ;;  %s1390_s9 = smul.u32 160, %s1528_s23  ;;  %v1570_v21 = vpack.c.bf16 %v1062_v12, %v1061_v10  ;;  %v1572_v22 = vpack.c.bf16 %v1060_v14, %v1059_v13  ;;  %v1057_v3 = vld [vmem:[%s2103_s5 + $0x10] sm:$0xff]  ;;  %v1058_v8 = vld [vmem:[%s2103_s5 + $0x18] sm:$0xff]  ;;  %v1055_v9 = vld [vmem:[%s2103_s5] sm:$0xff] }
  0x20   : > { %1352 = vmatprep.subr.bf16.mxu0 %v1077_v5  ;;  %1375 = vmatprep.subr.bf16.mxu1 %v1077_v5  ;;  %v1056_v10 = vld [vmem:[%s2103_s5 + $0x8] sm:$0xff]  ;;  %s2108_s17 = smov (!%p336_p1, %s1322_s17), 15 }
  0x21   : > { %s1554_s21 = scalar_lea.vmem %s2099_s1, %s1390_s9  ;;  %s1559_s27 = scalar_lea.vmem %s2100_s2, %s1390_s9  ;;  %v1561_v15 = vstv %s366_s15 }
  0x22   : > { %v346_v17 = vld [vmem:[%s1554_s21] sm:$0xff]  ;;  %v347_v18 = vld [vmem:[%s1554_s21 + $0x8] sm:$0x3]  ;;  %v348_v19 = vld [vmem:[%s1554_s21 + $0x10] sm:$0xff]  ;;  %v1568_v20 = vstv %s1325_s18  ;;  %s1581_s28 = scalar_lea.vmem %s2101_s3, %s1390_s9  ;;  %s1323_s19 = sshll.u32 %s2108_s17, 3 }
  0x23   : > { %1353 = vmatpush3.bf16.msra.mxu0 %v1077_v5  ;;  %1383 = vmatpush3.bf16.msra.mxu1 %v1077_v5  ;;  %v349_v23 = vld [vmem:[%s1554_s21 + $0x18] sm:$0x3]  ;;  %v350_v24 = vld [vmem:[%s1554_s21 + $0x20] sm:$0xff]  ;;  %v351_v25 = vld [vmem:[%s1554_s21 + $0x28] sm:$0x3]  ;;  %v368_v26 = vmul.f32 %v1561_v15, %v346_v17  ;;  %v369_v29 = vmul.f32 %v1561_v15, %v347_v18  ;;  %v370_v30 = vmul.f32 %v1561_v15, %v348_v19  ;;  %s339_s26 = scalar_lea.vmem %s2104_s6, %s1323_s19 }
  0x24   : > { %1354 = vmatprep.subr.bf16.mxu0 %v1076_v11  ;;  %1376 = vmatprep.subr.bf16.mxu1 %v1076_v11  ;;  %v352_v27 = vld [vmem:[%s1554_s21 + $0x30] sm:$0xff]  ;;  %v353_v28 = vld [vmem:[%s1554_s21 + $0x38] sm:$0x3]  ;;  %v371_v31 = vmul.f32 %v1561_v15, %v349_v23  ;;  %v388_v32 = vld [vmem:[%s1559_s27] sm:$0xff]  ;;  %v372_v33 = vmul.f32 %v1561_v15, %v350_v24  ;;  %v373_v34 = vmul.f32 %v1561_v15, %v351_v25  ;;  %v1610_v53 = vstv %s1540_s10 }
  0x25   : > { %v374_v35 = vmul.f32 %v1561_v15, %v352_v27  ;;  %v389_v36 = vld [vmem:[%s1559_s27 + $0x8] sm:$0x3]  ;;  %v390_v37 = vld [vmem:[%s1559_s27 + $0x10] sm:$0xff]  ;;  %v391_v38 = vld [vmem:[%s1559_s27 + $0x18] sm:$0x3]  ;;  %v410_v39 = vmul.f32 %v1568_v20, %v388_v32  ;;  %v375_v40 = vmul.f32 %v1561_v15, %v353_v28  ;;  %v1072_v25 = vpack.c.bf16 %v1058_v8, %v1057_v3 }
  0x26   : > { %v392_v41 = vld [vmem:[%s1559_s27 + $0x20] sm:$0xff]  ;;  %v393_v42 = vld [vmem:[%s1559_s27 + $0x28] sm:$0x3]  ;;  %v394_v43 = vld [vmem:[%s1559_s27 + $0x30] sm:$0xff]  ;;  %v411_v44 = vmul.f32 %v1568_v20, %v389_v36  ;;  %v412_v45 = vmul.f32 %v1568_v20, %v390_v37  ;;  %v413_v46 = vmul.f32 %v1568_v20, %v391_v38 }
  0x27   : > { %1355 = vmatpush3.bf16.msra.mxu0 %v1076_v11  ;;  %1384 = vmatpush3.bf16.msra.mxu1 %v1076_v11  ;;  %v395_v47 = vld [vmem:[%s1559_s27 + $0x38] sm:$0x3]  ;;  %v414_v48 = vmul.f32 %v1568_v20, %v392_v41  ;;  %v415_v49 = vmul.f32 %v1568_v20, %v393_v42  ;;  %v416_v50 = vmul.f32 %v1568_v20, %v394_v43  ;;  %v450_v51 = vld [vmem:[%s1581_s28] sm:$0xff]  ;;  %v451_v52 = vld [vmem:[%s1581_s28 + $0x8] sm:$0x3] }
  0x28   : > { %1356 = vmatprep.subr.bf16.mxu0 %v1563_v16  ;;  %1377 = vmatprep.subr.bf16.mxu1 %v1563_v16  ;;  %v417_v54 = vmul.f32 %v1568_v20, %v395_v47  ;;  %v430_v55 = vadd.f32 %v410_v39, %v368_v26  ;;  %v431_v56 = vadd.f32 %v411_v44, %v369_v29  ;;  %v452_v57 = vld [vmem:[%s1581_s28 + $0x10] sm:$0xff]  ;;  %v453_v58 = vld [vmem:[%s1581_s28 + $0x18] sm:$0x3]  ;;  %v454_v59 = vld [vmem:[%s1581_s28 + $0x20] sm:$0xff] }
  0x29   : > { %v432_v60 = vadd.f32 %v412_v45, %v370_v30  ;;  %v433_v61 = vadd.f32 %v413_v46, %v371_v31  ;;  %v434_v62 = vadd.f32 %v414_v48, %v372_v33  ;;  %v435_v63 = vadd.f32 %v415_v49, %v373_v34  ;;  %v455_v0 = vld [vmem:[%s1581_s28 + $0x28] sm:$0x3]  ;;  %v456_v1 = vld [vmem:[%s1581_s28 + $0x30] sm:$0xff]  ;;  %v457_v2 = vld [vmem:[%s1581_s28 + $0x38] sm:$0x3] }
  0x2a   : > { %v436_v4 = vadd.f32 %v416_v50, %v374_v35  ;;  %v437_v5 = vadd.f32 %v417_v54, %v375_v40  ;;  %v472_v6 = vmul.f32 %v1610_v53, %v450_v51  ;;  %v473_v7 = vmul.f32 %v1610_v53, %v451_v52  ;;  %v1650_v29 = vld [vmem:[%s2102_s4] ss:$0 sm:$0xff]  ;;  %v1655_v30 = vld [vmem:[%s2102_s4 + $0x1] ss:$0 sm:$0xff]  ;;  %v1662_v35 = vld [vmem:[%s2102_s4 + $0x2] ss:$0 sm:$0xff] }
  0x2b   : > { %1357 = vmatpush3.bf16.msra.mxu0 %v1563_v16  ;;  %1385 = vmatpush3.bf16.msra.mxu1 %v1563_v16  ;;  %v474_v11 = vmul.f32 %v1610_v53, %v452_v57  ;;  %v475_v12 = vmul.f32 %v1610_v53, %v453_v58  ;;  %v476_v13 = vmul.f32 %v1610_v53, %v454_v59  ;;  %v1681_v47 = vld [vmem:[%s2102_s4 + $0x3] ss:$0 sm:$0xff]  ;;  %v1690_v57 = vld [vmem:[%s2102_s4 + $0x4] ss:$0 sm:$0xff] }
  0x2c   : > { %1358 = vmatprep.subr.bf16.mxu0 %v1570_v21  ;;  %1378 = vmatprep.subr.bf16.mxu1 %v1570_v21  ;;  %v477_v14 = vmul.f32 %v1610_v53, %v455_v0  ;;  %v478_v16 = vmul.f32 %v1610_v53, %v456_v1  ;;  %v479_v17 = vmul.f32 %v1610_v53, %v457_v2  ;;  %v1701_v1 = vld [vmem:[%s2102_s4 + $0x5] ss:$0 sm:$0xff] }
  0x2d   : > { %v492_v18 = vadd.f32 %v472_v6, %v430_v55  ;;  %v493_v19 = vadd.f32 %v473_v7, %v431_v56  ;;  %v494_v23 = vadd.f32 %v474_v11, %v432_v60  ;;  %v495_v24 = vadd.f32 %v475_v12, %v433_v61 }
  0x2e   : > { %v1645_v26 = vpack.c.bf16 %v1056_v10, %v1055_v9  ;;  %v496_v27 = vadd.f32 %v476_v13, %v434_v62  ;;  %v497_v28 = vadd.f32 %v477_v14, %v435_v63  ;;  %v498_v36 = vadd.f32 %v478_v16, %v436_v4  ;;  %v1720_v14 = vld [vmem:[%s2102_s4 + $0x6] ss:$0 sm:$0xff] }
  0x2f   : > { %1359 = vmatpush3.bf16.msra.mxu0 %v1570_v21  ;;  %1386 = vmatpush3.bf16.msra.mxu1 %v1570_v21  ;;  %v512_v31 = vmax.f32 %v492_v18, 0.0  ;;  %v513_v32 = vmax.f32 %v493_v19, 0.0  ;;  %v514_v33 = vmax.f32 %v494_v23, 0.0  ;;  %v515_v34 = vmax.f32 %v495_v24, 0.0 }
  0x30   : > { %1360 = vmatprep.subr.bf16.mxu0 %v1572_v22  ;;  %1379 = vmatprep.subr.bf16.mxu1 %v1572_v22  ;;  %v499_v37 = vadd.f32 %v479_v17, %v437_v5  ;;  %v1666_v38 = vmax.f32 %v496_v27, 0.0  ;;  %v1668_v39 = vmax.f32 %v497_v28, 0.0  ;;  %v1703_v2 = vmax.f32 %v498_v36, 0.0  ;;  %v1732_v28 = vld [vmem:[%s2102_s4 + $0x7] ss:$0 sm:$0xff] }
  0x31   : > { %v537_v21 = vmul.f32 %v1650_v29, %v512_v31  ;;  %v538_v40 = vmul.f32 %v1650_v29, %v514_v33  ;;  %v550_v41 = vmul.f32 %v1655_v30, %v512_v31  ;;  %v551_v42 = vmul.f32 %v1655_v30, %v513_v32 }
  0x32   : > { %v552_v43 = vmul.f32 %v1655_v30, %v514_v33  ;;  %v553_v44 = vmul.f32 %v1655_v30, %v515_v34  ;;  %v628_v45 = vmul.f32 %v1662_v35, %v512_v31  ;;  %v629_v46 = vmul.f32 %v1662_v35, %v513_v32 }
  0x33   : > { %1361 = vmatpush3.bf16.msra.mxu0 %v1572_v22  ;;  %1387 = vmatpush3.bf16.msra.mxu1 %v1572_v22  ;;  %v583_v48 = vrot.slane %v550_v41, 1  ;;  %v584_v49 = vrot.slane %v551_v42, 1  ;;  %v630_v50 = vmul.f32 %v1662_v35, %v514_v33  ;;  %v631_v51 = vmul.f32 %v1662_v35, %v515_v34 }
  0x34   : > { %1362 = vmatprep.subr.bf16.mxu0 %v1072_v25  ;;  %1380 = vmatprep.subr.bf16.mxu1 %v1072_v25  ;;  %v586_v52 = vrot.slane %v552_v43, 1  ;;  %v587_v54 = vrot.slane %v553_v44, 1  ;;  %v661_v55 = vrot.slane %v628_v45, 2  ;;  %v662_v56 = vrot.slane %v629_v46, 2 }
  0x35   : > { %v585_v58 = vsel %vm582_vm0, %v583_v48, %v584_v49  ;;  %v664_v22 = vrot.slane %v630_v50, 2  ;;  %v665_v59 = vrot.slane %v631_v51, 2  ;;  %v706_v60 = vmul.f32 %v1681_v47, %v514_v33 }
  0x36   : > { %v588_v61 = vsel %vm582_vm0, %v586_v52, %v587_v54  ;;  %v615_v62 = vadd.f32 %v585_v58, %v537_v21  ;;  %v663_v63 = vsel %vm660_vm1, %v661_v55, %v662_v56  ;;  %v707_v0 = vmul.f32 %v1681_v47, %v1666_v38  ;;  %v354_v55 = vld [vmem:[%s1554_s21 + $0x40] sm:$0xff] }
  0x37   : > { %1363 = vmatpush3.bf16.msra.mxu0 %v1072_v25  ;;  %1388 = vmatpush3.bf16.msra.mxu1 %v1072_v25  ;;  %v616_v3 = vadd.f32 %v588_v61, %v538_v40  ;;  %v666_v4 = vsel %vm660_vm1, %v664_v22, %v665_v59  ;;  %v727_v5 = vmul.f32 %v1690_v57, %v514_v33  ;;  %v1709_v6 = vmax.f32 %v499_v37, 0.0  ;;  %v1741_v40 = vld [vmem:[%s2102_s4 + $0x8] ss:$0 sm:$0xff] }
  0x38   : > { %1364 = vmatprep.subr.bf16.mxu0 %v1645_v26  ;;  %1381 = vmatprep.subr.bf16.mxu1 %v1645_v26  ;;  %v693_v7 = vadd.f32 %v663_v63, %v615_v62  ;;  %v728_v8 = vmul.f32 %v1690_v57, %v515_v34  ;;  %v729_v9 = vmul.f32 %v1690_v57, %v1666_v38 }
  0x39   : > { %v694_v10 = vadd.f32 %v666_v4, %v616_v3  ;;  %v730_v11 = vmul.f32 %v1690_v57, %v1668_v39  ;;  %v759_v12 = vrot.slane %v727_v5, 1  ;;  %v804_v13 = vmul.f32 %v1701_v1, %v514_v33  ;;  %v356_v3 = vld [vmem:[%s1554_s21 + $0x50] sm:$0xff]  ;;  %v357_v4 = vld [vmem:[%s1554_s21 + $0x58] sm:$0x3] }
  0x3a   : > { %v714_v16 = vadd.f32 %v706_v60, %v693_v7  ;;  %v760_v17 = vrot.slane %v728_v8, 1  ;;  %v762_v18 = vrot.slane %v729_v9, 1  ;;  %v805_v19 = vmul.f32 %v1701_v1, %v515_v34 }
  0x3b   : > { %1365 = vmatpush3.bf16.msra.mxu0 %v1645_v26  ;;  %1389 = vmatpush3.bf16.msra.mxu1 %v1645_v26  ;;  %v715_v23 = vadd.f32 %v707_v0, %v694_v10  ;;  %v763_v24 = vrot.slane %v730_v11, 1  ;;  %v806_v25 = vmul.f32 %v1701_v1, %v1666_v38  ;;  %v807_v27 = vmul.f32 %v1701_v1, %v1668_v39  ;;  %v355_v0 = vld [vmem:[%s1554_s21 + $0x48] sm:$0x3]  ;;  %v396_v10 = vld [vmem:[%s1559_s27 + $0x40] sm:$0xff] }
  0x3c   : > { %v761_v31 = vsel %vm582_vm0, %v759_v12, %v760_v17  ;;  %v836_v32 = vrot.slane %v804_v13, 2  ;;  %v837_v33 = vrot.slane %v805_v19, 2  ;;  %v881_v26 = vmul.f32 %v1720_v14, %v1666_v38  ;;  %v397_v11 = vld [vmem:[%s1559_s27 + $0x48] sm:$0x3]  ;;  %v399_v19 = vld [vmem:[%s1559_s27 + $0x58] sm:$0x3] }
  0x3d   : > { %v764_v34 = vsel %vm582_vm0, %v762_v18, %v763_v24  ;;  %v791_v36 = vadd.f32 %v761_v31, %v714_v16  ;;  %v839_v37 = vrot.slane %v806_v25, 2  ;;  %v840_v21 = vrot.slane %v807_v27, 2  ;;  %v398_v18 = vld [vmem:[%s1559_s27 + $0x50] sm:$0xff]  ;;  %v458_v31 = vld [vmem:[%s1581_s28 + $0x40] sm:$0xff] }
  0x3e   : > { %v792_v41 = vadd.f32 %v764_v34, %v715_v23  ;;  %v838_v42 = vsel %vm660_vm1, %v836_v32, %v837_v33  ;;  %v882_v43 = vmul.f32 %v1720_v14, %v1703_v2  ;;  %v902_v44 = vmul.f32 %v1732_v28, %v1666_v38  ;;  %v459_v32 = vld [vmem:[%s1581_s28 + $0x48] sm:$0x3]  ;;  %v460_v33 = vld [vmem:[%s1581_s28 + $0x50] sm:$0xff] }
  0x3f   : > { %v841_v45 = vsel %vm660_vm1, %v839_v37, %v840_v21  ;;  %v868_v46 = vadd.f32 %v838_v42, %v791_v36  ;;  %v903_v48 = vmul.f32 %v1732_v28, %v1668_v39  ;;  %v904_v49 = vmul.f32 %v1732_v28, %v1703_v2 }
  0x40   : > { %v869_v50 = vadd.f32 %v841_v45, %v792_v41  ;;  %v905_v51 = vmul.f32 %v1732_v28, %v1709_v6  ;;  %v934_v52 = vrot.slane %v902_v44, 1  ;;  %v979_v54 = vmul.f32 %v1741_v40, %v1666_v38  ;;  %v461_v44 = vld [vmem:[%s1581_s28 + $0x58] sm:$0x3] }
  0x41   : > { %v889_v56 = vadd.f32 %v881_v26, %v868_v46  ;;  %v935_v58 = vrot.slane %v903_v48, 1  ;;  %v937_v22 = vrot.slane %v904_v49, 1  ;;  %v980_v59 = vmul.f32 %v1741_v40, %v1668_v39 }
  0x42   : > { %v890_v60 = vadd.f32 %v882_v43, %v869_v50  ;;  %v938_v61 = vrot.slane %v905_v51, 1  ;;  %v981_v62 = vmul.f32 %v1741_v40, %v1703_v2  ;;  %v982_v63 = vmul.f32 %v1741_v40, %v1709_v6 }
  0x43   : > { %v936_v5 = vsel %vm582_vm0, %v934_v52, %v935_v58  ;;  %v1011_v7 = vrot.slane %v979_v54, 2  ;;  %v1012_v8 = vrot.slane %v980_v59, 2  ;;  %v376_v9 = vmul.f32 %v1561_v15, %v354_v55 }
  0x44   : > { %v939_v12 = vsel %vm582_vm0, %v937_v22, %v938_v61  ;;  %v966_v13 = vadd.f32 %v936_v5, %v889_v56  ;;  %v1014_v16 = vrot.slane %v981_v62, 2  ;;  %v1015_v17 = vrot.slane %v982_v63, 2 }
  0x45   : > { %v967_v23 = vadd.f32 %v939_v12, %v890_v60  ;;  %v1013_v24 = vsel %vm660_vm1, %v1011_v7, %v1012_v8  ;;  %v377_v25 = vmul.f32 %v1561_v15, %v355_v0  ;;  %v378_v27 = vmul.f32 %v1561_v15, %v356_v3 }
  0x46   : > { %v1016_v26 = vsel %vm660_vm1, %v1014_v16, %v1015_v17  ;;  %v1043_v34 = vadd.f32 %v1013_v24, %v966_v13  ;;  %v379_v36 = vmul.f32 %v1561_v15, %v357_v4  ;;  %v418_v37 = vmul.f32 %v1568_v20, %v396_v10 }
  0x47   : > { %v1044_v21 = vadd.f32 %v1016_v26, %v967_v23  ;;  %v419_v41 = vmul.f32 %v1568_v20, %v397_v11  ;;  %v420_v42 = vmul.f32 %v1568_v20, %v398_v18  ;;  %v421_v43 = vmul.f32 %v1568_v20, %v399_v19 }
  0x48   : > { %v438_v45 = vadd.f32 %v418_v37, %v376_v9  ;;  %v480_v46 = vmul.f32 %v1610_v53, %v458_v31  ;;  %v481_v48 = vmul.f32 %v1610_v53, %v459_v32  ;;  %v482_v49 = vmul.f32 %v1610_v53, %v460_v33 }
  0x49   : > { %v1051_v50 = vpack.c.bf16 %v1044_v21, %v1043_v34  ;;  %v439_v51 = vadd.f32 %v419_v41, %v377_v25  ;;  %v440_v52 = vadd.f32 %v420_v42, %v378_v27  ;;  %v441_v54 = vadd.f32 %v421_v43, %v379_v36 }
  0x4a   : > { %v483_v55 = vmul.f32 %v1610_v53, %v461_v44  ;;  %v500_v56 = vadd.f32 %v480_v46, %v438_v45  ;;  %v539_v58 = vmul.f32 %v1650_v29, %v1666_v38  ;;  %v540_v22 = vmul.f32 %v1650_v29, %v1703_v2 }
  0x4b   : > { %1366 = vmatprep.mubr.bf16.mxu0 %v1051_v50  ;;  %v501_v59 = vadd.f32 %v481_v48, %v439_v51  ;;  %v502_v60 = vadd.f32 %v482_v49, %v440_v52  ;;  %v554_v61 = vmul.f32 %v1655_v30, %v1666_v38  ;;  %v555_v62 = vmul.f32 %v1655_v30, %v1668_v39 }
  0x4c   : > { %v503_v63 = vadd.f32 %v483_v55, %v441_v54  ;;  %v1799_v0 = vmax.f32 %v500_v56, 0.0  ;;  %v556_v3 = vmul.f32 %v1655_v30, %v1703_v2  ;;  %v557_v4 = vmul.f32 %v1655_v30, %v1709_v6 }
  0x4d   : > { %v1805_v5 = vmax.f32 %v501_v59, 0.0  ;;  %v1807_v7 = vmax.f32 %v502_v60, 0.0  ;;  %v589_v8 = vrot.slane %v554_v61, 1  ;;  %v590_v9 = vrot.slane %v555_v62, 1 }
  0x4e   : > { %v1809_v10 = vmax.f32 %v503_v63, 0.0  ;;  %v592_v11 = vrot.slane %v556_v3, 1  ;;  %v593_v12 = vrot.slane %v557_v4, 1  ;;  %v632_v13 = vmul.f32 %v1662_v35, %v1666_v38 }
  0x4f   : > { %v591_v16 = vsel %vm582_vm0, %v589_v8, %v590_v9  ;;  %v633_v17 = vmul.f32 %v1662_v35, %v1668_v39  ;;  %v634_v18 = vmul.f32 %v1662_v35, %v1703_v2  ;;  %v635_v19 = vmul.f32 %v1662_v35, %v1709_v6 }
  0x50   : > { %v594_v23 = vsel %vm582_vm0, %v592_v11, %v593_v12  ;;  %v617_v24 = vadd.f32 %v591_v16, %v539_v58  ;;  %v667_v25 = vrot.slane %v632_v13, 2  ;;  %v708_v27 = vmul.f32 %v1681_v47, %v1703_v2 }
  0x51   : > { %v618_v31 = vadd.f32 %v594_v23, %v540_v22  ;;  %v668_v38 = vrot.slane %v633_v17, 2  ;;  %v670_v32 = vrot.slane %v634_v18, 2  ;;  %v671_v33 = vrot.slane %v635_v19, 2 }
  0x52   : > { %v709_v39 = vmul.f32 %v1681_v47, %v1799_v0  ;;  %v731_v26 = vmul.f32 %v1690_v57, %v1703_v2  ;;  %v732_v34 = vmul.f32 %v1690_v57, %v1709_v6  ;;  %v733_v36 = vmul.f32 %v1690_v57, %v1799_v0 }
  0x53   : > { %v669_v37 = vsel %vm660_vm1, %v667_v25, %v668_v38  ;;  %v672_v21 = vsel %vm660_vm1, %v670_v32, %v671_v33  ;;  %v734_v41 = vmul.f32 %v1690_v57, %v1805_v5  ;;  %v808_v42 = vmul.f32 %v1701_v1, %v1703_v2 }
  0x54   : > { %v695_v43 = vadd.f32 %v669_v37, %v617_v24  ;;  %v696_v44 = vadd.f32 %v672_v21, %v618_v31  ;;  %v765_v45 = vrot.slane %v731_v26, 1  ;;  %v766_v46 = vrot.slane %v732_v34, 1  ;;  %v358_v31 = vld [vmem:[%s1554_s21 + $0x60] sm:$0xff]  ;;  %v359_v26 = vld [vmem:[%s1554_s21 + $0x68] sm:$0x3]  ;;  %v360_v34 = vld [vmem:[%s1554_s21 + $0x70] sm:$0xff] }
  0x55   : > { %v768_v48 = vrot.slane %v733_v36, 1  ;;  %v769_v49 = vrot.slane %v734_v41, 1  ;;  %v809_v50 = vmul.f32 %v1701_v1, %v1709_v6  ;;  %v810_v51 = vmul.f32 %v1701_v1, %v1799_v0  ;;  %v361_v36 = vld [vmem:[%s1554_s21 + $0x78] sm:$0x3] }
  0x56   : > { %v716_v52 = vadd.f32 %v708_v27, %v695_v43  ;;  %v717_v54 = vadd.f32 %v709_v39, %v696_v44  ;;  %v767_v55 = vsel %vm582_vm0, %v765_v45, %v766_v46  ;;  %v811_v56 = vmul.f32 %v1701_v1, %v1805_v5  ;;  %v400_v43 = vld [vmem:[%s1559_s27 + $0x60] sm:$0xff]  ;;  %v401_v44 = vld [vmem:[%s1559_s27 + $0x68] sm:$0x3] }
  0x57   : > { %v770_v2 = vsel %vm582_vm0, %v768_v48, %v769_v49  ;;  %v842_v58 = vrot.slane %v808_v42, 2  ;;  %v843_v22 = vrot.slane %v809_v50, 2  ;;  %v845_v59 = vrot.slane %v810_v51, 2  ;;  %v402_v50 = vld [vmem:[%s1559_s27 + $0x70] sm:$0xff]  ;;  %v403_v51 = vld [vmem:[%s1559_s27 + $0x78] sm:$0x3] }
  0x58   : > { %v793_v60 = vadd.f32 %v767_v55, %v716_v52  ;;  %v794_v61 = vadd.f32 %v770_v2, %v717_v54  ;;  %v846_v62 = vrot.slane %v811_v56, 2  ;;  %v883_v6 = vmul.f32 %v1720_v14, %v1799_v0  ;;  %v462_v52 = vld [vmem:[%s1581_s28 + $0x60] sm:$0xff] }
  0x59   : > { %v844_v63 = vsel %vm660_vm1, %v842_v58, %v843_v22  ;;  %v884_v3 = vmul.f32 %v1720_v14, %v1807_v7  ;;  %v906_v4 = vmul.f32 %v1732_v28, %v1799_v0  ;;  %v907_v8 = vmul.f32 %v1732_v28, %v1805_v5  ;;  %v463_v58 = vld [vmem:[%s1581_s28 + $0x68] sm:$0x3]  ;;  %v464_v22 = vld [vmem:[%s1581_s28 + $0x70] sm:$0xff] }
  0x5a   : > { %v847_v9 = vsel %vm660_vm1, %v845_v59, %v846_v62  ;;  %v870_v11 = vadd.f32 %v844_v63, %v793_v60  ;;  %v908_v12 = vmul.f32 %v1732_v28, %v1807_v7  ;;  %v909_v13 = vmul.f32 %v1732_v28, %v1809_v10 }
  0x5b   : > { %v871_v16 = vadd.f32 %v847_v9, %v794_v61  ;;  %v940_v17 = vrot.slane %v906_v4, 1  ;;  %v941_v18 = vrot.slane %v907_v8, 1  ;;  %v983_v19 = vmul.f32 %v1741_v40, %v1799_v0 }
  0x5c   : > { %v891_v23 = vadd.f32 %v883_v6, %v870_v11  ;;  %v943_v24 = vrot.slane %v908_v12, 1  ;;  %v944_v25 = vrot.slane %v909_v13, 1  ;;  %v984_v27 = vmul.f32 %v1741_v40, %v1805_v5  ;;  %v465_v6 = vld [vmem:[%s1581_s28 + $0x78] sm:$0x3] }
  0x5d   : > { %v892_v38 = vadd.f32 %v884_v3, %v871_v16  ;;  %v942_v32 = vsel %vm582_vm0, %v940_v17, %v941_v18  ;;  %v985_v33 = vmul.f32 %v1741_v40, %v1807_v7  ;;  %v986_v39 = vmul.f32 %v1741_v40, %v1809_v10 }
  0x5e   : > { %v945_v37 = vsel %vm582_vm0, %v943_v24, %v944_v25  ;;  %v968_v21 = vadd.f32 %v942_v32, %v891_v23  ;;  %v1017_v41 = vrot.slane %v983_v19, 2  ;;  %v1018_v42 = vrot.slane %v984_v27, 2 }
  0x5f   : > { %v969_v45 = vadd.f32 %v945_v37, %v892_v38  ;;  %v1020_v46 = vrot.slane %v985_v33, 2  ;;  %v1021_v48 = vrot.slane %v986_v39, 2  ;;  %v380_v49 = vmul.f32 %v1561_v15, %v358_v31 }
  0x60   : > { %v1019_v54 = vsel %vm660_vm1, %v1017_v41, %v1018_v42  ;;  %v381_v55 = vmul.f32 %v1561_v15, %v359_v26  ;;  %v382_v56 = vmul.f32 %v1561_v15, %v360_v34  ;;  %v383_v2 = vmul.f32 %v1561_v15, %v361_v36 }
  0x61   : > { %v1022_v59 = vsel %vm660_vm1, %v1020_v46, %v1021_v48  ;;  %v1045_v60 = vadd.f32 %v1019_v54, %v968_v21  ;;  %v422_v61 = vmul.f32 %v1568_v20, %v400_v43  ;;  %v423_v62 = vmul.f32 %v1568_v20, %v401_v44 }
  0x62   : > { %v1046_v63 = vadd.f32 %v1022_v59, %v969_v45  ;;  %v424_v3 = vmul.f32 %v1568_v20, %v402_v50  ;;  %v425_v4 = vmul.f32 %v1568_v20, %v403_v51  ;;  %v484_v8 = vmul.f32 %v1610_v53, %v462_v52 }
  0x63   : > { %v442_v9 = vadd.f32 %v422_v61, %v380_v49  ;;  %v443_v11 = vadd.f32 %v423_v62, %v381_v55  ;;  %v485_v12 = vmul.f32 %v1610_v53, %v463_v58  ;;  %v486_v13 = vmul.f32 %v1610_v53, %v464_v22 }
  0x64   : > { %v1052_v16 = vpack.c.bf16 %v1046_v63, %v1045_v60  ;;  %v444_v17 = vadd.f32 %v424_v3, %v382_v56  ;;  %v445_v18 = vadd.f32 %v425_v4, %v383_v2  ;;  %v487_v19 = vmul.f32 %v1610_v53, %v465_v6 }
  0x65   : > { %v504_v23 = vadd.f32 %v484_v8, %v442_v9  ;;  %v505_v24 = vadd.f32 %v485_v12, %v443_v11  ;;  %v541_v25 = vmul.f32 %v1650_v29, %v1799_v0  ;;  %v542_v27 = vmul.f32 %v1650_v29, %v1807_v7 }
  0x66   : > { %1367 = vmatmul.mubr.bf16.vlgmr.msra.gmra.mxu0 %v1052_v16  ;;  %v506_v31 = vadd.f32 %v486_v13, %v444_v17  ;;  %v507_v38 = vadd.f32 %v487_v19, %v445_v18  ;;  %v558_v32 = vmul.f32 %v1655_v30, %v1799_v0  ;;  %v559_v33 = vmul.f32 %v1655_v30, %v1805_v5 }
  0x67   : > { %v1903_v39 = vmax.f32 %v504_v23, 0.0  ;;  %v1905_v26 = vmax.f32 %v505_v24, 0.0  ;;  %v560_v34 = vmul.f32 %v1655_v30, %v1807_v7  ;;  %v561_v36 = vmul.f32 %v1655_v30, %v1809_v10 }
  0x68   : > { %v1911_v37 = vmax.f32 %v506_v31, 0.0  ;;  %v1913_v21 = vmax.f32 %v507_v38, 0.0  ;;  %v595_v41 = vrot.slane %v558_v32, 1  ;;  %v596_v42 = vrot.slane %v559_v33, 1 }
  0x69   : > { %v598_v43 = vrot.slane %v560_v34, 1  ;;  %v599_v44 = vrot.slane %v561_v36, 1  ;;  %v636_v45 = vmul.f32 %v1662_v35, %v1799_v0  ;;  %v637_v46 = vmul.f32 %v1662_v35, %v1805_v5 }
  0x6a   : > { %v597_v48 = vsel %vm582_vm0, %v595_v41, %v596_v42  ;;  %v638_v49 = vmul.f32 %v1662_v35, %v1807_v7  ;;  %v639_v50 = vmul.f32 %v1662_v35, %v1809_v10  ;;  %v710_v51 = vmul.f32 %v1681_v47, %v1807_v7 }
  0x6b   : > { %v600_v52 = vsel %vm582_vm0, %v598_v43, %v599_v44  ;;  %v619_v54 = vadd.f32 %v597_v48, %v541_v25  ;;  %v673_v55 = vrot.slane %v636_v45, 2  ;;  %v674_v56 = vrot.slane %v637_v46, 2 }
  0x6c   : > { %v620_v0 = vadd.f32 %v600_v52, %v542_v27  ;;  %v676_v2 = vrot.slane %v638_v49, 2  ;;  %v677_v58 = vrot.slane %v639_v50, 2  ;;  %v711_v5 = vmul.f32 %v1681_v47, %v1903_v39 }
  0x6d   : > { %v675_v22 = vsel %vm660_vm1, %v673_v55, %v674_v56  ;;  %v735_v59 = vmul.f32 %v1690_v57, %v1807_v7  ;;  %v736_v60 = vmul.f32 %v1690_v57, %v1809_v10  ;;  %v737_v61 = vmul.f32 %v1690_v57, %v1903_v39 }
  0x6e   : > { %v678_v62 = vsel %vm660_vm1, %v676_v2, %v677_v58  ;;  %v697_v6 = vadd.f32 %v675_v22, %v619_v54  ;;  %v738_v63 = vmul.f32 %v1690_v57, %v1905_v26  ;;  %v812_v3 = vmul.f32 %v1701_v1, %v1807_v7  ;;  %v363_v2 = vld [vmem:[%s1554_s21 + $0x88] sm:$0x3] }
  0x6f   : > { %v698_v4 = vadd.f32 %v678_v62, %v620_v0  ;;  %v771_v8 = vrot.slane %v735_v59, 1  ;;  %v772_v9 = vrot.slane %v736_v60, 1  ;;  %v774_v11 = vrot.slane %v737_v61, 1  ;;  %v362_v0 = vld [vmem:[%s1554_s21 + $0x80] sm:$0xff]  ;;  %v364_v60 = vld [vmem:[%s1554_s21 + $0x90] sm:$0xff] }
  0x70   : > { %v718_v12 = vadd.f32 %v710_v51, %v697_v6  ;;  %v775_v13 = vrot.slane %v738_v63, 1  ;;  %v813_v16 = vmul.f32 %v1701_v1, %v1809_v10  ;;  %v814_v17 = vmul.f32 %v1701_v1, %v1903_v39  ;;  %v365_v61 = vld [vmem:[%s1554_s21 + $0x98] sm:$0x3]  ;;  %v404_v62 = vld [vmem:[%s1559_s27 + $0x80] sm:$0xff]  ;;  %s1324_s21 = sshll.u32 %s1528_s23, 3 }
  0x71   : > { %v719_v18 = vadd.f32 %v711_v5, %v698_v4  ;;  %v773_v19 = vsel %vm582_vm0, %v771_v8, %v772_v9  ;;  %v815_v23 = vmul.f32 %v1701_v1, %v1905_v26  ;;  %v848_v24 = vrot.slane %v812_v3, 2  ;;  %v405_v8 = vld [vmem:[%s1559_s27 + $0x88] sm:$0x3]  ;;  %v406_v9 = vld [vmem:[%s1559_s27 + $0x90] sm:$0xff]  ;;  %s2086_s16 = scalar_lea.vmem %s2105_s7, %s1324_s21 }
  0x72   : > { %v776_v7 = vsel %vm582_vm0, %v774_v11, %v775_v13  ;;  %v795_v25 = vadd.f32 %v773_v19, %v718_v12  ;;  %v849_v27 = vrot.slane %v813_v16, 2  ;;  %v851_v31 = vrot.slane %v814_v17, 2  ;;  %v407_v17 = vld [vmem:[%s1559_s27 + $0x98] sm:$0x3] }
  0x73   : > { %v796_v38 = vadd.f32 %v776_v7, %v719_v18  ;;  %v852_v32 = vrot.slane %v815_v23, 2  ;;  %v885_v10 = vmul.f32 %v1720_v14, %v1903_v39  ;;  %v886_v33 = vmul.f32 %v1720_v14, %v1911_v37  ;;  %v466_v18 = vld [vmem:[%s1581_s28 + $0x80] sm:$0xff] }
  0x74   : > { %v850_v34 = vsel %vm660_vm1, %v848_v24, %v849_v27  ;;  %v910_v36 = vmul.f32 %v1732_v28, %v1903_v39  ;;  %v911_v41 = vmul.f32 %v1732_v28, %v1905_v26  ;;  %v912_v42 = vmul.f32 %v1732_v28, %v1911_v37  ;;  %v468_v27 = vld [vmem:[%s1581_s28 + $0x90] sm:$0xff] }
  0x75   : > { %v853_v43 = vsel %vm660_vm1, %v851_v31, %v852_v32  ;;  %v872_v44 = vadd.f32 %v850_v34, %v795_v25  ;;  %v913_v45 = vmul.f32 %v1732_v28, %v1913_v21  ;;  %v987_v46 = vmul.f32 %v1741_v40, %v1903_v39  ;;  %v467_v25 = vld [vmem:[%s1581_s28 + $0x88] sm:$0x3] }
  0x76   : > { %v873_v48 = vadd.f32 %v853_v43, %v796_v38  ;;  %v946_v49 = vrot.slane %v910_v36, 1  ;;  %v947_v50 = vrot.slane %v911_v41, 1  ;;  %v949_v51 = vrot.slane %v912_v42, 1 }
  0x77   : > { %v893_v52 = vadd.f32 %v885_v10, %v872_v44  ;;  %v950_v54 = vrot.slane %v913_v45, 1  ;;  %v988_v55 = vmul.f32 %v1741_v40, %v1905_v26  ;;  %v989_v56 = vmul.f32 %v1741_v40, %v1911_v37 }
  0x78   : > { %v894_v58 = vadd.f32 %v886_v33, %v873_v48  ;;  %v948_v5 = vsel %vm582_vm0, %v946_v49, %v947_v50  ;;  %v990_v22 = vmul.f32 %v1741_v40, %v1913_v21  ;;  %v1023_v59 = vrot.slane %v987_v46, 2  ;;  %v469_v33 = vld [vmem:[%s1581_s28 + $0x98] sm:$0x3] }
  0x79   : > { %v951_v6 = vsel %vm582_vm0, %v949_v51, %v950_v54  ;;  %v970_v63 = vadd.f32 %v948_v5, %v893_v52  ;;  %v1024_v3 = vrot.slane %v988_v55, 2  ;;  %v1026_v4 = vrot.slane %v989_v56, 2 }
  0x7a   : > { %v971_v11 = vadd.f32 %v951_v6, %v894_v58  ;;  %v1027_v12 = vrot.slane %v990_v22, 2  ;;  %v384_v13 = vmul.f32 %v1561_v15, %v362_v0  ;;  %v385_v16 = vmul.f32 %v1561_v15, %v363_v2 }
  0x7b   : > { %v1025_v19 = vsel %vm660_vm1, %v1023_v59, %v1024_v3  ;;  %v386_v23 = vmul.f32 %v1561_v15, %v364_v60  ;;  %v387_v24 = vmul.f32 %v1561_v15, %v365_v61  ;;  %v426_v7 = vmul.f32 %v1568_v20, %v404_v62 }
  0x7c   : > { %v1028_v31 = vsel %vm660_vm1, %v1026_v4, %v1027_v12  ;;  %v1047_v38 = vadd.f32 %v1025_v19, %v970_v63  ;;  %v427_v32 = vmul.f32 %v1568_v20, %v405_v8  ;;  %v428_v10 = vmul.f32 %v1568_v20, %v406_v9 }
  0x7d   : > { %v1048_v34 = vadd.f32 %v1028_v31, %v971_v11  ;;  %v429_v36 = vmul.f32 %v1568_v20, %v407_v17  ;;  %v446_v41 = vadd.f32 %v426_v7, %v384_v13  ;;  %v488_v42 = vmul.f32 %v1610_v53, %v466_v18 }
  0x7e   : > { %v447_v43 = vadd.f32 %v427_v32, %v385_v16  ;;  %v448_v15 = vadd.f32 %v428_v10, %v386_v23  ;;  %v489_v44 = vmul.f32 %v1610_v53, %v467_v25  ;;  %v490_v45 = vmul.f32 %v1610_v53, %v468_v27 }
  0x7f   : > { %v1053_v46 = vpack.c.bf16 %v1048_v34, %v1047_v38  ;;  %v449_v48 = vadd.f32 %v429_v36, %v387_v24  ;;  %v491_v49 = vmul.f32 %v1610_v53, %v469_v33  ;;  %v508_v50 = vadd.f32 %v488_v42, %v446_v41 }
  0x80   : > { %v509_v51 = vadd.f32 %v489_v44, %v447_v43  ;;  %v510_v52 = vadd.f32 %v490_v45, %v448_v15  ;;  %v543_v54 = vmul.f32 %v1650_v29, %v1903_v39  ;;  %v544_v20 = vmul.f32 %v1650_v29, %v1911_v37 }
  0x81   : > { %1370 = vmatprep.mubr.bf16.mxu1 %v1053_v46  ;;  %v2003_v55 = vadd.f32 %v491_v49, %v449_v48  ;;  %v2005_v56 = vmax.f32 %v508_v50, 0.0  ;;  %v562_v0 = vmul.f32 %v1655_v30, %v1903_v39  ;;  %v563_v53 = vmul.f32 %v1655_v30, %v1905_v26 }
  0x82   : > { %v2011_v2 = vmax.f32 %v509_v51, 0.0  ;;  %v2013_v58 = vmax.f32 %v510_v52, 0.0  ;;  %v564_v5 = vmul.f32 %v1655_v30, %v1911_v37  ;;  %v565_v29 = vmul.f32 %v1655_v30, %v1913_v21 }
  0x83   : > { %v531_v22 = vmax.f32 %v2003_v55, 0.0  ;;  %v601_v59 = vrot.slane %v562_v0, 1  ;;  %v602_v60 = vrot.slane %v563_v53, 1  ;;  %v640_v61 = vmul.f32 %v1662_v35, %v1903_v39 }
  0x84   : > { %v604_v62 = vrot.slane %v564_v5, 1  ;;  %v605_v6 = vrot.slane %v565_v29, 1  ;;  %v641_v63 = vmul.f32 %v1662_v35, %v1905_v26  ;;  %v642_v3 = vmul.f32 %v1662_v35, %v1911_v37 }
  0x85   : > { %v603_v4 = vsel %vm582_vm0, %v601_v59, %v602_v60  ;;  %v643_v30 = vmul.f32 %v1662_v35, %v1913_v21  ;;  %v679_v8 = vrot.slane %v640_v61, 2  ;;  %v712_v9 = vmul.f32 %v1681_v47, %v1911_v37 }
  0x86   : > { %v606_v11 = vsel %vm582_vm0, %v604_v62, %v605_v6  ;;  %v621_v39 = vadd.f32 %v603_v4, %v543_v54  ;;  %v680_v12 = vrot.slane %v641_v63, 2  ;;  %v682_v13 = vrot.slane %v642_v3, 2 }
  0x87   : > { %v622_v16 = vadd.f32 %v606_v11, %v544_v20  ;;  %v683_v17 = vrot.slane %v643_v30, 2  ;;  %v713_v26 = vmul.f32 %v1681_v47, %v2005_v56  ;;  %v739_v18 = vmul.f32 %v1690_v57, %v1911_v37 }
  0x88   : > { %v681_v19 = vsel %vm660_vm1, %v679_v8, %v680_v12  ;;  %v740_v35 = vmul.f32 %v1690_v57, %v1913_v21  ;;  %v741_v23 = vmul.f32 %v1690_v57, %v2005_v56  ;;  %v742_v24 = vmul.f32 %v1690_v57, %v2011_v2 }
  0x89   : > { %v684_v7 = vsel %vm660_vm1, %v682_v13, %v683_v17  ;;  %v699_v25 = vadd.f32 %v681_v19, %v621_v39  ;;  %v777_v27 = vrot.slane %v739_v18, 1  ;;  %v816_v47 = vmul.f32 %v1701_v1, %v1911_v37 }
  0x8a   : > { %v700_v31 = vadd.f32 %v684_v7, %v622_v16  ;;  %v778_v38 = vrot.slane %v740_v35, 1  ;;  %v780_v32 = vrot.slane %v741_v23, 1  ;;  %v781_v10 = vrot.slane %v742_v24, 1 }
  0x8b   : > { %v720_v33 = vadd.f32 %v712_v9, %v699_v25  ;;  %v817_v34 = vmul.f32 %v1701_v1, %v1913_v21  ;;  %v818_v36 = vmul.f32 %v1701_v1, %v2005_v56  ;;  %v819_v57 = vmul.f32 %v1701_v1, %v2011_v2 }
  0x8c   : > { %v721_v41 = vadd.f32 %v713_v26, %v700_v31  ;;  %v779_v42 = vsel %vm582_vm0, %v777_v27, %v778_v38  ;;  %v782_v43 = vsel %vm582_vm0, %v780_v32, %v781_v10  ;;  %v854_v37 = vrot.slane %v816_v47, 2 }
  0x8d   : > { %v797_v15 = vadd.f32 %v779_v42, %v720_v33  ;;  %v855_v44 = vrot.slane %v817_v34, 2  ;;  %v857_v45 = vrot.slane %v818_v36, 2  ;;  %v858_v46 = vrot.slane %v819_v57, 2 }
  0x8e   : > { %v798_v48 = vadd.f32 %v782_v43, %v721_v41  ;;  %v887_v21 = vmul.f32 %v1720_v14, %v2005_v56  ;;  %v888_v49 = vmul.f32 %v1720_v14, %v2013_v58  ;;  %v914_v1 = vmul.f32 %v1732_v28, %v2005_v56 }
  0x8f   : > { %v856_v50 = vsel %vm660_vm1, %v854_v37, %v855_v44  ;;  %v859_v51 = vsel %vm660_vm1, %v857_v45, %v858_v46  ;;  %v915_v52 = vmul.f32 %v1732_v28, %v2011_v2  ;;  %v916_v54 = vmul.f32 %v1732_v28, %v2013_v58 }
  0x90   : > { %v874_v20 = vadd.f32 %v856_v50, %v797_v15  ;;  %v875_v0 = vadd.f32 %v859_v51, %v798_v48  ;;  %v917_v53 = vmul.f32 %v1732_v28, %v531_v22  ;;  %v952_v14 = vrot.slane %v914_v1, 1 }
  0x91   : > { %v953_v5 = vrot.slane %v915_v52, 1  ;;  %v955_v29 = vrot.slane %v916_v54, 1  ;;  %v991_v59 = vmul.f32 %v1741_v40, %v2005_v56  ;;  %v992_v60 = vmul.f32 %v1741_v40, %v2011_v2 }
  0x92   : > { %v895_v61 = vadd.f32 %v887_v21, %v874_v20  ;;  %v896_v62 = vadd.f32 %v888_v49, %v875_v0  ;;  %v956_v6 = vrot.slane %v917_v53, 1  ;;  %v993_v63 = vmul.f32 %v1741_v40, %v2013_v58 }
  0x93   : > { %v954_v3 = vsel %vm582_vm0, %v952_v14, %v953_v5  ;;  %v994_v28 = vmul.f32 %v1741_v40, %v531_v22  ;;  %v1029_v4 = vrot.slane %v991_v59, 2  ;;  %v1030_v30 = vrot.slane %v992_v60, 2 }
  0x94   : > { %v957_v56 = vsel %vm582_vm0, %v955_v29, %v956_v6  ;;  %v972_v8 = vadd.f32 %v954_v3, %v895_v61  ;;  %v1032_v2 = vrot.slane %v993_v63, 2  ;;  %v1439_v40 = vmov 0.0  }
  0x95   : > { %v973_v9 = vadd.f32 %v957_v56, %v896_v62  ;;  %v1031_v11 = vsel %vm660_vm1, %v1029_v4, %v1030_v30  ;;  %v1033_v39 = vrot.slane %v994_v28, 2  ;;  %1188 = vst [vmem:[%s2086_s16 + $0x2] sm:$0x3f] %v1439_v40 }
  0x96   : > { %v1049_v12 = vadd.f32 %v1031_v11, %v972_v8 }
  0x97   : > { %v1034_v58 = vsel %vm660_vm1, %v1032_v2, %v1033_v39 }
  0x98   : > { %v1050_v13 = vadd.f32 %v1034_v58, %v973_v9 }
  0x9a   : > { %v1054_v16 = vpack.c.bf16 %v1050_v13, %v1049_v12 }
  0x9c   : > { %1371 = vmatmul.mubr.bf16.vlgmr.msra.gmra.mxu1 %v1054_v16 }
 0x126   : > { %v1368_v55 = vpop.f32.mrf.mxu0 }
 0x127   : > { %1146 = vst [vmem:[%s339_s26 + $0x10] sm:$0xff] %v1368_v55  ;;  %v1168_v24 = vmul.f32 %v1368_v55, %v1368_v55 }
 0x128   : > { %v1113_v22 = vpop.f32.mrf.mxu0 }
 0x129   : > { %1144 = vst [vmem:[%s339_s26] sm:$0xff] %v1113_v22  ;;  %v1166_v19 = vmul.f32 %v1113_v22, %v1113_v22 }
 0x12a   : > { %v1369_v17 = vpop.f32.mrf.mxu0 }
 0x12b   : > { %1147 = vst [vmem:[%s339_s26 + $0x18] sm:$0xff] %v1369_v17  ;;  %v1169_v27 = vmul.f32 %v1369_v17, %v1369_v17 }
 0x12c   : > { %v1116_v26 = vpop.f32.mrf.mxu0 }
 0x12d   : > { %1145 = vst [vmem:[%s339_s26 + $0x8] sm:$0xff] %v1116_v26  ;;  %v1167_v18 = vmul.f32 %v1116_v26, %v1116_v26  ;;  %v1152_v35 = vadd.f32 %v1116_v26, %v1113_v22 }
 0x12f   : > { %v1174_v23 = vadd.f32 %v1167_v18, %v1166_v19  ;;  %v1153_v7 = vadd.f32 %v1368_v55, %v1152_v35 }
 0x131   : > { %v1175_v25 = vadd.f32 %v1174_v23, %v1168_v24  ;;  %v1154_v47 = vadd.f32 %v1369_v17, %v1153_v7 }
 0x133   : > { %v1176_v38 = vadd.f32 %v1175_v25, %v1169_v27 }
 0x15c   : > { %v1372_v31 = vpop.f32.mrf.mxu1 }
 0x15d   : > { %1150 = vst [vmem:[%s339_s26 + $0x30] sm:$0xff] %v1372_v31  ;;  %v1172_v43 = vmul.f32 %v1372_v31, %v1372_v31 }
 0x15e   : > { %v1129_v32 = vpop.f32.mrf.mxu1 }
 0x15f   : > { %1148 = vst [vmem:[%s339_s26 + $0x20] sm:$0xff] %v1129_v32  ;;  %v1170_v10 = vmul.f32 %v1129_v32, %v1129_v32  ;;  %v1155_v33 = vadd.f32 %v1154_v47, %v1129_v32 }
 0x160   : > { %v1373_v34 = vpop.f32.mrf.mxu1 }
 0x161   : > { %1151 = vst [vmem:[%s339_s26 + $0x38] sm:$0xff] %v1373_v34  ;;  %v1177_v36 = vadd.f32 %v1176_v38, %v1170_v10  ;;  %v1173_v44 = vmul.f32 %v1373_v34, %v1373_v34 }
 0x162   : > { %v1132_v57 = vpop.f32.mrf.mxu1 }
 0x163   : > { %1149 = vst [vmem:[%s339_s26 + $0x28] sm:$0xff] %v1132_v57  ;;  %v1156_v41 = vadd.f32 %v1155_v33, %v1132_v57  ;;  %v1171_v42 = vmul.f32 %v1132_v57, %v1132_v57 }
 0x165   : > { %v1157_v37 = vadd.f32 %v1372_v31, %v1156_v41  ;;  %v1178_v15 = vadd.f32 %v1177_v36, %v1171_v42 }
 0x167   : > { %v1158_v45 = vadd.f32 %v1373_v34, %v1157_v37  ;;  %v1179_v46 = vadd.f32 %v1178_v15, %v1172_v43 }
 0x169   : > { %v1159_v48 = vrot.slane %v1158_v45, 4  ;;  %v1180_v21 = vadd.f32 %v1179_v46, %v1173_v44 }
 0x16b   : > { %v1160_v49 = vadd.f32 %v1159_v48, %v1158_v45  ;;  %v1181_v1 = vrot.slane %v1180_v21, 4 }
 0x16d   : > { %v1161_v50 = vrot.slane %v1160_v49, 2  ;;  %v1182_v51 = vadd.f32 %v1181_v1, %v1180_v21 }
 0x16f   : > { %v1162_v52 = vadd.f32 %v1161_v50, %v1160_v49  ;;  %v1183_v54 = vrot.slane %v1182_v51, 2 }
 0x171   : > { %v1163_v20 = vrot.slane %v1162_v52, 1  ;;  %v1184_v0 = vadd.f32 %v1183_v54, %v1182_v51 }
 0x173   : > { %v1164_v53 = vadd.f32 %v1163_v20, %v1162_v52  ;;  %v1185_v14 = vrot.slane %v1184_v0, 1 }
 0x175   : > { %1165 = vst [vmem:[%s2086_s16] sm:$0x1] %v1164_v53  ;;  %v1186_v5 = vadd.f32 %v1185_v14, %v1184_v0 }
 0x177   : > { %1187 = vst [vmem:[%s2086_s16 + $0x1] sm:$0x1] %v1186_v5 }
 0x178 PF: > { %s19_s24 = sadd.s32 1, %s1436_s24  }
 0x179   : > { %p16_p2 = scmp.ge.s32.totalorder %s19_s24, 4  }
 0x17b   :  { %18 = sbr.rel (!%p16_p2) target bundleno = 1 (0x1), region = 97 }
 0x180   :  { %1225 = vsyncpa [#allocation3], 1 }
 0x181   :  { %1227 = vsyncpa [#allocation3 + $0x1], 1 }

</bundles_post_ra>
